<compile_context>
chip_gen: v7x
topology: tpu7x:2x2x1
jax: 0.10.0
libtpu: 0.0.40
codegen_flags: <defaults>
</compile_context>

<pallas_src>
import functools

import jax
import jax.numpy as jnp
from jax import lax
from jax.experimental import pallas as pl
from jax.experimental.pallas import tpu as pltpu

KS = 3
PAD = KS // 2        # spatial halo of the 3x3 SAME conv
LPAD = 8             # left pad of the hidden-state W axis -> sublane-aligned interior store


def _pick_h_tile(H, W, c3):
    """Largest divisor of H keeping the f32 accumulator tile (h_tile*W, 3*Cout) ~<=512KB."""
    max_rows = max(128, (512 * 1024) // (4 * c3))
    cap = max(1, min(H, max_rows // max(W, 1)))
    for cand in range(cap, 0, -1):
        if H % cand == 0:
            return cand
    return 1


def convgru_seq_kernel(x_ref, wx_ref, wh_ref, bzr_ref, bh1_ref, bh2_ref,
                       out_ref, h_scratch, *, h_tile):
    """One grid step == one (batch element, timestep).

    x_ref     : (Hp, Wp, Cin)             bf16, spatially zero-padded input frame
    wx_ref    : (9*Cin, 3*Cout)           bf16, fused x-path weights [w_zr_x | w_h1] (im2col)
    wh_ref    : (KS, KS, Cout, 3*Cout)    bf16, fused h-path weights [w_zr_h | w_h2]
    b*_ref    : f32 biases
    out_ref   : (H, W, Cout)              f32, hidden state emitted for this timestep
    h_scratch : (2, Hp, LPAD+W+PAD, Cout) f32 ping-pong padded hidden state (borders stay 0)
    """
    H, W, Cout = out_ref.shape
    Cin = x_ref.shape[-1]
    C2 = 2 * Cout
    rows = h_tile * W
    n_tiles = H // h_tile

    t = pl.program_id(1)
    src = t % 2          # previous hidden lives here
    dst = 1 - src        # new hidden goes here (avoids RAW hazard across row tiles)

    # First timestep of every batch element: zero both padded hidden buffers.
    # (Borders stay zero forever; only interiors are written below.)
    @pl.when(t == 0)
    def _():
        h_scratch[...] = jnp.zeros_like(h_scratch)

    bzr = bzr_ref[...]   # (1, 2*Cout)
    bh1 = bh1_ref[...]   # (1, Cout)
    bh2 = bh2_ref[...]   # (1, Cout)

    def tile_body(i, carry):
        h0 = pl.multiple_of(i * h_tile, h_tile)

        # ---- x path: im2col over the 9 taps (K = 9*Cin) -> ONE MXU matmul = [zr_x | hx] ----
        x_win = x_ref[pl.ds(h0, h_tile + 2 * PAD), :, :]            # (h_tile+2, Wp, Cin) bf16
        taps = []
        for dy in range(KS):
            for dx in range(KS):
                taps.append(x_win[dy:dy + h_tile, dx:dx + W, :])
        xs = jnp.concatenate(taps, axis=-1).reshape(rows, KS * KS * Cin)
        acc_x = jnp.dot(xs, wx_ref[...], preferred_element_type=jnp.float32)

        # ---- h path: 9 taps with N-fused weights (Cout -> 3*Cout) = [zr_h | hh] ----
        h_win = h_scratch[src, pl.ds(h0, h_tile + 2 * PAD), :, :]   # (h_tile+2, Ws, Cout) f32
        h_win_b = h_win.astype(jnp.bfloat16)
        acc_h = None
        for dy in range(KS):
            for dx in range(KS):
                c0 = LPAD - PAD + dx
                hs = h_win_b[dy:dy + h_tile, c0:c0 + W, :].reshape(rows, Cout)
                part = jnp.dot(hs, wh_ref[dy, dx], preferred_element_type=jnp.float32)
                acc_h = part if acc_h is None else acc_h + part

        # ---- fused gate epilogue on the resident tile (EUP sigmoid/tanh, VPU blend) ----
        zr = jax.nn.sigmoid(acc_x[:, :C2] + acc_h[:, :C2] + bzr)
        z = zr[:, :Cout]
        r = zr[:, Cout:]
        h_prev = h_win[PAD:PAD + h_tile, LPAD:LPAD + W, :].reshape(rows, Cout)
        h_tilde = jnp.tanh(acc_x[:, C2:] + bh1 + r * (acc_h[:, C2:] + bh2))
        h_new = ((1.0 - z) * h_tilde + z * h_prev).reshape(h_tile, W, Cout)

        out_ref[pl.ds(h0, h_tile), :, :] = h_new
        # Interior write starts at sublane offset LPAD (multiple of 8) -> unmasked stores.
        h_scratch[dst, pl.ds(h0 + PAD, h_tile), LPAD:LPAD + W, :] = h_new
        return carry

    lax.fori_loop(0, n_tiles, tile_body, 0, unroll=True)


def temporal_encoder_forward(x_btchw, params):
    """x_btchw: (B, T, Cin, H, W)  ->  (out: (B, T, Cout, H, W), h_last: (B, Cout, H, W))."""
    B, T, Cin, H, W = x_btchw.shape
    Cout = params["w_h2"].shape[-1]
    C3 = 3 * Cout

    # NCHW -> NHWC with T leading so each per-(t,b) block is a contiguous HBM slab.
    x = jnp.transpose(x_btchw, (1, 0, 3, 4, 2)).astype(jnp.bfloat16)     # (T, B, H, W, Cin)
    x_pad = jnp.pad(x, ((0, 0), (0, 0), (PAD, PAD), (PAD, PAD), (0, 0)))
    Hp, Wp = H + 2 * PAD, W + 2 * PAD
    Ws = LPAD + W + PAD                                                  # padded hidden W

    # Fuse weights along the output-channel (N) dimension; im2col layout for the x path.
    w_x = jnp.concatenate([params["w_zr_x"], params["w_h1"]], axis=-1)   # (3,3,Cin,3C)
    w_x = w_x.reshape(KS * KS * Cin, C3).astype(jnp.bfloat16)            # (9*Cin, 3C)
    w_h = jnp.concatenate([params["w_zr_h"], params["w_h2"]],
                          axis=-1).astype(jnp.bfloat16)                  # (3,3,Cout,3C)

    h_tile = _pick_h_tile(H, W, C3)
    kernel = functools.partial(convgru_seq_kernel, h_tile=h_tile)

    out = pl.pallas_call(
        kernel,
        out_shape=jax.ShapeDtypeStruct((T, B, H, W, Cout), jnp.float32),
        grid_spec=pltpu.PrefetchScalarGridSpec(
            num_scalar_prefetch=0,
            grid=(B, T),                                   # B parallel (megacore), T sequential
            in_specs=[
                pl.BlockSpec((None, None, Hp, Wp, Cin), lambda b, t: (t, b, 0, 0, 0)),
                pl.BlockSpec((KS * KS * Cin, C3), lambda b, t: (0, 0)),
                pl.BlockSpec((KS, KS, Cout, C3), lambda b, t: (0, 0, 0, 0)),
                pl.BlockSpec((1, 2 * Cout), lambda b, t: (0, 0)),
                pl.BlockSpec((1, Cout), lambda b, t: (0, 0)),
                pl.BlockSpec((1, Cout), lambda b, t: (0, 0)),
            ],
            out_specs=pl.BlockSpec((None, None, H, W, Cout), lambda b, t: (t, b, 0, 0, 0)),
            scratch_shapes=[pltpu.VMEM((2, Hp, Ws, Cout), jnp.float32)],
        ),
        compiler_params=pltpu.CompilerParams(
            dimension_semantics=("parallel", "arbitrary"),
            vmem_limit_bytes=48 * 1024 * 1024),
    )(x_pad, w_x, w_h,
      params["b_zr"].astype(jnp.float32),
      params["b_h1"].astype(jnp.float32),
      params["b_h2"].astype(jnp.float32))

    out_nchw = jnp.transpose(out, (1, 0, 4, 2, 3))   # (B, T, Cout, H, W)
    h_last = out_nchw[:, -1]                         # single layer: h[-1] == last timestep
    return out_nchw, h_last


# ----------------------- pure-JAX reference (for checking) -----------------------
def _conv_nhwc_bf16(x, w_hwio, b):
    """Mirrors the kernel precision: bf16 inputs/weights, f32 accumulation, f32 bias."""
    y = lax.conv_general_dilated(
        x.astype(jnp.bfloat16), w_hwio.astype(jnp.bfloat16),
        window_strides=(1, 1), padding="SAME",
        dimension_numbers=("NHWC", "HWIO", "NHWC"),
        preferred_element_type=jnp.float32)
    return y + b.reshape(1, 1, 1, -1)


def reference_forward(x_btchw, p):
    B, T, Cin, H, W = x_btchw.shape
    Cout = p["w_h2"].shape[-1]
    x = jnp.transpose(x_btchw, (0, 1, 3, 4, 2)).astype(jnp.float32)
    h = jnp.zeros((B, H, W, Cout), jnp.float32)
    zero_b = jnp.zeros((2 * Cout,), jnp.float32)
    outs = []
    for t in range(T):
        xt = x[:, t]
        zr = jax.nn.sigmoid(_conv_nhwc_bf16(xt, p["w_zr_x"], p["b_zr"].reshape(-1))
                            + _conv_nhwc_bf16(h, p["w_zr_h"], zero_b))
        z, r = zr[..., :Cout], zr[..., Cout:]
        h_tilde = jnp.tanh(_conv_nhwc_bf16(xt, p["w_h1"], p["b_h1"].reshape(-1))
                           + r * _conv_nhwc_bf16(h, p["w_h2"], p["b_h2"].reshape(-1)))
        h = (1.0 - z) * h_tilde + z * h
        outs.append(h)
    out = jnp.transpose(jnp.stack(outs, axis=1), (0, 1, 4, 2, 3))
    return out, out[:, -1]


def init_params(key, in_channels, out_channels):
    """Deterministic synthetic init. Weights in HWIO (kh, kw, Cin, Cout):
    w_hwio[dy, dx, i, o] corresponds to torch Conv2d weight[o, i, dy, dx]."""
    ks = KS
    k = jax.random.split(key, 7)
    s = 0.2
    return {
        "w_zr_x": s * jax.random.normal(k[0], (ks, ks, in_channels, 2 * out_channels), jnp.float32),
        "w_zr_h": s * jax.random.normal(k[1], (ks, ks, out_channels, 2 * out_channels), jnp.float32),
        "w_h1":   s * jax.random.normal(k[2], (ks, ks, in_channels, out_channels), jnp.float32),
        "w_h2":   s * jax.random.normal(k[3], (ks, ks, out_channels, out_channels), jnp.float32),
        "b_zr":   s * jax.random.normal(k[4], (1, 2 * out_channels), jnp.float32),
        "b_h1":   s * jax.random.normal(k[5], (1, out_channels), jnp.float32),
        "b_h2":   s * jax.random.normal(k[6], (1, out_channels), jnp.float32),
    }


if __name__ == "__main__":
    B, T, Cin, H, W = 2, 8, 8, 16, 16
    Cout = 32   # small stand-in for the default out_channels=384

    key = jax.random.PRNGKey(0)
    kx, kp = jax.random.split(key)
    x = jax.random.normal(kx, (B, T, Cin, H, W), jnp.float32)   # PyTorch-style (B,T,C,H,W)
    params = init_params(kp, Cin, Cout)

    out, h_last = jax.jit(temporal_encoder_forward)(x, params)
    out = jax.block_until_ready(out)
    h_last = jax.block_until_ready(h_last)

    ref_out, ref_h = reference_forward(x, params)
    assert out.shape == (B, T, Cout, H, W) and h_last.shape == (B, Cout, H, W)
    if not (jnp.allclose(out, ref_out, rtol=3e-3, atol=3e-3)
            and jnp.allclose(h_last, ref_h, rtol=3e-3, atol=3e-3)):
        raise AssertionError("Pallas ConvGRU output does not match JAX reference")

    print("KERNEL_OK")
</pallas_src>

<mosaic_0001>
module attributes {stable_mosaic.version = 11 : i64} {
  func.func @convgru_seq_kernel(%arg0: i32, %arg1: i32, %arg2: memref<1x1x18x18x8xbf16, #tpu.memory_space<vmem>>, %arg3: memref<72x96xbf16, #tpu.memory_space<vmem>>, %arg4: memref<3x3x32x96xbf16, #tpu.memory_space<vmem>>, %arg5: memref<1x64xf32, #tpu.memory_space<vmem>>, %arg6: memref<1x32xf32, #tpu.memory_space<vmem>>, %arg7: memref<1x32xf32, #tpu.memory_space<vmem>>, %arg8: memref<1x1x16x16x32xf32, #tpu.memory_space<vmem>>, %arg9: memref<2x18x25x32xf32, #tpu.memory_space<vmem>>) attributes {dimension_semantics = [#tpu.dimension_semantics<parallel>, #tpu.dimension_semantics<arbitrary>], iteration_bounds = array<i64: 2, 8>, scalar_prefetch = 0 : i64, scratch_operands = 1 : i64, tpu.core_type = #tpu.core_type<tc>, window_params = [{transform_indices = @transform_0, window_bounds = array<i64: 1, 1, 18, 18, 8>}, {pipeline_mode = #tpu.pipeline_mode<synchronous>, transform_indices = @transform_1, window_bounds = array<i64: 72, 96>}, {pipeline_mode = #tpu.pipeline_mode<synchronous>, transform_indices = @transform_2, window_bounds = array<i64: 3, 3, 32, 96>}, {pipeline_mode = #tpu.pipeline_mode<synchronous>, transform_indices = @transform_3, window_bounds = array<i64: 1, 64>}, {pipeline_mode = #tpu.pipeline_mode<synchronous>, transform_indices = @transform_4, window_bounds = array<i64: 1, 32>}, {pipeline_mode = #tpu.pipeline_mode<synchronous>, transform_indices = @transform_5, window_bounds = array<i64: 1, 32>}, {transform_indices = @transform_6, window_bounds = array<i64: 1, 1, 16, 16, 32>}]} {
    %c2_i32 = arith.constant 2 : i32
    %c0_i32 = arith.constant 0 : i32
    %0 = arith.cmpi eq, %c2_i32, %c0_i32 : i32
    %c1_i32 = arith.constant 1 : i32
    %1 = arith.select %0, %c1_i32, %c2_i32 : i32
    %2 = arith.remsi %arg1, %1 : i32
    %c0_i32_0 = arith.constant 0 : i32
    %3 = arith.cmpi ne, %2, %c0_i32_0 : i32
    %c0_i32_1 = arith.constant 0 : i32
    %4 = arith.cmpi slt, %2, %c0_i32_1 : i32
    %c0_i32_2 = arith.constant 0 : i32
    %5 = arith.cmpi slt, %1, %c0_i32_2 : i32
    %6 = arith.xori %4, %5 : i1
    %7 = arith.andi %6, %3 : i1
    %8 = arith.addi %2, %1 : i32
    %9 = arith.select %7, %8, %2 : i32
    %c1_i32_3 = arith.constant 1 : i32
    %10 = arith.subi %c1_i32_3, %9 : i32
    %c0_i32_4 = arith.constant 0 : i32
    %11 = arith.cmpi eq, %arg1, %c0_i32_4 : i32
    %12 = arith.extui %11 : i1 to i32
    %c0_i32_5 = arith.constant 0 : i32
    %13 = arith.cmpi ne, %12, %c0_i32_5 : i32
    scf.if %13 {
      %cst_72 = arith.constant 0.000000e+00 : f32
      %132 = vector.broadcast %cst_72 : f32 to vector<2x18x25x32xf32>
      %c0_73 = arith.constant 0 : index
      %c0_74 = arith.constant 0 : index
      %c0_75 = arith.constant 0 : index
      %c0_76 = arith.constant 0 : index
      %133 = vector.load %arg9[%c0_73, %c0_74, %c0_75, %c0_76] : memref<2x18x25x32xf32, #tpu.memory_space<vmem>>, vector<2x18x25x32xf32>
      tpu.vector_store %arg9[%c0_73, %c0_74, %c0_75, %c0_76], %132 {strides = array<i32>} : memref<2x18x25x32xf32, #tpu.memory_space<vmem>>, vector<2x18x25x32xf32>,
    } else {
    }
    %c0 = arith.constant 0 : index
    %c0_6 = arith.constant 0 : index
    %14 = vector.load %arg5[%c0, %c0_6] : memref<1x64xf32, #tpu.memory_space<vmem>>, vector<1x64xf32>
    %c0_7 = arith.constant 0 : index
    %c0_8 = arith.constant 0 : index
    %15 = vector.load %arg6[%c0_7, %c0_8] : memref<1x32xf32, #tpu.memory_space<vmem>>, vector<1x32xf32>
    %c0_9 = arith.constant 0 : index
    %c0_10 = arith.constant 0 : index
    %16 = vector.load %arg7[%c0_9, %c0_10] : memref<1x32xf32, #tpu.memory_space<vmem>>, vector<1x32xf32>
    %c0_i32_11 = arith.constant 0 : i32
    %c16_i32 = arith.constant 16 : i32
    %17 = arith.muli %c0_i32_11, %c16_i32 : i32
    %18 = tpu.assume_multiple %17, 16 : i32
    %c0_12 = arith.constant 0 : index
    %c0_13 = arith.constant 0 : index
    %19 = arith.index_cast %18 : i32 to index
    %c0_14 = arith.constant 0 : index
    %c0_15 = arith.constant 0 : index
    %20 = vector.load %arg2[%c0_12, %c0_13, %19, %c0_14, %c0_15] : memref<1x1x18x18x8xbf16, #tpu.memory_space<vmem>>, vector<1x1x18x18x8xbf16>
    %21 = vector.shape_cast %20 : vector<1x1x18x18x8xbf16> to vector<18x18x8xbf16>
    %22 = vector.extract_strided_slice %21 {offsets = [0, 0, 0], sizes = [16, 16, 8], strides = [1, 1, 1]} : vector<18x18x8xbf16> to vector<16x16x8xbf16>
    %23 = vector.extract_strided_slice %21 {offsets = [0, 1, 0], sizes = [16, 16, 8], strides = [1, 1, 1]} : vector<18x18x8xbf16> to vector<16x16x8xbf16>
    %24 = vector.extract_strided_slice %21 {offsets = [0, 2, 0], sizes = [16, 16, 8], strides = [1, 1, 1]} : vector<18x18x8xbf16> to vector<16x16x8xbf16>
    %25 = vector.extract_strided_slice %21 {offsets = [1, 0, 0], sizes = [16, 16, 8], strides = [1, 1, 1]} : vector<18x18x8xbf16> to vector<16x16x8xbf16>
    %26 = vector.extract_strided_slice %21 {offsets = [1, 1, 0], sizes = [16, 16, 8], strides = [1, 1, 1]} : vector<18x18x8xbf16> to vector<16x16x8xbf16>
    %27 = vector.extract_strided_slice %21 {offsets = [1, 2, 0], sizes = [16, 16, 8], strides = [1, 1, 1]} : vector<18x18x8xbf16> to vector<16x16x8xbf16>
    %28 = vector.extract_strided_slice %21 {offsets = [2, 0, 0], sizes = [16, 16, 8], strides = [1, 1, 1]} : vector<18x18x8xbf16> to vector<16x16x8xbf16>
    %29 = vector.extract_strided_slice %21 {offsets = [2, 1, 0], sizes = [16, 16, 8], strides = [1, 1, 1]} : vector<18x18x8xbf16> to vector<16x16x8xbf16>
    %30 = vector.extract_strided_slice %21 {offsets = [2, 2, 0], sizes = [16, 16, 8], strides = [1, 1, 1]} : vector<18x18x8xbf16> to vector<16x16x8xbf16>
    %31 = tpu.concatenate %22, %23, %24, %25, %26, %27, %28, %29, %30 in 2 : vector<16x16x8xbf16>, vector<16x16x8xbf16>, vector<16x16x8xbf16>, vector<16x16x8xbf16>, vector<16x16x8xbf16>, vector<16x16x8xbf16>, vector<16x16x8xbf16>, vector<16x16x8xbf16>, vector<16x16x8xbf16> -> vector<16x16x72xbf16>
    %32 = vector.shape_cast %31 : vector<16x16x72xbf16> to vector<256x72xbf16>
    %c0_16 = arith.constant 0 : index
    %c0_17 = arith.constant 0 : index
    %33 = vector.load %arg3[%c0_16, %c0_17] : memref<72x96xbf16, #tpu.memory_space<vmem>>, vector<72x96xbf16>
    %cst = arith.constant dense<0.000000e+00> : vector<256x96xf32>
    %34 = tpu.matmul %32, %33, %cst {dimension_numbers = #tpu.dot_dimension_numbers<[1], [0], [0], [1], [0, 0, 1, 1], [], []>} : vector<256x72xbf16>, vector<72x96xbf16>, vector<256x96xf32> -> vector<256x96xf32>
    %35 = arith.index_cast %9 : i32 to index
    %36 = arith.index_cast %18 : i32 to index
    %c0_18 = arith.constant 0 : index
    %c0_19 = arith.constant 0 : index
    %37 = vector.load %arg9[%35, %36, %c0_18, %c0_19] : memref<2x18x25x32xf32, #tpu.memory_space<vmem>>, vector<1x18x25x32xf32>
    %38 = vector.shape_cast %37 : vector<1x18x25x32xf32> to vector<18x25x32xf32>
    %39 = arith.truncf %38 : vector<18x25x32xf32> to vector<18x25x32xbf16>
    %40 = vector.extract_strided_slice %39 {offsets = [0, 7, 0], sizes = [16, 16, 32], strides = [1, 1, 1]} : vector<18x25x32xbf16> to vector<16x16x32xbf16>
    %41 = vector.shape_cast %40 : vector<16x16x32xbf16> to vector<256x32xbf16>
    %c0_20 = arith.constant 0 : index
    %c0_21 = arith.constant 0 : index
    %c0_22 = arith.constant 0 : index
    %c0_23 = arith.constant 0 : index
    %42 = vector.load %arg4[%c0_20, %c0_21, %c0_22, %c0_23] : memref<3x3x32x96xbf16, #tpu.memory_space<vmem>>, vector<1x1x32x96xbf16>
    %43 = vector.shape_cast %42 : vector<1x1x32x96xbf16> to vector<32x96xbf16>
    %cst_24 = arith.constant dense<0.000000e+00> : vector<256x96xf32>
    %44 = tpu.matmul %41, %43, %cst_24 {dimension_numbers = #tpu.dot_dimension_numbers<[1], [0], [0], [1], [0, 0, 1, 1], [], []>} : vector<256x32xbf16>, vector<32x96xbf16>, vector<256x96xf32> -> vector<256x96xf32>
    %45 = vector.extract_strided_slice %39 {offsets = [0, 8, 0], sizes = [16, 16, 32], strides = [1, 1, 1]} : vector<18x25x32xbf16> to vector<16x16x32xbf16>
    %46 = vector.shape_cast %45 : vector<16x16x32xbf16> to vector<256x32xbf16>
    %c0_25 = arith.constant 0 : index
    %c1 = arith.constant 1 : index
    %c0_26 = arith.constant 0 : index
    %c0_27 = arith.constant 0 : index
    %47 = vector.load %arg4[%c0_25, %c1, %c0_26, %c0_27] : memref<3x3x32x96xbf16, #tpu.memory_space<vmem>>, vector<1x1x32x96xbf16>
    %48 = vector.shape_cast %47 : vector<1x1x32x96xbf16> to vector<32x96xbf16>
    %cst_28 = arith.constant dense<0.000000e+00> : vector<256x96xf32>
    %49 = tpu.matmul %46, %48, %cst_28 {dimension_numbers = #tpu.dot_dimension_numbers<[1], [0], [0], [1], [0, 0, 1, 1], [], []>} : vector<256x32xbf16>, vector<32x96xbf16>, vector<256x96xf32> -> vector<256x96xf32>
    %50 = arith.addf %44, %49 : vector<256x96xf32>
    %51 = vector.extract_strided_slice %39 {offsets = [0, 9, 0], sizes = [16, 16, 32], strides = [1, 1, 1]} : vector<18x25x32xbf16> to vector<16x16x32xbf16>
    %52 = vector.shape_cast %51 : vector<16x16x32xbf16> to vector<256x32xbf16>
    %c0_29 = arith.constant 0 : index
    %c2 = arith.constant 2 : index
    %c0_30 = arith.constant 0 : index
    %c0_31 = arith.constant 0 : index
    %53 = vector.load %arg4[%c0_29, %c2, %c0_30, %c0_31] : memref<3x3x32x96xbf16, #tpu.memory_space<vmem>>, vector<1x1x32x96xbf16>
    %54 = vector.shape_cast %53 : vector<1x1x32x96xbf16> to vector<32x96xbf16>
    %cst_32 = arith.constant dense<0.000000e+00> : vector<256x96xf32>
    %55 = tpu.matmul %52, %54, %cst_32 {dimension_numbers = #tpu.dot_dimension_numbers<[1], [0], [0], [1], [0, 0, 1, 1], [], []>} : vector<256x32xbf16>, vector<32x96xbf16>, vector<256x96xf32> -> vector<256x96xf32>
    %56 = arith.addf %50, %55 : vector<256x96xf32>
    %57 = vector.extract_strided_slice %39 {offsets = [1, 7, 0], sizes = [16, 16, 32], strides = [1, 1, 1]} : vector<18x25x32xbf16> to vector<16x16x32xbf16>
    %58 = vector.shape_cast %57 : vector<16x16x32xbf16> to vector<256x32xbf16>
    %c1_33 = arith.constant 1 : index
    %c0_34 = arith.constant 0 : index
    %c0_35 = arith.constant 0 : index
    %c0_36 = arith.constant 0 : index
    %59 = vector.load %arg4[%c1_33, %c0_34, %c0_35, %c0_36] : memref<3x3x32x96xbf16, #tpu.memory_space<vmem>>, vector<1x1x32x96xbf16>
    %60 = vector.shape_cast %59 : vector<1x1x32x96xbf16> to vector<32x96xbf16>
    %cst_37 = arith.constant dense<0.000000e+00> : vector<256x96xf32>
    %61 = tpu.matmul %58, %60, %cst_37 {dimension_numbers = #tpu.dot_dimension_numbers<[1], [0], [0], [1], [0, 0, 1, 1], [], []>} : vector<256x32xbf16>, vector<32x96xbf16>, vector<256x96xf32> -> vector<256x96xf32>
    %62 = arith.addf %56, %61 : vector<256x96xf32>
    %63 = vector.extract_strided_slice %39 {offsets = [1, 8, 0], sizes = [16, 16, 32], strides = [1, 1, 1]} : vector<18x25x32xbf16> to vector<16x16x32xbf16>
    %64 = vector.shape_cast %63 : vector<16x16x32xbf16> to vector<256x32xbf16>
    %c1_38 = arith.constant 1 : index
    %c1_39 = arith.constant 1 : index
    %c0_40 = arith.constant 0 : index
    %c0_41 = arith.constant 0 : index
    %65 = vector.load %arg4[%c1_38, %c1_39, %c0_40, %c0_41] : memref<3x3x32x96xbf16, #tpu.memory_space<vmem>>, vector<1x1x32x96xbf16>
    %66 = vector.shape_cast %65 : vector<1x1x32x96xbf16> to vector<32x96xbf16>
    %cst_42 = arith.constant dense<0.000000e+00> : vector<256x96xf32>
    %67 = tpu.matmul %64, %66, %cst_42 {dimension_numbers = #tpu.dot_dimension_numbers<[1], [0], [0], [1], [0, 0, 1, 1], [], []>} : vector<256x32xbf16>, vector<32x96xbf16>, vector<256x96xf32> -> vector<256x96xf32>
    %68 = arith.addf %62, %67 : vector<256x96xf32>
    %69 = vector.extract_strided_slice %39 {offsets = [1, 9, 0], sizes = [16, 16, 32], strides = [1, 1, 1]} : vector<18x25x32xbf16> to vector<16x16x32xbf16>
    %70 = vector.shape_cast %69 : vector<16x16x32xbf16> to vector<256x32xbf16>
    %c1_43 = arith.constant 1 : index
    %c2_44 = arith.constant 2 : index
    %c0_45 = arith.constant 0 : index
    %c0_46 = arith.constant 0 : index
    %71 = vector.load %arg4[%c1_43, %c2_44, %c0_45, %c0_46] : memref<3x3x32x96xbf16, #tpu.memory_space<vmem>>, vector<1x1x32x96xbf16>
    %72 = vector.shape_cast %71 : vector<1x1x32x96xbf16> to vector<32x96xbf16>
    %cst_47 = arith.constant dense<0.000000e+00> : vector<256x96xf32>
    %73 = tpu.matmul %70, %72, %cst_47 {dimension_numbers = #tpu.dot_dimension_numbers<[1], [0], [0], [1], [0, 0, 1, 1], [], []>} : vector<256x32xbf16>, vector<32x96xbf16>, vector<256x96xf32> -> vector<256x96xf32>
    %74 = arith.addf %68, %73 : vector<256x96xf32>
    %75 = vector.extract_strided_slice %39 {offsets = [2, 7, 0], sizes = [16, 16, 32], strides = [1, 1, 1]} : vector<18x25x32xbf16> to vector<16x16x32xbf16>
    %76 = vector.shape_cast %75 : vector<16x16x32xbf16> to vector<256x32xbf16>
    %c2_48 = arith.constant 2 : index
    %c0_49 = arith.constant 0 : index
    %c0_50 = arith.constant 0 : index
    %c0_51 = arith.constant 0 : index
    %77 = vector.load %arg4[%c2_48, %c0_49, %c0_50, %c0_51] : memref<3x3x32x96xbf16, #tpu.memory_space<vmem>>, vector<1x1x32x96xbf16>
    %78 = vector.shape_cast %77 : vector<1x1x32x96xbf16> to vector<32x96xbf16>
    %cst_52 = arith.constant dense<0.000000e+00> : vector<256x96xf32>
    %79 = tpu.matmul %76, %78, %cst_52 {dimension_numbers = #tpu.dot_dimension_numbers<[1], [0], [0], [1], [0, 0, 1, 1], [], []>} : vector<256x32xbf16>, vector<32x96xbf16>, vector<256x96xf32> -> vector<256x96xf32>
    %80 = arith.addf %74, %79 : vector<256x96xf32>
    %81 = vector.extract_strided_slice %39 {offsets = [2, 8, 0], sizes = [16, 16, 32], strides = [1, 1, 1]} : vector<18x25x32xbf16> to vector<16x16x32xbf16>
    %82 = vector.shape_cast %81 : vector<16x16x32xbf16> to vector<256x32xbf16>
    %c2_53 = arith.constant 2 : index
    %c1_54 = arith.constant 1 : index
    %c0_55 = arith.constant 0 : index
    %c0_56 = arith.constant 0 : index
    %83 = vector.load %arg4[%c2_53, %c1_54, %c0_55, %c0_56] : memref<3x3x32x96xbf16, #tpu.memory_space<vmem>>, vector<1x1x32x96xbf16>
    %84 = vector.shape_cast %83 : vector<1x1x32x96xbf16> to vector<32x96xbf16>
    %cst_57 = arith.constant dense<0.000000e+00> : vector<256x96xf32>
    %85 = tpu.matmul %82, %84, %cst_57 {dimension_numbers = #tpu.dot_dimension_numbers<[1], [0], [0], [1], [0, 0, 1, 1], [], []>} : vector<256x32xbf16>, vector<32x96xbf16>, vector<256x96xf32> -> vector<256x96xf32>
    %86 = arith.addf %80, %85 : vector<256x96xf32>
    %87 = vector.extract_strided_slice %39 {offsets = [2, 9, 0], sizes = [16, 16, 32], strides = [1, 1, 1]} : vector<18x25x32xbf16> to vector<16x16x32xbf16>
    %88 = vector.shape_cast %87 : vector<16x16x32xbf16> to vector<256x32xbf16>
    %c2_58 = arith.constant 2 : index
    %c2_59 = arith.constant 2 : index
    %c0_60 = arith.constant 0 : index
    %c0_61 = arith.constant 0 : index
    %89 = vector.load %arg4[%c2_58, %c2_59, %c0_60, %c0_61] : memref<3x3x32x96xbf16, #tpu.memory_space<vmem>>, vector<1x1x32x96xbf16>
    %90 = vector.shape_cast %89 : vector<1x1x32x96xbf16> to vector<32x96xbf16>
    %cst_62 = arith.constant dense<0.000000e+00> : vector<256x96xf32>
    %91 = tpu.matmul %88, %90, %cst_62 {dimension_numbers = #tpu.dot_dimension_numbers<[1], [0], [0], [1], [0, 0, 1, 1], [], []>} : vector<256x32xbf16>, vector<32x96xbf16>, vector<256x96xf32> -> vector<256x96xf32>
    %92 = arith.addf %86, %91 : vector<256x96xf32>
    %93 = vector.extract_strided_slice %34 {offsets = [0, 0], sizes = [256, 64], strides = [1, 1]} : vector<256x96xf32> to vector<256x64xf32>
    %94 = vector.extract_strided_slice %92 {offsets = [0, 0], sizes = [256, 64], strides = [1, 1]} : vector<256x96xf32> to vector<256x64xf32>
    %95 = arith.addf %93, %94 : vector<256x64xf32>
    %96 = vector.broadcast %14 : vector<1x64xf32> to vector<256x64xf32>
    %97 = arith.addf %95, %96 : vector<256x64xf32>
    %98 = arith.negf %97 : vector<256x64xf32>
    %99 = math.exp %98 : vector<256x64xf32>
    %cst_63 = arith.constant 1.000000e+00 : f32
    %100 = vector.broadcast %cst_63 : f32 to vector<256x64xf32>
    %101 = arith.addf %100, %99 : vector<256x64xf32>
    %102 = arith.divf %100, %101 : vector<256x64xf32>
    %103 = vector.extract_strided_slice %102 {offsets = [0, 0], sizes = [256, 32], strides = [1, 1]} : vector<256x64xf32> to vector<256x32xf32>
    %104 = vector.extract_strided_slice %102 {offsets = [0, 32], sizes = [256, 32], strides = [1, 1]} : vector<256x64xf32> to vector<256x32xf32>
    %105 = vector.extract_strided_slice %38 {offsets = [1, 8, 0], sizes = [16, 16, 32], strides = [1, 1, 1]} : vector<18x25x32xf32> to vector<16x16x32xf32>
    %106 = vector.shape_cast %105 : vector<16x16x32xf32> to vector<256x32xf32>
    %107 = vector.extract_strided_slice %34 {offsets = [0, 64], sizes = [256, 32], strides = [1, 1]} : vector<256x96xf32> to vector<256x32xf32>
    %108 = vector.broadcast %15 : vector<1x32xf32> to vector<256x32xf32>
    %109 = arith.addf %107, %108 : vector<256x32xf32>
    %110 = vector.extract_strided_slice %92 {offsets = [0, 64], sizes = [256, 32], strides = [1, 1]} : vector<256x96xf32> to vector<256x32xf32>
    %111 = vector.broadcast %16 : vector<1x32xf32> to vector<256x32xf32>
    %112 = arith.addf %110, %111 : vector<256x32xf32>
    %113 = arith.mulf %104, %112 : vector<256x32xf32>
    %114 = arith.addf %109, %113 : vector<256x32xf32>
    %115 = math.tanh %114 : vector<256x32xf32>
    %cst_64 = arith.constant 1.000000e+00 : f32
    %116 = vector.broadcast %cst_64 : f32 to vector<256x32xf32>
    %117 = arith.subf %116, %103 : vector<256x32xf32>
    %118 = arith.mulf %117, %115 : vector<256x32xf32>
    %119 = arith.mulf %103, %106 : vector<256x32xf32>
    %120 = arith.addf %118, %119 : vector<256x32xf32>
    %121 = vector.shape_cast %120 : vector<256x32xf32> to vector<16x16x32xf32>
    %c0_65 = arith.constant 0 : index
    %c0_66 = arith.constant 0 : index
    %122 = arith.index_cast %18 : i32 to index
    %c0_67 = arith.constant 0 : index
    %c0_68 = arith.constant 0 : index
    %123 = vector.load %arg8[%c0_65, %c0_66, %122, %c0_67, %c0_68] : memref<1x1x16x16x32xf32, #tpu.memory_space<vmem>>, vector<1x1x16x16x32xf32>
    %124 = vector.shape_cast %123 : vector<1x1x16x16x32xf32> to vector<16x16x32xf32>
    %125 = vector.shape_cast %121 : vector<16x16x32xf32> to vector<1x1x16x16x32xf32>
    tpu.vector_store %arg8[%c0_65, %c0_66, %122, %c0_67, %c0_68], %125 {strides = array<i32>} : memref<1x1x16x16x32xf32, #tpu.memory_space<vmem>>, vector<1x1x16x16x32xf32>,
    %c1_i32_69 = arith.constant 1 : i32
    %126 = arith.addi %18, %c1_i32_69 : i32
    %127 = arith.index_cast %10 : i32 to index
    %128 = arith.index_cast %126 : i32 to index
    %c8 = arith.constant 8 : index
    %c0_70 = arith.constant 0 : index
    %129 = vector.load %arg9[%127, %128, %c8, %c0_70] : memref<2x18x25x32xf32, #tpu.memory_space<vmem>>, vector<1x16x16x32xf32>
    %130 = vector.shape_cast %129 : vector<1x16x16x32xf32> to vector<16x16x32xf32>
    %131 = vector.shape_cast %121 : vector<16x16x32xf32> to vector<1x16x16x32xf32>
    tpu.vector_store %arg9[%127, %128, %c8, %c0_70], %131 {strides = array<i32>} : memref<2x18x25x32xf32, #tpu.memory_space<vmem>>, vector<1x16x16x32xf32>,
    %c1_i32_71 = arith.constant 1 : i32
    return
  }
  func.func @transform_0(%arg0: i32, %arg1: i32) -> (i32, i32, i32, i32, i32) {
    %c0_i32 = arith.constant 0 : i32
    %c0_i32_0 = arith.constant 0 : i32
    %c0_i32_1 = arith.constant 0 : i32
    %c0_i32_2 = arith.constant 0 : i32
    return %arg1, %arg0, %c0_i32, %c0_i32_0, %c0_i32_1 : i32, i32, i32, i32, i32
  }
  func.func @transform_1(%arg0: i32, %arg1: i32) -> (i32, i32) {
    %c0_i32 = arith.constant 0 : i32
    %c0_i32_0 = arith.constant 0 : i32
    %c0_i32_1 = arith.constant 0 : i32
    return %c0_i32, %c0_i32_0 : i32, i32
  }
  func.func @transform_2(%arg0: i32, %arg1: i32) -> (i32, i32, i32, i32) {
    %c0_i32 = arith.constant 0 : i32
    %c0_i32_0 = arith.constant 0 : i32
    %c0_i32_1 = arith.constant 0 : i32
    %c0_i32_2 = arith.constant 0 : i32
    %c0_i32_3 = arith.constant 0 : i32
    return %c0_i32, %c0_i32_0, %c0_i32_1, %c0_i32_2 : i32, i32, i32, i32
  }
  func.func @transform_3(%arg0: i32, %arg1: i32) -> (i32, i32) {
    %c0_i32 = arith.constant 0 : i32
    %c0_i32_0 = arith.constant 0 : i32
    %c0_i32_1 = arith.constant 0 : i32
    return %c0_i32, %c0_i32_0 : i32, i32
  }
  func.func @transform_4(%arg0: i32, %arg1: i32) -> (i32, i32) {
    %c0_i32 = arith.constant 0 : i32
    %c0_i32_0 = arith.constant 0 : i32
    %c0_i32_1 = arith.constant 0 : i32
    return %c0_i32, %c0_i32_0 : i32, i32
  }
  func.func @transform_5(%arg0: i32, %arg1: i32) -> (i32, i32) {
    %c0_i32 = arith.constant 0 : i32
    %c0_i32_0 = arith.constant 0 : i32
    %c0_i32_1 = arith.constant 0 : i32
    return %c0_i32, %c0_i32_0 : i32, i32
  }
  func.func @transform_6(%arg0: i32, %arg1: i32) -> (i32, i32, i32, i32, i32) {
    %c0_i32 = arith.constant 0 : i32
    %c0_i32_0 = arith.constant 0 : i32
    %c0_i32_1 = arith.constant 0 : i32
    %c0_i32_2 = arith.constant 0 : i32
    return %arg1, %arg0, %c0_i32, %c0_i32_0, %c0_i32_1 : i32, i32, i32, i32, i32
  }
}

</mosaic_0001>

<bundles_post_ra>
// kernel: temporal_encoder_forward.1
= control target key start
LH: loop header
LB: loop body
LE: loop exit
PB: predicated region body
PF: predicated region fallthrough
CT: control target
= control target key end

     0   :  { %s7002_s21 = smov 0   ;;  %s7004_s22 = smov 0   ;;  %s9992_s0 = inlined_call_operand.vmem [shape: bf16[8,2,18,18,8], index: 0, kind: input, shape index: {}]   ;;  %s9993_s1 = inlined_call_operand.vmem [shape: bf16[72,96], index: 1, kind: input, shape index: {}]   ;;  %s9994_s2 = inlined_call_operand.vmem [shape: bf16[3,3,32,96], index: 2, kind: input, shape index: {}]   ;;  %s9995_s3 = inlined_call_operand.vmem [shape: f32[1,64], index: 3, kind: input, shape index: {}]   ;;  %s9996_s4 = inlined_call_operand.vmem [shape: f32[1,32], index: 4, kind: input, shape index: {}]   ;;  %s9997_s5 = inlined_call_operand.vmem [shape: f32[1,32], index: 5, kind: input, shape index: {}]   ;;  %s9998_s6 = inlined_call_operand.vmem [shape: f32[8,2,16,16,32], index: 6, kind: output, shape index: {}]  }
   0x1   :  { %s7006_s23 = smov 0   ;;  %s7008_s24 = smov 0  }
   0x2   :  { %s7010_s25 = smov 0  }
   0x3 LB: > { %s25_s26 = sadd.s32 1, %s6947_s23  ;;  %s28_s27 = sadd.s32 1, %s6951_s24  ;;  %s6955_s25 = sphi %s7010_s25, %s16_s25   ;;  %s6951_s24 = sphi %s7008_s24, %s10340_s24   ;;  %s6947_s23 = sphi %s7006_s23, %s10339_s23   ;;  %s6943_s22 = sphi %s7004_s22, %s10338_s22   ;;  %s6939_s21 = sphi %s7002_s21, %s10337_s21  }
   0x4   : > { %p26_p0 = scmp.ge.s32.totalorder %s25_s26, 8  ;;  %p5431_p1 = scmp.ge.s32.totalorder %s6955_s25, 1 }
   0x5   : > { %p232_p2 = scmp.lt.s32.totalorder %s6955_s25, 17 }
   0x6   : > { %s10342_s26 = smov (%p26_p0, %s25_s26), 0  ;;  %s10344_s27 = smov (!%p26_p0, %s28_s27), %s6951_s24 }
   0x7   : > { %10113 = sst [smem:[#allocation3_spill]] %s10342_s26  ;;  %p233_p3 = pnand %p5431_p1, %p232_p2 }
   0x8   : > { %p30_p4 = scmp.ge.s32.totalorder %s10344_s27, 2 }
   0x9   : > { %236 = sbr.rel (%p233_p3) target bundleno = 1496 (0x5d8), region = 44 }
   0xa   : > { %s10346_s27 = smov (%p30_p4, %s10344_s27), 0 }
   0xb   : > { %10114 = sst [smem:[#allocation4_spill]] %s10346_s27 }
  0x10   : > { %p270_p5 = scmp.lt.s32.totalorder %s6939_s21, 7  ;;  %p272_p6 = scmp.lt.s32.totalorder %s6943_s22, 1 }
  0x11   : > { %p289_p7 = scmp.lt.s32.totalorder %s6939_s21, 0  ;;  %s290_s28 = ssub.s32 0, %s6939_s21 }
  0x12   : > { %s271_s29 = scalar_select %p270_p5, %s6939_s21, 7 }
  0x13   : > { %s10348_s22 = smov (!%p272_p6, %s6943_s22), 1  ;;  %s5436_s11 = smin.u32 %s6939_s21, %s290_s28 }
  0x14   : > { %s6571_s30 = smul.u32 108, %s271_s29  ;;  %s5434_s7 = sshll.u32 %s271_s29, 6 }
  0x15   : > { %s6570_s8 = smul.u32 54, %s10348_s22  ;;  %s5433_s9 = sshll.u32 %s10348_s22, 5 }
  0x16   : > { %s285_s10 = sadd.s32 %s5434_s7, %s5433_s9  ;;  %s292_s27 = sand.u32 1, %s5436_s11  }
  0x17   : > { %s276_s12 = sadd.s32 %s6571_s30, %s6570_s8  ;;  %s5435_s13 = sshll.u32 %s285_s10, 3 }
  0x18   : > { %s5432_s14 = sshll.u32 %s276_s12, 2  ;;  %s7042_s17 = scalar_lea.vmem %s9998_s6, %s5435_s13 }
  0x19   : > { %s7047_s20 = scalar_lea.vmem %s9992_s0, %s5432_s14  ;;  %s293_s26 = ssub.s32 0, %s292_s27 }
  0x1a   : > { %s10350_s26 = smov (!%p289_p7, %s293_s26), %s292_s27  ;;  %p5439_p9 = scmp.ne.s32.totalorder %s6939_s21, 0 }
  0x1b   : > { %p5438_p8 = scmp.lt.s32.totalorder %s10350_s26, 0  ;;  %s299_s22 = sadd.s32 2, %s10350_s26  ;;  %vm306_vm0 = vcmask (!%p5439_p9), 261120   ;;  %vm310_vm1 = vcmask (!%p5439_p9), 253952   ;;  %v6957_v0 = vmov (!%p5439_p9), 0.0  }
  0x1c   : > { %305 = sbr.rel (%p5439_p9) target bundleno = 100 (0x64), region = 48  ;;  %307 = vst.msk [vmem:[#allocation2] sm:$0xff] (!%p5439_p9), %vm306_vm0, %v6957_v0  ;;  %308 = vst.msk [vmem:[#allocation2 + $0x8] sm:$0xff] (!%p5439_p9), %vm306_vm0, %v6957_v0 }
  0x1d   : > { %s10352_s22 = smov (!%p5438_p8, %s299_s22), %s10350_s26  ;;  %309 = vst.msk [vmem:[#allocation2 + $0x10] sm:$0xff] (!%p5439_p9), %vm306_vm0, %v6957_v0  ;;  %312 = vst.msk [vmem:[#allocation2 + $0x20] sm:$0xff] (!%p5439_p9), %vm306_vm0, %v6957_v0 }
  0x1e   : > { %s301_s28 = ssub.s32 1, %s10352_s22  ;;  %313 = vst.msk [vmem:[#allocation2 + $0x28] sm:$0xff] (!%p5439_p9), %vm306_vm0, %v6957_v0  ;;  %314 = vst.msk [vmem:[#allocation2 + $0x30] sm:$0xff] (!%p5439_p9), %vm306_vm0, %v6957_v0 }
  0x1f   : > { %316 = vst.msk [vmem:[#allocation2 + $0x40] sm:$0xff] (!%p5439_p9), %vm306_vm0, %v6957_v0  ;;  %317 = vst.msk [vmem:[#allocation2 + $0x48] sm:$0xff] (!%p5439_p9), %vm306_vm0, %v6957_v0 }
  0x20   : > { %318 = vst.msk [vmem:[#allocation2 + $0x50] sm:$0xff] (!%p5439_p9), %vm306_vm0, %v6957_v0  ;;  %320 = vst.msk [vmem:[#allocation2 + $0x60] sm:$0xff] (!%p5439_p9), %vm306_vm0, %v6957_v0 }
  0x21   : > { %321 = vst.msk [vmem:[#allocation2 + $0x68] sm:$0xff] (!%p5439_p9), %vm306_vm0, %v6957_v0  ;;  %322 = vst.msk [vmem:[#allocation2 + $0x70] sm:$0xff] (!%p5439_p9), %vm306_vm0, %v6957_v0 }
  0x22   : > { %324 = vst.msk [vmem:[#allocation2 + $0x80] sm:$0xff] (!%p5439_p9), %vm306_vm0, %v6957_v0  ;;  %325 = vst.msk [vmem:[#allocation2 + $0x88] sm:$0xff] (!%p5439_p9), %vm306_vm0, %v6957_v0 }
  0x23   : > { %326 = vst.msk [vmem:[#allocation2 + $0x90] sm:$0xff] %vm306_vm0, %v6957_v0  ;;  %328 = vst.msk [vmem:[#allocation2 + $0xa0] sm:$0xff] %vm306_vm0, %v6957_v0 }
  0x24   : > { %329 = vst.msk [vmem:[#allocation2 + $0xa8] sm:$0xff] %vm306_vm0, %v6957_v0  ;;  %330 = vst.msk [vmem:[#allocation2 + $0xb0] sm:$0xff] %vm306_vm0, %v6957_v0 }
  0x25   : > { %332 = vst.msk [vmem:[#allocation2 + $0xc0] sm:$0xff] %vm306_vm0, %v6957_v0  ;;  %333 = vst.msk [vmem:[#allocation2 + $0xc8] sm:$0xff] %vm306_vm0, %v6957_v0 }
  0x26   : > { %334 = vst.msk [vmem:[#allocation2 + $0xd0] sm:$0xff] %vm306_vm0, %v6957_v0  ;;  %336 = vst.msk [vmem:[#allocation2 + $0xe0] sm:$0xff] %vm306_vm0, %v6957_v0 }
  0x27   : > { %337 = vst.msk [vmem:[#allocation2 + $0xe8] sm:$0xff] %vm306_vm0, %v6957_v0  ;;  %338 = vst.msk [vmem:[#allocation2 + $0xf0] sm:$0xff] %vm306_vm0, %v6957_v0 }
  0x28   : > { %340 = vst.msk [vmem:[#allocation2 + $0x100] sm:$0xff] %vm306_vm0, %v6957_v0  ;;  %341 = vst.msk [vmem:[#allocation2 + $0x108] sm:$0xff] %vm306_vm0, %v6957_v0 }
  0x29   : > { %342 = vst.msk [vmem:[#allocation2 + $0x110] sm:$0xff] %vm306_vm0, %v6957_v0  ;;  %344 = vst.msk [vmem:[#allocation2 + $0x120] sm:$0xff] %vm306_vm0, %v6957_v0 }
  0x2a   : > { %345 = vst.msk [vmem:[#allocation2 + $0x128] sm:$0xff] %vm306_vm0, %v6957_v0  ;;  %346 = vst.msk [vmem:[#allocation2 + $0x130] sm:$0xff] %vm306_vm0, %v6957_v0 }
  0x2b   : > { %348 = vst.msk [vmem:[#allocation2 + $0x140] sm:$0xff] %vm306_vm0, %v6957_v0  ;;  %349 = vst.msk [vmem:[#allocation2 + $0x148] sm:$0xff] %vm306_vm0, %v6957_v0 }
  0x2c   : > { %350 = vst.msk [vmem:[#allocation2 + $0x150] sm:$0xff] %vm306_vm0, %v6957_v0  ;;  %352 = vst.msk [vmem:[#allocation2 + $0x160] sm:$0xff] %vm306_vm0, %v6957_v0 }
  0x2d   : > { %353 = vst.msk [vmem:[#allocation2 + $0x168] sm:$0xff] %vm306_vm0, %v6957_v0  ;;  %354 = vst.msk [vmem:[#allocation2 + $0x170] sm:$0xff] %vm306_vm0, %v6957_v0 }
  0x2e   : > { %356 = vst.msk [vmem:[#allocation2 + $0x180] sm:$0xff] %vm306_vm0, %v6957_v0  ;;  %357 = vst.msk [vmem:[#allocation2 + $0x188] sm:$0xff] %vm306_vm0, %v6957_v0 }
  0x2f   : > { %358 = vst.msk [vmem:[#allocation2 + $0x190] sm:$0xff] %vm306_vm0, %v6957_v0  ;;  %360 = vst.msk [vmem:[#allocation2 + $0x1a0] sm:$0xff] %vm306_vm0, %v6957_v0 }
  0x30   : > { %361 = vst.msk [vmem:[#allocation2 + $0x1a8] sm:$0xff] %vm306_vm0, %v6957_v0  ;;  %362 = vst.msk [vmem:[#allocation2 + $0x1b0] sm:$0xff] %vm306_vm0, %v6957_v0 }
  0x31   : > { %364 = vst.msk [vmem:[#allocation2 + $0x1c0] sm:$0xff] %vm306_vm0, %v6957_v0  ;;  %365 = vst.msk [vmem:[#allocation2 + $0x1c8] sm:$0xff] %vm306_vm0, %v6957_v0 }
  0x32   : > { %366 = vst.msk [vmem:[#allocation2 + $0x1d0] sm:$0xff] %vm306_vm0, %v6957_v0  ;;  %368 = vst.msk [vmem:[#allocation2 + $0x1e0] sm:$0xff] %vm306_vm0, %v6957_v0 }
  0x33   : > { %369 = vst.msk [vmem:[#allocation2 + $0x1e8] sm:$0xff] %vm306_vm0, %v6957_v0  ;;  %370 = vst.msk [vmem:[#allocation2 + $0x1f0] sm:$0xff] %vm306_vm0, %v6957_v0 }
  0x34   : > { %372 = vst.msk [vmem:[#allocation2 + $0x200] sm:$0xff] %vm306_vm0, %v6957_v0  ;;  %373 = vst.msk [vmem:[#allocation2 + $0x208] sm:$0xff] %vm306_vm0, %v6957_v0 }
  0x35   : > { %374 = vst.msk [vmem:[#allocation2 + $0x210] sm:$0xff] %vm306_vm0, %v6957_v0  ;;  %376 = vst.msk [vmem:[#allocation2 + $0x220] sm:$0xff] %vm306_vm0, %v6957_v0 }
  0x36   : > { %377 = vst.msk [vmem:[#allocation2 + $0x228] sm:$0xff] %vm306_vm0, %v6957_v0  ;;  %378 = vst.msk [vmem:[#allocation2 + $0x230] sm:$0xff] %vm306_vm0, %v6957_v0 }
  0x37   : > { %380 = vst.msk [vmem:[#allocation2 + $0x240] sm:$0xff] %vm306_vm0, %v6957_v0  ;;  %381 = vst.msk [vmem:[#allocation2 + $0x248] sm:$0xff] %vm306_vm0, %v6957_v0 }
  0x38   : > { %382 = vst.msk [vmem:[#allocation2 + $0x250] sm:$0xff] %vm306_vm0, %v6957_v0  ;;  %384 = vst.msk [vmem:[#allocation2 + $0x260] sm:$0xff] %vm306_vm0, %v6957_v0 }
  0x39   : > { %385 = vst.msk [vmem:[#allocation2 + $0x268] sm:$0xff] %vm306_vm0, %v6957_v0  ;;  %386 = vst.msk [vmem:[#allocation2 + $0x270] sm:$0xff] %vm306_vm0, %v6957_v0 }
  0x3a   : > { %388 = vst.msk [vmem:[#allocation2 + $0x280] sm:$0xff] %vm306_vm0, %v6957_v0  ;;  %389 = vst.msk [vmem:[#allocation2 + $0x288] sm:$0xff] %vm306_vm0, %v6957_v0 }
  0x3b   : > { %390 = vst.msk [vmem:[#allocation2 + $0x290] sm:$0xff] %vm306_vm0, %v6957_v0  ;;  %392 = vst.msk [vmem:[#allocation2 + $0x2a0] sm:$0xff] %vm306_vm0, %v6957_v0 }
  0x3c   : > { %393 = vst.msk [vmem:[#allocation2 + $0x2a8] sm:$0xff] %vm306_vm0, %v6957_v0  ;;  %394 = vst.msk [vmem:[#allocation2 + $0x2b0] sm:$0xff] %vm306_vm0, %v6957_v0 }
  0x3d   : > { %396 = vst.msk [vmem:[#allocation2 + $0x2c0] sm:$0xff] %vm306_vm0, %v6957_v0  ;;  %397 = vst.msk [vmem:[#allocation2 + $0x2c8] sm:$0xff] %vm306_vm0, %v6957_v0 }
  0x3e   : > { %398 = vst.msk [vmem:[#allocation2 + $0x2d0] sm:$0xff] %vm306_vm0, %v6957_v0  ;;  %400 = vst.msk [vmem:[#allocation2 + $0x2e0] sm:$0xff] %vm306_vm0, %v6957_v0 }
  0x3f   : > { %401 = vst.msk [vmem:[#allocation2 + $0x2e8] sm:$0xff] %vm306_vm0, %v6957_v0  ;;  %402 = vst.msk [vmem:[#allocation2 + $0x2f0] sm:$0xff] %vm306_vm0, %v6957_v0 }
  0x40   : > { %404 = vst.msk [vmem:[#allocation2 + $0x300] sm:$0xff] %vm306_vm0, %v6957_v0  ;;  %405 = vst.msk [vmem:[#allocation2 + $0x308] sm:$0xff] %vm306_vm0, %v6957_v0 }
  0x41   : > { %406 = vst.msk [vmem:[#allocation2 + $0x310] sm:$0xff] %vm306_vm0, %v6957_v0  ;;  %408 = vst.msk [vmem:[#allocation2 + $0x320] sm:$0xff] %vm306_vm0, %v6957_v0 }
  0x42   : > { %409 = vst.msk [vmem:[#allocation2 + $0x328] sm:$0xff] %vm306_vm0, %v6957_v0  ;;  %410 = vst.msk [vmem:[#allocation2 + $0x330] sm:$0xff] %vm306_vm0, %v6957_v0 }
  0x43   : > { %412 = vst.msk [vmem:[#allocation2 + $0x340] sm:$0xff] %vm306_vm0, %v6957_v0  ;;  %413 = vst.msk [vmem:[#allocation2 + $0x348] sm:$0xff] %vm306_vm0, %v6957_v0 }
  0x44   : > { %414 = vst.msk [vmem:[#allocation2 + $0x350] sm:$0xff] %vm306_vm0, %v6957_v0  ;;  %416 = vst.msk [vmem:[#allocation2 + $0x360] sm:$0xff] %vm306_vm0, %v6957_v0 }
  0x45   : > { %417 = vst.msk [vmem:[#allocation2 + $0x368] sm:$0xff] %vm306_vm0, %v6957_v0  ;;  %418 = vst.msk [vmem:[#allocation2 + $0x370] sm:$0xff] %vm306_vm0, %v6957_v0 }
  0x46   : > { %420 = vst.msk [vmem:[#allocation2 + $0x380] sm:$0xff] %vm306_vm0, %v6957_v0  ;;  %421 = vst.msk [vmem:[#allocation2 + $0x388] sm:$0xff] %vm306_vm0, %v6957_v0 }
  0x47   : > { %422 = vst.msk [vmem:[#allocation2 + $0x390] sm:$0xff] %vm306_vm0, %v6957_v0  ;;  %424 = vst.msk [vmem:[#allocation2 + $0x3a0] sm:$0xff] %vm306_vm0, %v6957_v0 }
  0x48   : > { %425 = vst.msk [vmem:[#allocation2 + $0x3a8] sm:$0xff] %vm306_vm0, %v6957_v0  ;;  %426 = vst.msk [vmem:[#allocation2 + $0x3b0] sm:$0xff] %vm306_vm0, %v6957_v0 }
  0x49   : > { %428 = vst.msk [vmem:[#allocation2 + $0x3c0] sm:$0xff] %vm306_vm0, %v6957_v0  ;;  %429 = vst.msk [vmem:[#allocation2 + $0x3c8] sm:$0xff] %vm306_vm0, %v6957_v0 }
  0x4a   : > { %430 = vst.msk [vmem:[#allocation2 + $0x3d0] sm:$0xff] %vm306_vm0, %v6957_v0  ;;  %432 = vst.msk [vmem:[#allocation2 + $0x3e0] sm:$0xff] %vm306_vm0, %v6957_v0 }
  0x4b   : > { %433 = vst.msk [vmem:[#allocation2 + $0x3e8] sm:$0xff] %vm306_vm0, %v6957_v0  ;;  %434 = vst.msk [vmem:[#allocation2 + $0x3f0] sm:$0xff] %vm306_vm0, %v6957_v0 }
  0x4c   : > { %436 = vst.msk [vmem:[#allocation2 + $0x400] sm:$0xff] %vm306_vm0, %v6957_v0  ;;  %437 = vst.msk [vmem:[#allocation2 + $0x408] sm:$0xff] %vm306_vm0, %v6957_v0 }
  0x4d   : > { %438 = vst.msk [vmem:[#allocation2 + $0x410] sm:$0xff] %vm306_vm0, %v6957_v0  ;;  %440 = vst.msk [vmem:[#allocation2 + $0x420] sm:$0xff] %vm306_vm0, %v6957_v0 }
  0x4e   : > { %441 = vst.msk [vmem:[#allocation2 + $0x428] sm:$0xff] %vm306_vm0, %v6957_v0  ;;  %442 = vst.msk [vmem:[#allocation2 + $0x430] sm:$0xff] %vm306_vm0, %v6957_v0 }
  0x4f   : > { %444 = vst.msk [vmem:[#allocation2 + $0x440] sm:$0xff] %vm306_vm0, %v6957_v0  ;;  %445 = vst.msk [vmem:[#allocation2 + $0x448] sm:$0xff] %vm306_vm0, %v6957_v0 }
  0x50   : > { %446 = vst.msk [vmem:[#allocation2 + $0x450] sm:$0xff] %vm306_vm0, %v6957_v0  ;;  %448 = vst.msk [vmem:[#allocation2 + $0x460] sm:$0xff] %vm306_vm0, %v6957_v0 }
  0x51   : > { %449 = vst.msk [vmem:[#allocation2 + $0x468] sm:$0xff] %vm306_vm0, %v6957_v0  ;;  %450 = vst.msk [vmem:[#allocation2 + $0x470] sm:$0xff] %vm306_vm0, %v6957_v0 }
  0x52   : > { %311 = vst.msk [vmem:[#allocation2 + $0x18] sm:$0x1] %vm310_vm1, %v6957_v0  ;;  %315 = vst.msk [vmem:[#allocation2 + $0x38] sm:$0x1] %vm310_vm1, %v6957_v0 }
  0x53   : > { %319 = vst.msk [vmem:[#allocation2 + $0x58] sm:$0x1] %vm310_vm1, %v6957_v0  ;;  %323 = vst.msk [vmem:[#allocation2 + $0x78] sm:$0x1] %vm310_vm1, %v6957_v0 }
  0x54   : > { %327 = vst.msk [vmem:[#allocation2 + $0x98] sm:$0x1] %vm310_vm1, %v6957_v0  ;;  %331 = vst.msk [vmem:[#allocation2 + $0xb8] sm:$0x1] %vm310_vm1, %v6957_v0 }
  0x55   : > { %335 = vst.msk [vmem:[#allocation2 + $0xd8] sm:$0x1] %vm310_vm1, %v6957_v0  ;;  %339 = vst.msk [vmem:[#allocation2 + $0xf8] sm:$0x1] %vm310_vm1, %v6957_v0 }
  0x56   : > { %343 = vst.msk [vmem:[#allocation2 + $0x118] sm:$0x1] %vm310_vm1, %v6957_v0  ;;  %347 = vst.msk [vmem:[#allocation2 + $0x138] sm:$0x1] %vm310_vm1, %v6957_v0 }
  0x57   : > { %351 = vst.msk [vmem:[#allocation2 + $0x158] sm:$0x1] %vm310_vm1, %v6957_v0  ;;  %355 = vst.msk [vmem:[#allocation2 + $0x178] sm:$0x1] %vm310_vm1, %v6957_v0 }
  0x58   : > { %359 = vst.msk [vmem:[#allocation2 + $0x198] sm:$0x1] %vm310_vm1, %v6957_v0  ;;  %363 = vst.msk [vmem:[#allocation2 + $0x1b8] sm:$0x1] %vm310_vm1, %v6957_v0 }
  0x59   : > { %367 = vst.msk [vmem:[#allocation2 + $0x1d8] sm:$0x1] %vm310_vm1, %v6957_v0  ;;  %371 = vst.msk [vmem:[#allocation2 + $0x1f8] sm:$0x1] %vm310_vm1, %v6957_v0 }
  0x5a   : > { %375 = vst.msk [vmem:[#allocation2 + $0x218] sm:$0x1] %vm310_vm1, %v6957_v0  ;;  %379 = vst.msk [vmem:[#allocation2 + $0x238] sm:$0x1] %vm310_vm1, %v6957_v0 }
  0x5b   : > { %383 = vst.msk [vmem:[#allocation2 + $0x258] sm:$0x1] %vm310_vm1, %v6957_v0  ;;  %387 = vst.msk [vmem:[#allocation2 + $0x278] sm:$0x1] %vm310_vm1, %v6957_v0 }
  0x5c   : > { %391 = vst.msk [vmem:[#allocation2 + $0x298] sm:$0x1] %vm310_vm1, %v6957_v0  ;;  %395 = vst.msk [vmem:[#allocation2 + $0x2b8] sm:$0x1] %vm310_vm1, %v6957_v0 }
  0x5d   : > { %399 = vst.msk [vmem:[#allocation2 + $0x2d8] sm:$0x1] %vm310_vm1, %v6957_v0  ;;  %403 = vst.msk [vmem:[#allocation2 + $0x2f8] sm:$0x1] %vm310_vm1, %v6957_v0 }
  0x5e   : > { %407 = vst.msk [vmem:[#allocation2 + $0x318] sm:$0x1] %vm310_vm1, %v6957_v0  ;;  %411 = vst.msk [vmem:[#allocation2 + $0x338] sm:$0x1] %vm310_vm1, %v6957_v0 }
  0x5f   : > { %415 = vst.msk [vmem:[#allocation2 + $0x358] sm:$0x1] %vm310_vm1, %v6957_v0  ;;  %419 = vst.msk [vmem:[#allocation2 + $0x378] sm:$0x1] %vm310_vm1, %v6957_v0 }
  0x60   : > { %423 = vst.msk [vmem:[#allocation2 + $0x398] sm:$0x1] %vm310_vm1, %v6957_v0  ;;  %427 = vst.msk [vmem:[#allocation2 + $0x3b8] sm:$0x1] %vm310_vm1, %v6957_v0 }
  0x61   : > { %431 = vst.msk [vmem:[#allocation2 + $0x3d8] sm:$0x1] %vm310_vm1, %v6957_v0  ;;  %435 = vst.msk [vmem:[#allocation2 + $0x3f8] sm:$0x1] %vm310_vm1, %v6957_v0 }
  0x62   : > { %439 = vst.msk [vmem:[#allocation2 + $0x418] sm:$0x1] %vm310_vm1, %v6957_v0  ;;  %443 = vst.msk [vmem:[#allocation2 + $0x438] sm:$0x1] %vm310_vm1, %v6957_v0 }
  0x63   : > { %447 = vst.msk [vmem:[#allocation2 + $0x458] sm:$0x1] %vm310_vm1, %v6957_v0  ;;  %451 = vst.msk [vmem:[#allocation2 + $0x478] sm:$0x1] %vm310_vm1, %v6957_v0 }
  0x64 PF: > { %v6622_v1 = vld [vmem:[%s9994_s2 + $0x30] sm:$0xff]   ;;  %vm865_vm2 = vcmask 1046528   ;;  %s6958_s27 = smov 24   ;;  %v6624_v3 = vld [vmem:[%s7047_s20] sm:$0xff]   ;;  %v6626_v5 = vld [vmem:[%s9994_s2 + $0x38] sm:$0xff]   ;;  %s1683_s7 = smul.u32 576, %s10352_s22 }
  0x65   : > { %v7347_v2 = vld [vmem:[%s7047_s20 + $0xc] sm:$0xff]   ;;  %6309 = vmatprep.subr.bf16.mxu1 %v6622_v1  ;;  %v6625_v4 = vld [vmem:[%s7047_s20 + $0x8] ss:$0 sps:$4 sm:$0x11]   ;;  %v866_v6 = vrot.slane %v6624_v3, 1  ;;  %v642_v10 = vshrl.u32 %v6624_v3, 16 }
  0x66   : > { %951 = vrot.lane.b32.xlu0 %v7347_v2, %s6958_s27  ;;  %6311 = vmatpush3.bf16.msra.mxu1 %v6622_v1  ;;  %v867_v7 = vrot.slane %v6625_v4, 1  ;;  %v6627_v8 = vld [vmem:[%s7047_s20 + $0x14] ss:$0 sps:$4 sm:$0x11]   ;;  %v869_v9 = vrot.slane %v7347_v2, 1  ;;  %v644_v11 = vshll.u32 %v6624_v3, 16 }
  0x67   : > { %6310 = vmatprep.subr.bf16.mxu1 %v6626_v5  ;;  %v649_v12 = vshll.u32 %v6625_v4, 16  ;;  %v870_v14 = vrot.slane %v6627_v8, 1  ;;  %vm640_vm3 = vsmask.f32 7424  ;;  %v7363_v15 = vld [vmem:[%s9994_s2 + $0x40] sm:$0xff]   ;;  %s6959_s10 = smov 16  }
  0x68   : > { %v868_v13 = vsel %vm865_vm2, %v866_v6, %v867_v7  ;;  %v646_v16 = vrot.slane %v644_v11, 1  ;;  %vm1794_vm4 = vsmask.f32 4352  ;;  %v7371_v19 = vld [vmem:[%s7047_s20 + $0x18] sm:$0xff]   ;;  %vm1283_vm5 = vcmask 261120   ;;  %s7373_s11 = scalar_lea.vmem [#allocation2], %s1683_s7 }
  0x69   : > { %914 = vrot.lane.b32.xlu1 %v868_v13, %s6959_s10  ;;  %v651_v17 = vrot.slane %v649_v12, 1  ;;  %v7367_v18 = vsel %vm865_vm2, %v869_v9, %v870_v14  ;;  %v654_v24 = vshrl.u32 %v7347_v2, 16  ;;  %v656_v25 = vshll.u32 %v7347_v2, 16  ;;  %s6960_s12 = smov 8   ;;  %v6630_v12 = vld [vmem:[%s9994_s2 + $0x48] sm:$0xff]   ;;  %s6961_s15 = smov 32  }
  0x6a   : > { %6312 = vmatpush3.bf16.msra.mxu1 %v6626_v5  ;;  %v647_v20 = vor.u32 %v646_v16, %v642_v10  ;;  %v1746_v21 = vld [vmem:[%s7373_s11 + $0x1e0] sm:$0xff]  ;;  %v1747_v22 = vld [vmem:[%s7373_s11 + $0x1e8] sm:$0xff]  ;;  %v1748_v23 = vld [vmem:[%s7373_s11 + $0x1f0] sm:$0xff]  ;;  %v661_v26 = vshll.u32 %v6627_v8, 16  ;;  %v666_v31 = vshrl.u32 %v7371_v19, 16  ;;  %v668_v32 = vshll.u32 %v7371_v19, 16 }
  0x6b   : > { %6129 = vmatprep.subr.bf16.mxu1 %v7363_v15  ;;  %v1749_v27 = vld [vmem:[%s7373_s11 + $0x1f8] sm:$0x1]  ;;  %v7381_v28 = vpack.c.bf16 %v1747_v22, %v1746_v21  ;;  %v1750_v29 = vld [vmem:[%s7373_s11 + $0x200] sm:$0xff]  ;;  %v1751_v30 = vld [vmem:[%s7373_s11 + $0x208] sm:$0xff]  ;;  %v658_v38 = vrot.slane %v656_v25, 1  ;;  %vm1517_vm6 = vcmask 1043456  }
  0x6c   : > { %v652_v33 = vsel %vm640_vm3, %v647_v20, %v651_v17  ;;  %v7390_v34 = vpack.c.bf16 %v1749_v27, %v1748_v23  ;;  %v1752_v35 = vld [vmem:[%s7373_s11 + $0x210] sm:$0xff]  ;;  %v1753_v36 = vld [vmem:[%s7373_s11 + $0x218] sm:$0x1]  ;;  %v7394_v37 = vpack.c.bf16 %v1751_v30, %v1750_v29  ;;  %v663_v42 = vrot.slane %v661_v26, 1  ;;  %v1690_v51 = vld [vmem:[%s7373_s11 + $0x20] sm:$0xff]  ;;  %s6962_s16 = smov 40  }
  0x6d   : > { %916 = vrot.lane.b32.xlu1 %v7367_v18, %s6959_s10  ;;  %833 = vrot.lane.b32.xlu0 %v652_v33, %s6960_s12  ;;  %v10006_v39 = vshrl.u32 %v7381_v28, 16  ;;  %v10005_v40 = vshll.u32 %v7381_v28, 16  ;;  %v7399_v41 = vpack.c.bf16 %v1753_v36, %v1752_v35  ;;  %v1691_v56 = vld [vmem:[%s7373_s11 + $0x28] sm:$0xff]  ;;  %v1692_v57 = vld [vmem:[%s7373_s11 + $0x30] sm:$0xff]  ;;  %v659_v61 = vor.u32 %v658_v38, %v654_v24  ;;  %s6963_s18 = smov 48   ;;  %s6964_s19 = smov 56  }
  0x6e   : > { %v10004_v43 = vshrl.u32 %v7390_v34, 16  ;;  %v10003_v44 = vshll.u32 %v7390_v34, 16  ;;  %v10002_v45 = vshrl.u32 %v7394_v37, 16  ;;  %v10001_v46 = vshll.u32 %v7394_v37, 16  ;;  %v1694_v63 = vld [vmem:[%s7373_s11 + $0x40] sm:$0xff]  ;;  %v1695_v4 = vld [vmem:[%s7373_s11 + $0x48] sm:$0xff] }
  0x6f   : > { %v2053_v47 = vrot.slane %v10006_v39, 3  ;;  %v2056_v48 = vrot.slane %v10005_v40, 4  ;;  %v10000_v49 = vshrl.u32 %v7399_v41, 16  ;;  %v9999_v50 = vshll.u32 %v7399_v41, 16  ;;  %v1693_v3 = vld [vmem:[%s7373_s11 + $0x38] sm:$0x1] }
  0x70   : > { %v2061_v52 = vrot.slane %v10004_v43, 3  ;;  %v2064_v53 = vrot.slane %v10003_v44, 4  ;;  %v2973_v54 = vrot.slane %v10002_v45, 3  ;;  %v2976_v55 = vrot.slane %v10001_v46, 4  ;;  %v1696_v5 = vld [vmem:[%s7373_s11 + $0x50] sm:$0xff]  ;;  %v1698_v17 = vld [vmem:[%s7373_s11 + $0x60] sm:$0xff] }
  0x71   : > { %953 = vrot.lane.b32.xlu1 %v7371_v19, %s6958_s27  ;;  %v2057_v58 = vor.u32 %v2056_v48, %v2053_v47  ;;  %v2981_v59 = vrot.slane %v10000_v49, 3  ;;  %v2984_v60 = vrot.slane %v9999_v50, 4  ;;  %v6631_v62 = vld [vmem:[%s7047_s20 + $0x20] ss:$0 sps:$4 sm:$0x11]   ;;  %v670_v2 = vrot.slane %v668_v32, 1 }
  0x72   : > { %v2065_v0 = vor.u32 %v2064_v53, %v2061_v52  ;;  %v2977_v1 = vor.u32 %v2976_v55, %v2973_v54  ;;  %v664_v7 = vsel %vm640_vm3, %v659_v61, %v663_v42  ;;  %v673_v8 = vshll.u32 %v6631_v62, 16  ;;  %v1697_v10 = vld [vmem:[%s7373_s11 + $0x58] sm:$0x1]  ;;  %v1699_v24 = vld [vmem:[%s7373_s11 + $0x68] sm:$0xff]  ;;  %v1700_v25 = vld [vmem:[%s7373_s11 + $0x70] sm:$0xff]  ;;  %s6965_s21 = smov 64  }
  0x73   : > { %v2985_v6 = vor.u32 %v2984_v60, %v2981_v59  ;;  %v7434_v9 = vpack.c.bf16 %v1691_v56, %v1690_v51  ;;  %835 = vrot.lane.b32.xlu0 %v664_v7, %s6960_s12  ;;  %v671_v13 = vor.u32 %v670_v2, %v666_v31  ;;  %v7444_v14 = vpack.c.bf16 %v1693_v3, %v1692_v57  ;;  %v1701_v26 = vld [vmem:[%s7373_s11 + $0x78] sm:$0x1]  ;;  %v7466_v32 = vld [vmem:[%s7047_s20 + $0x24] sm:$0xff]   ;;  %v1704_v48 = vld [vmem:[%s7373_s11 + $0x90] sm:$0xff] }
  0x74   : > { %v7438_v11 = vsel %vm1794_vm4, %v2057_v58, %v2065_v0  ;;  %v7446_v16 = vpack.c.bf16 %v1695_v4, %v1694_v63  ;;  %v675_v21 = vrot.slane %v673_v8, 1  ;;  %v7455_v23 = vpack.c.bf16 %v1697_v10, %v1696_v5  ;;  %v1702_v33 = vld [vmem:[%s7373_s11 + $0x80] sm:$0xff]  ;;  %v1703_v47 = vld [vmem:[%s7373_s11 + $0x88] sm:$0xff]  ;;  %v1705_v51 = vld [vmem:[%s7373_s11 + $0x98] sm:$0x1] }
  0x75   : > { %10115 = vst [vmem:[#allocation5_spill] sm:$0xff] %v7434_v9  ;;  %10116 = vst [vmem:[#allocation6_spill] sm:$0xff] %v7438_v11  ;;  %6125 = vmatprep.mubr.msk.bf16.mxu1 %vm1283_vm5, %v7438_v11  ;;  %v7452_v20 = vsel %vm1794_vm4, %v2977_v1, %v2985_v6  ;;  %v2107_v22 = vrot.slane %v7434_v9, 4  ;;  %v2108_v27 = vrot.slane %v7444_v14, 4  ;;  %v872_v30 = vrot.slane %v7371_v19, 1  ;;  %v1706_v53 = vld [vmem:[%s7373_s11 + $0xa0] sm:$0xff] }
  0x76   : > { %10117 = vst [vmem:[#allocation7_spill] sm:$0xff] %v7444_v14  ;;  %10118 = vst [vmem:[#allocation8_spill] sm:$0xff] %v7452_v20  ;;  %6126 = vmatmul.mubr.msk.bf16.vlgmr.msra.gmra.mrb[0].mxu1 %vm1283_vm5, %v7452_v20  ;;  %v2110_v29 = vrot.slane %v7446_v16, 4  ;;  %v873_v31 = vrot.slane %v6631_v62, 1  ;;  %v7471_v35 = vsel %vm640_vm3, %v671_v13, %v675_v21  ;;  %v2111_v36 = vrot.slane %v7455_v23, 4  ;;  %v1707_v57 = vld [vmem:[%s7373_s11 + $0xa8] sm:$0xff] }
  0x77   : > { %6130 = vmatpush3.bf16.msra.mxu1 %v7363_v15  ;;  %v7474_v38 = vpack.c.bf16 %v1699_v24, %v1698_v17  ;;  %v7476_v42 = vpack.c.bf16 %v1701_v26, %v1700_v25  ;;  %1000 = vrot.lane.b32.xlu1 %v7471_v35, %s6961_s15  ;;  %v7483_v15 = vsel %vm1517_vm6, %v2107_v22, %v2108_v27  ;;  %v7487_v52 = vld [vmem:[%s7047_s20 + $0x2c] ss:$0 sps:$4 sm:$0x11]   ;;  %v1708_v58 = vld [vmem:[%s7373_s11 + $0xb0] sm:$0xff]  ;;  %v1709_v59 = vld [vmem:[%s7373_s11 + $0xb8] sm:$0x1] }
  0x78   : > { %6131 = vmatprep.subr.bf16.mxu1 %v6630_v12  ;;  %10119 = vst [vmem:[#allocation9_spill] sm:$0xff] %v7483_v15  ;;  %998 = vrot.lane.b32.xlu0 %v664_v7, %s6961_s15  ;;  %v7494_v54 = vsel %vm865_vm2, %v872_v30, %v873_v31  ;;  %v7501_v60 = vpack.c.bf16 %v1703_v47, %v1702_v33  ;;  %v678_v61 = vshrl.u32 %v7466_v32, 16  ;;  %v680_v62 = vshll.u32 %v7466_v32, 16  ;;  %v1710_v10 = vld [vmem:[%s7373_s11 + $0xc0] sm:$0xff]  ;;  %v1711_v13 = vld [vmem:[%s7373_s11 + $0xc8] sm:$0xff]  ;;  %v1712_v21 = vld [vmem:[%s7373_s11 + $0xd0] sm:$0xff] }
  0x79   : > { %6133 = vmatprep.mubr.msk.bf16.mxu1 %vm1283_vm5, %v7483_v15  ;;  %v2113_v55 = vrot.slane %v7474_v38, 4  ;;  %v2114_v56 = vrot.slane %v7476_v42, 4  ;;  %v685_v63 = vshll.u32 %v7487_v52, 16  ;;  %v7507_v0 = vsel %vm1517_vm6, %v2110_v29, %v2111_v36  ;;  %v1713_v22 = vld [vmem:[%s7373_s11 + $0xd8] sm:$0x1]  ;;  %v1714_v24 = vld [vmem:[%s7373_s11 + $0xe0] sm:$0xff] }
  0x7a   : > { %10120 = vst [vmem:[#allocation10_spill] sm:$0xff] %v7507_v0  ;;  %v7509_v1 = vpack.c.bf16 %v1705_v51, %v1704_v48  ;;  %v682_v3 = vrot.slane %v680_v62, 1  ;;  %v7516_v4 = vpack.c.bf16 %v1707_v57, %v1706_v53  ;;  %v7518_v5 = vpack.c.bf16 %v1709_v59, %v1708_v58  ;;  %v1715_v26 = vld [vmem:[%s7373_s11 + $0xe8] sm:$0xff]  ;;  %v1716_v27 = vld [vmem:[%s7373_s11 + $0xf0] sm:$0xff]  ;;  %v1717_v29 = vld [vmem:[%s7373_s11 + $0xf8] sm:$0x1] }
  0x7b   : > { %6132 = vmatpush3.bf16.msra.mxu1 %v6630_v12  ;;  %1035 = vrot.lane.b32.xlu1 %v7494_v54, %s6962_s16  ;;  %v7514_v2 = vsel %vm1517_vm6, %v2113_v55, %v2114_v56  ;;  %v687_v6 = vrot.slane %v685_v63, 1  ;;  %v2116_v7 = vrot.slane %v7501_v60, 4  ;;  %v7545_v30 = vpack.c.bf16 %v1711_v13, %v1710_v10  ;;  %v1718_v48 = vld [vmem:[%s7373_s11 + $0x100] sm:$0xff]  ;;  %v1719_v51 = vld [vmem:[%s7373_s11 + $0x108] sm:$0xff]  ;;  %v7566_v53 = vld [vmem:[%s7047_s20 + $0x30] sm:$0xff]  }
  0x7c   : > { %10121 = vst [vmem:[#allocation11_spill] sm:$0xff] %v7514_v2  ;;  %1033 = vrot.lane.b32.xlu0 %v7367_v18, %s6962_s16  ;;  %v683_v8 = vor.u32 %v682_v3, %v678_v61  ;;  %v2117_v12 = vrot.slane %v7509_v1, 4  ;;  %v2119_v18 = vrot.slane %v7516_v4, 4  ;;  %v2120_v17 = vrot.slane %v7518_v5, 4  ;;  %v1720_v59 = vld [vmem:[%s7373_s11 + $0x110] sm:$0xff]  ;;  %v6648_v44 = vld [vmem:[%s9993_s1] sm:$0xff]  }
  0x7d   : > { %v7550_v33 = vpack.c.bf16 %v1713_v22, %v1712_v21  ;;  %v7557_v36 = vpack.c.bf16 %v1715_v26, %v1714_v24  ;;  %v7559_v47 = vpack.c.bf16 %v1717_v29, %v1716_v27  ;;  %v2122_v55 = vrot.slane %v7545_v30, 4  ;;  %v1721_v61 = vld [vmem:[%s7373_s11 + $0x118] sm:$0x1]  ;;  %v1724_v10 = vld [vmem:[%s7373_s11 + $0x130] sm:$0xff]  ;;  %5943 = vmatprep.subr.bf16.mxu0 %v6648_v44  ;;  %v1739_v39 = vld [vmem:[%s7373_s11 + $0x1a8] sm:$0xff] }
  0x7e   : > { %6134 = vmatmul.mubr.msk.bf16.vlgmr.msra.gmra.mrb[4].mxu1 %vm1283_vm5, %v7507_v0  ;;  %v7540_v25 = vsel %vm640_vm3, %v683_v8, %v687_v6  ;;  %v7548_v31 = vsel %vm1517_vm6, %v2116_v7, %v2117_v12  ;;  %v875_v56 = vrot.slane %v7466_v32, 1  ;;  %v876_v57 = vrot.slane %v7487_v52, 1  ;;  %v7585_v6 = vld [vmem:[%s7047_s20 + $0x38] ss:$0 sps:$4 sm:$0x11]   ;;  %v1722_v52 = vld [vmem:[%s7373_s11 + $0x120] sm:$0xff]  ;;  %5944 = vmatpush3.bf16.msra.mxu0 %v6648_v44 }
  0x7f   : > { %6137 = vmatprep.mubr.msk.bf16.mxu1 %vm1283_vm5, %v7514_v2  ;;  %1072 = vrot.lane.b32.xlu1 %v7466_v32, %s6963_s18  ;;  %10122 = vst [vmem:[#allocation12_spill] sm:$0xff] %v7548_v31  ;;  %10123 = vst [vmem:[#allocation13_spill] sm:$0xff] %v7550_v33  ;;  %v2123_v58 = vrot.slane %v7550_v33, 4  ;;  %v7578_v62 = vpack.c.bf16 %v1719_v51, %v1718_v48  ;;  %v2125_v63 = vrot.slane %v7557_v36, 4  ;;  %v2126_v3 = vrot.slane %v7559_v47, 4  ;;  %v1723_v8 = vld [vmem:[%s7373_s11 + $0x128] sm:$0xff] }
  0x80   : > { %1070 = vrot.lane.b32.xlu0 %v7371_v19, %s6963_s18  ;;  %v7555_v19 = vsel %vm1517_vm6, %v2119_v18, %v2120_v17  ;;  %v692_v7 = vshll.u32 %v7566_v53, 16  ;;  %v1725_v12 = vld [vmem:[%s7373_s11 + $0x138] sm:$0x1]  ;;  %v7597_v13 = vpack.c.bf16 %v1721_v61, %v1720_v59  ;;  %v690_v22 = vshrl.u32 %v7566_v53, 16  ;;  %v6638_v27 = vld [vmem:[%s9994_s2 + $0x50] sm:$0xff]   ;;  %v1726_v51 = vld [vmem:[%s7373_s11 + $0x140] sm:$0xff] }
  0x81   : > { %10124 = vst [vmem:[#allocation14_spill] sm:$0xff] %v7555_v19  ;;  %v7600_v18 = vsel %vm1517_vm6, %v2122_v55, %v2123_v58  ;;  %v2128_v17 = vrot.slane %v7578_v62, 4  ;;  %v7606_v21 = vsel %vm1517_vm6, %v2125_v63, %v2126_v3  ;;  %v7609_v24 = vpack.c.bf16 %v1723_v8, %v1722_v52  ;;  %v1727_v55 = vld [vmem:[%s7373_s11 + $0x148] sm:$0xff]  ;;  %v1728_v58 = vld [vmem:[%s7373_s11 + $0x150] sm:$0xff]  ;;  %v1729_v59 = vld [vmem:[%s7373_s11 + $0x158] sm:$0x1]  ;;  %6165 = vmatprep.subr.bf16.mxu1 %v6638_v27 }
  0x82   : > { %10125 = vst [vmem:[#allocation15_spill] sm:$0xff] %v7600_v18  ;;  %10126 = vst [vmem:[#allocation16_spill] sm:$0xff] %v7606_v21  ;;  %v7611_v26 = vpack.c.bf16 %v1725_v12, %v1724_v10  ;;  %v694_v29 = vrot.slane %v692_v7, 1  ;;  %v697_v48 = vshll.u32 %v7585_v6, 16  ;;  %v3202_v61 = vrot.slane %v7394_v37, 4  ;;  %6166 = vmatpush3.bf16.msra.mxu1 %v6638_v27  ;;  %v7638_v7 = vld [vmem:[%s7047_s20 + $0x3c] sm:$0xff]  }
  0x83   : > { %1119 = vrot.lane.b32.xlu1 %v7540_v25, %s6964_s19  ;;  %v3203_v63 = vrot.slane %v7399_v41, 4  ;;  %v2131_v3 = vrot.slane %v7609_v24, 4  ;;  %v1730_v8 = vld [vmem:[%s7373_s11 + $0x160] sm:$0xff]  ;;  %v1731_v10 = vld [vmem:[%s7373_s11 + $0x168] sm:$0xff]  ;;  %v1732_v49 = vld [vmem:[%s7373_s11 + $0x170] sm:$0xff]  ;;  %v7649_v45 = vpack.c.bf16 %v1727_v55, %v1726_v51  ;;  %v7657_v40 = vpack.c.bf16 %v1729_v59, %v1728_v58 }
  0x84   : > { %1117 = vrot.lane.b32.xlu0 %v7471_v35, %s6964_s19  ;;  %v2132_v52 = vrot.slane %v7611_v26, 4  ;;  %v695_v12 = vor.u32 %v694_v29, %v690_v22  ;;  %v699_v50 = vrot.slane %v697_v48, 1  ;;  %v1733_v46 = vld [vmem:[%s7373_s11 + $0x178] sm:$0x1]  ;;  %v879_v29 = vrot.slane %v7585_v6, 1  ;;  %v1736_v58 = vld [vmem:[%s7373_s11 + $0x190] sm:$0xff] }
  0x85   : > { %v7647_v27 = vsel %vm1517_vm6, %v3202_v61, %v3203_v63  ;;  %v7666_v48 = vpack.c.bf16 %v1731_v10, %v1730_v8  ;;  %v7668_v51 = vpack.c.bf16 %v1733_v46, %v1732_v49  ;;  %v704_v6 = vshll.u32 %v7638_v7, 16  ;;  %v1735_v49 = vld [vmem:[%s7373_s11 + $0x188] sm:$0xff]  ;;  %v7698_v59 = vld [vmem:[%s9994_s2 + $0x60] sm:$0xff]   ;;  %v1740_v15 = vld [vmem:[%s7373_s11 + $0x1b0] sm:$0xff] }
  0x86   : > { %6138 = vmatmul.mubr.msk.bf16.gmra.mrb[8].mxu1 %vm1283_vm5, %v7548_v31  ;;  %10127 = vst [vmem:[#allocation17_spill] sm:$0xff] %v7647_v27  ;;  %v7663_v22 = vsel %vm1517_vm6, %v2131_v3, %v2132_v52  ;;  %v7676_v55 = vsel %vm640_vm3, %v695_v12, %v699_v50  ;;  %v2134_v46 = vrot.slane %v7649_v45, 4  ;;  %v6650_v50 = vld [vmem:[%s9993_s1 + $0x10] sm:$0xff]   ;;  %v2135_v44 = vrot.slane %v7657_v40, 4  ;;  %v1738_v52 = vld [vmem:[%s7373_s11 + $0x1a0] sm:$0xff] }
  0x87   : > { %6141 = vmatprep.mubr.msk.bf16.mxu1 %vm1283_vm5, %v7555_v19  ;;  %837 = vrot.lane.b32.xlu1 %v7471_v35, %s6960_s12  ;;  %v7595_v35 = vsel %vm865_vm2, %v875_v56, %v876_v57  ;;  %v6640_v56 = vld [vmem:[%s9994_s2 + $0x58] sm:$0xff]   ;;  %v2129_v57 = vrot.slane %v7597_v13, 4  ;;  %10129 = vst [vmem:[#allocation19_spill] sm:$0xff] %v7663_v22  ;;  %v2137_v61 = vrot.slane %v7666_v48, 4  ;;  %v2138_v63 = vrot.slane %v7668_v51, 4 }
  0x88   : > { %1152 = vrot.lane.b32.xlu0 %v7494_v54, %s6965_s21  ;;  %6167 = vmatprep.subr.bf16.mxu1 %v6640_v56  ;;  %v702_v3 = vshrl.u32 %v7638_v7, 16  ;;  %v706_v10 = vrot.slane %v704_v6, 1  ;;  %vm2599_vm7 = vsmask.f32 3328  ;;  %v10152_v20 = vshll.u32 %v7545_v30, 16 }
  0x89   : > { %v7655_v43 = vsel %vm1517_vm6, %v2128_v17, %v2129_v57  ;;  %6168 = vmatpush3.bf16.msra.mxu1 %v6640_v56  ;;  %v6649_v17 = vld [vmem:[%s9993_s1 + $0x8] sm:$0xff]   ;;  %v1734_v56 = vld [vmem:[%s7373_s11 + $0x180] sm:$0xff]  ;;  %vm1184_vm8 = vcmask 64512   ;;  %vm1217_vm9 = vcmask 130048   ;;  %vm1250_vm10 = vcmask 195584  }
  0x8a   : > { %10128 = vst [vmem:[#allocation18_spill] sm:$0xff] %v7655_v43  ;;  %v7680_v57 = vld [vmem:[%s7047_s20 + $0x44] ss:$0 sps:$4 sm:$0x11]   ;;  %5945 = vmatprep.subr.bf16.mxu0 %v6649_v17  ;;  %6201 = vmatprep.subr.bf16.mxu1 %v7698_v59  ;;  %v707_v6 = vor.u32 %v706_v10, %v702_v3  ;;  %vm1316_vm11 = vcmask 326656   ;;  %vm1349_vm12 = vcmask 392192  }
  0x8b   : > { %839 = vrot.lane.b32.xlu1 %v7540_v25, %s6960_s12  ;;  %v709_v12 = vshll.u32 %v7680_v57, 16  ;;  %5946 = vmatpush3.bf16.msra.mxu0 %v6649_v17  ;;  %v7728_v17 = vpack.c.bf16 %v1739_v39, %v1738_v52  ;;  %v1743_v39 = vld [vmem:[%s7373_s11 + $0x1c8] sm:$0xff]  ;;  %vm1382_vm13 = vcmask 457728   ;;  %vm1415_vm14 = vcmask 523264  }
  0x8c   : > { %1154 = vrot.lane.b32.xlu0 %v7595_v35, %s6965_s21  ;;  %5947 = vmatprep.subr.bf16.mxu0 %v6650_v50  ;;  %vm1484_vm15 = vcmask 588800  }
  0x8e   : > { %6142 = vmatmul.mubr.msk.bf16.gmra.mrb[12].mxu1 %vm1283_vm5, %v7600_v18  ;;  %v10031_v18 = vshrl.u32 %v7446_v16, 16 }
  0x8f   : > { %6145 = vmatprep.mubr.msk.bf16.mxu1 %vm1283_vm5, %v7606_v21  ;;  %920 = vrot.lane.b32.xlu1 %v7595_v35, %s6959_s10  ;;  %v10136_v21 = vshll.u32 %v7444_v14, 16 }
  0x90   : > { %918 = vrot.lane.b32.xlu0 %v7494_v54, %s6959_s10  ;;  %v878_v54 = vrot.slane %v7566_v53, 1  ;;  %5948 = vmatpush3.bf16.msra.mxu0 %v6650_v50  ;;  %v2143_v50 = vrot.slane %v7728_v17, 4 }
  0x92   : > { %v7709_v8 = vsel %vm865_vm2, %v878_v54, %v879_v29  ;;  %v7726_v29 = vsel %vm1517_vm6, %v2137_v61, %v2138_v63 }
  0x93   : > { %957 = vrot.lane.b32.xlu1 %v7566_v53, %s6958_s27  ;;  %10131 = vst [vmem:[#allocation21_spill] sm:$0xff] %v7726_v29 }
  0x94   : > { %955 = vrot.lane.b32.xlu0 %v7466_v32, %s6958_s27  ;;  %v1737_v32 = vld [vmem:[%s7373_s11 + $0x198] sm:$0x1] }
  0x95   : > { %v7721_v54 = vpack.c.bf16 %v1737_v32, %v1736_v58  ;;  %v6653_v58 = vld [vmem:[%s9993_s1 + $0x18] sm:$0xff]   ;;  %v7748_v32 = vld [vmem:[%s7047_s20 + $0x48] sm:$0xff]  }
  0x96   : > { %6146 = vmatmul.mubr.msk.bf16.gmra.mrb[16].mxu1 %vm1283_vm5, %v7655_v43  ;;  %v7715_v43 = vpack.c.bf16 %v1735_v49, %v1734_v56  ;;  %v1742_v49 = vld [vmem:[%s7373_s11 + $0x1c0] sm:$0xff]  ;;  %5949 = vmatprep.subr.bf16.mxu0 %v6653_v58 }
  0x97   : > { %6149 = vmatprep.mubr.msk.bf16.mxu1 %vm1283_vm5, %v7663_v22  ;;  %1004 = vrot.lane.b32.xlu1 %v7676_v55, %s6961_s15  ;;  %v1741_v22 = vld [vmem:[%s7373_s11 + $0x1b8] sm:$0x1]  ;;  %v7759_v3 = vpack.c.bf16 %v1743_v39, %v1742_v49 }
  0x98   : > { %1002 = vrot.lane.b32.xlu0 %v7540_v25, %s6961_s15  ;;  %v7719_v25 = vsel %vm1517_vm6, %v2134_v46, %v2135_v44  ;;  %v7730_v56 = vpack.c.bf16 %v1741_v22, %v1740_v15  ;;  %v711_v46 = vrot.slane %v709_v12, 1  ;;  %v2140_v44 = vrot.slane %v7715_v43, 4  ;;  %v1744_v15 = vld [vmem:[%s7373_s11 + $0x1d0] sm:$0xff]  ;;  %v1745_v22 = vld [vmem:[%s7373_s11 + $0x1d8] sm:$0x1]  ;;  %5950 = vmatpush3.bf16.msra.mxu0 %v6653_v58 }
  0x99   : > { %10130 = vst [vmem:[#allocation20_spill] sm:$0xff] %v7719_v25  ;;  %v7761_v52 = vpack.c.bf16 %v1745_v22, %v1744_v15  ;;  %v7767_v12 = vld [vmem:[%s7047_s20 + $0x50] ss:$0 sps:$4 sm:$0x11]   ;;  %v2146_v49 = vrot.slane %v7759_v3, 4  ;;  %v881_v15 = vrot.slane %v7638_v7, 1 }
  0x9a   : > { %v2144_v61 = vrot.slane %v7730_v56, 4  ;;  %v7757_v63 = vsel %vm640_vm3, %v707_v6, %v711_v46  ;;  %v10026_v6 = vshrl.u32 %v7434_v9, 16  ;;  %v2149_v22 = vrot.slane %v7381_v28, 4 }
  0x9b   : > { %1039 = vrot.lane.b32.xlu1 %v7709_v8, %s6962_s16  ;;  %v2147_v39 = vrot.slane %v7761_v52, 4 }
  0x9c   : > { %1037 = vrot.lane.b32.xlu0 %v7595_v35, %s6962_s16  ;;  %v2141_v35 = vrot.slane %v7721_v54, 4  ;;  %v2607_v46 = vrot.slane %v10026_v6, 4 }
  0x9d   : > { %v7811_v6 = vsel %vm1517_vm6, %v2146_v49, %v2147_v39  ;;  %v7829_v39 = vrot.slane %v10031_v18, 4  ;;  %v7869_v18 = vld [vmem:[%s7047_s20 + $0x5c] ss:$0 sps:$4 sm:$0x11]  }
  0x9e   : > { %6150 = vmatmul.mubr.msk.bf16.gmra.mrb[20].mxu1 %vm1283_vm5, %v7719_v25  ;;  %v7764_v10 = vsel %vm1517_vm6, %v2140_v44, %v2141_v35  ;;  %v882_v35 = vrot.slane %v7680_v57, 1  ;;  %v721_v44 = vshll.u32 %v7767_v12, 16  ;;  %v10134_v57 = vshll.u32 %v7434_v9, 16  ;;  %10137 = vst [vmem:[#allocation24_spill] sm:$0xff] %v7811_v6 }
  0x9f   : > { %6153 = vmatprep.mubr.msk.bf16.mxu1 %vm1283_vm5, %v7726_v29  ;;  %1076 = vrot.lane.b32.xlu1 %v7638_v7, %s6963_s18  ;;  %10132 = vst [vmem:[#allocation22_spill] sm:$0xff] %v7764_v10  ;;  %v716_v29 = vshll.u32 %v7748_v32, 16  ;;  %v10139_v9 = vshll.u32 %v7446_v16, 16 }
  0xa0   : > { %1074 = vrot.lane.b32.xlu0 %v7566_v53, %s6963_s18  ;;  %v7773_v53 = vsel %vm1517_vm6, %v2143_v50, %v2144_v61  ;;  %v2150_v50 = vrot.slane %v7390_v34, 4  ;;  %v714_v61 = vshrl.u32 %v7748_v32, 16 }
  0xa1   : > { %10133 = vst [vmem:[#allocation23_spill] sm:$0xff] %v7773_v53  ;;  %v718_v58 = vrot.slane %v716_v29, 1  ;;  %v2611_v29 = vrot.slane %v10136_v21, 5 }
  0xa2   : > { %v7823_v21 = vsel %vm1517_vm6, %v2149_v22, %v2150_v50  ;;  %v884_v50 = vrot.slane %v7748_v32, 1 }
  0xa3   : > { %1123 = vrot.lane.b32.xlu1 %v7757_v63, %s6964_s19  ;;  %10138 = vst [vmem:[#allocation25_spill] sm:$0xff] %v7823_v21 }
  0xa4   : > { %1121 = vrot.lane.b32.xlu0 %v7676_v55, %s6964_s19 }
  0xa6   : > { %6154 = vmatmul.mubr.msk.bf16.gmra.mrb[24].mxu1 %vm1283_vm5, %v7764_v10  ;;  %v2608_v10 = vrot.slane %v10134_v57, 5  ;;  %v7833_v57 = vrot.slane %v10139_v9, 5  ;;  %v10140_v9 = vshrl.u32 %v7455_v23, 16 }
  0xa7   : > { %6157 = vmatprep.mubr.msk.bf16.mxu1 %vm1283_vm5, %v7773_v53  ;;  %841 = vrot.lane.b32.xlu1 %v7676_v55, %s6960_s12  ;;  %v10135_v53 = vshrl.u32 %v7444_v14, 16  ;;  %v7808_v55 = vsel %vm865_vm2, %v881_v15, %v882_v35  ;;  %v719_v15 = vor.u32 %v718_v58, %v714_v61  ;;  %v723_v35 = vrot.slane %v721_v44, 1 }
  0xa8   : > { %1156 = vrot.lane.b32.xlu0 %v7709_v8, %s6965_s21  ;;  %v2609_v19 = vor.u32 %v2608_v10, %v2607_v46  ;;  %v1847_v14 = vshrl.u32 %v7474_v38, 16  ;;  %v1855_v10 = vshrl.u32 %v7476_v42, 16  ;;  %v1858_v46 = vshll.u32 %v7476_v42, 16  ;;  %v7857_v42 = vld [vmem:[%s7047_s20 + $0x54] sm:$0xff]  }
  0xa9   : > { %v2610_v25 = vrot.slane %v10135_v53, 4  ;;  %v7818_v53 = vld [vmem:[%s9993_s1 + $0x20] ss:$0 sps:$4 sm:$0xff]   ;;  %v2617_v58 = vrot.slane %v10140_v9, 4  ;;  %v10141_v44 = vshll.u32 %v7455_v23, 16  ;;  %v885_v61 = vrot.slane %v7767_v12, 1 }
  0xaa   : > { %6569 = vmatprep.subr.msk.bf16.mxu0 %vm1517_vm6, %v7818_v53  ;;  %v2616_v9 = vor.u32 %v7833_v57, %v7829_v39  ;;  %v2621_v12 = vrot.slane %v1847_v14, 4  ;;  %v728_v57 = vshll.u32 %v7857_v42, 16  ;;  %v726_v39 = vshrl.u32 %v7857_v42, 16 }
  0xab   : > { %843 = vrot.lane.b32.xlu1 %v7757_v63, %s6960_s12  ;;  %v2612_v49 = vor.u32 %v2611_v29, %v2610_v25  ;;  %v1850_v25 = vshll.u32 %v7474_v38, 16  ;;  %v2618_v22 = vrot.slane %v10141_v44, 5  ;;  %v7854_v38 = vsel %vm640_vm3, %v719_v15, %v723_v35 }
  0xac   : > { %1158 = vrot.lane.b32.xlu0 %v7808_v55, %s6965_s21  ;;  %v7866_v44 = vrot.slane %v1847_v14, 3  ;;  %v2625_v15 = vrot.slane %v1858_v46, 5  ;;  %v10040_v35 = vshrl.u32 %v7501_v60, 16  ;;  %v7873_v2 = vsel %vm865_vm2, %v884_v50, %v885_v61 }
  0xad   : > { %v7862_v29 = vsel %vm2599_vm7, %v2609_v19, %v2612_v49  ;;  %v2619_v31 = vor.u32 %v2618_v22, %v2617_v58  ;;  %v10042_v19 = vshll.u32 %v7501_v60, 16  ;;  %v7885_v58 = vrot.slane %v1850_v25, 4 }
  0xae   : > { %6158 = vmatmul.mubr.msk.bf16.gmra.mrb[28].mxu1 %vm1283_vm5, %v7811_v6  ;;  %10142 = vst [vmem:[#allocation26_spill] sm:$0xff] %v7862_v29  ;;  %v2624_v6 = vrot.slane %v1855_v10, 4  ;;  %v7887_v22 = vrot.slane %v1855_v10, 3  ;;  %v7893_v14 = vrot.slane %v1858_v46, 4  ;;  %v10143_v10 = vshrl.u32 %v7509_v1, 16 }
  0xaf   : > { %6161 = vmatprep.mubr.msk.bf16.mxu1 %vm1283_vm5, %v7823_v21  ;;  %924 = vrot.lane.b32.xlu1 %v7808_v55, %s6959_s10  ;;  %v2622_v21 = vrot.slane %v1850_v25, 5  ;;  %v2629_v25 = vrot.slane %v10042_v19, 5  ;;  %v733_v50 = vshll.u32 %v7869_v18, 16  ;;  %v730_v46 = vrot.slane %v728_v57, 1 }
  0xb0   : > { %922 = vrot.lane.b32.xlu0 %v7709_v8, %s6959_s10  ;;  %v2626_v49 = vor.u32 %v2625_v15, %v2624_v6  ;;  %v2631_v61 = vrot.slane %v10143_v10, 4  ;;  %v10144_v6 = vshll.u32 %v7509_v1, 16  ;;  %v10147_v10 = vshrl.u32 %v7518_v5, 16 }
  0xb1   : > { %v2623_v8 = vor.u32 %v2622_v21, %v2621_v12  ;;  %v10145_v12 = vshrl.u32 %v7516_v4, 16  ;;  %v735_v11 = vrot.slane %v733_v50, 1 }
  0xb2   : > { %v2632_v21 = vrot.slane %v10144_v6, 5  ;;  %v2638_v19 = vrot.slane %v10147_v10, 4  ;;  %v731_v6 = vor.u32 %v730_v46, %v726_v39  ;;  %v10153_v39 = vshrl.u32 %v7550_v33, 16 }
  0xb3   : > { %961 = vrot.lane.b32.xlu1 %v7748_v32, %s6958_s27  ;;  %v2635_v15 = vrot.slane %v10145_v12, 4  ;;  %v7929_v10 = vsel %vm2599_vm7, %v2623_v8, %v2626_v49  ;;  %v10151_v8 = vshrl.u32 %v7545_v30, 16  ;;  %v10158_v46 = vshll.u32 %v7559_v47, 16 }
  0xb4   : > { %959 = vrot.lane.b32.xlu0 %v7638_v7, %s6958_s27  ;;  %v2628_v7 = vrot.slane %v10040_v35, 4  ;;  %v10146_v35 = vshll.u32 %v7516_v4, 16  ;;  %10150 = vst [vmem:[#allocation28_spill] sm:$0xff] %v7929_v10  ;;  %v2633_v12 = vor.u32 %v2632_v21, %v2631_v61  ;;  %v2645_v50 = vrot.slane %v10153_v39, 4 }
  0xb5   : > { %v2642_v49 = vrot.slane %v10151_v8, 4  ;;  %v10154_v61 = vshll.u32 %v7550_v33, 16  ;;  %v888_v8 = vrot.slane %v7869_v18, 1  ;;  %v10161_v18 = vshll.u32 %v7578_v62, 16 }
  0xb6   : > { %6162 = vmatmul.mubr.msk.bf16.gmra.mrb[0].mxu1 %vm1283_vm5, %v7647_v27  ;;  %v10148_v27 = vshll.u32 %v7518_v5, 16  ;;  %v2630_v57 = vor.u32 %v2629_v25, %v2628_v7  ;;  %v7945_v7 = vld [vmem:[%s7047_s20 + $0x60] sm:$0xff]  }
  0xb7   : > { %6169 = vmatprep.mubr.msk.bf16.mxu1 %vm1283_vm5, %v7862_v29  ;;  %1008 = vrot.lane.b32.xlu1 %v7854_v38, %s6961_s15  ;;  %v2636_v29 = vrot.slane %v10146_v35, 5  ;;  %v6654_v35 = vld [vmem:[%s9994_s2 + $0x68] sm:$0xff]  }
  0xb8   : > { %1006 = vrot.lane.b32.xlu0 %v7757_v63, %s6961_s15  ;;  %v2639_v0 = vrot.slane %v10148_v27, 5  ;;  %v7926_v63 = vsel %vm2599_vm7, %v2616_v9, %v2619_v31  ;;  %v2643_v27 = vrot.slane %v10152_v20, 5  ;;  %v10157_v20 = vshrl.u32 %v7559_v47, 16 }
  0xb9   : > { %10149 = vst [vmem:[#allocation27_spill] sm:$0xff] %v7926_v63  ;;  %v2637_v31 = vor.u32 %v2636_v29, %v2635_v15  ;;  %v2653_v15 = vrot.slane %v10158_v46, 5  ;;  %v887_v46 = vrot.slane %v7857_v42, 1 }
  0xba   : > { %v2640_v9 = vor.u32 %v2639_v0, %v2638_v19  ;;  %v10155_v0 = vshrl.u32 %v7557_v36, 16  ;;  %v10156_v19 = vshll.u32 %v7557_v36, 16  ;;  %v2652_v21 = vrot.slane %v10157_v20, 4 }
  0xbb   : > { %1043 = vrot.lane.b32.xlu1 %v7873_v2, %s6962_s16  ;;  %v7980_v20 = vsel %vm2599_vm7, %v2630_v57, %v2633_v12  ;;  %v2644_v39 = vor.u32 %v2643_v27, %v2642_v49  ;;  %v10160_v57 = vshrl.u32 %v7578_v62, 16  ;;  %v2657_v49 = vrot.slane %v10161_v18, 5 }
  0xbc   : > { %1041 = vrot.lane.b32.xlu0 %v7808_v55, %s6962_s16  ;;  %v2646_v55 = vrot.slane %v10154_v61, 5  ;;  %v2649_v29 = vrot.slane %v10155_v0, 4  ;;  %v2650_v25 = vrot.slane %v10156_v19, 5  ;;  %v7970_v0 = vld [vmem:[%s7047_s20 + $0x68] ss:$0 sps:$4 sm:$0x11]   ;;  %v7991_v33 = vsel %vm2599_vm7, %v2637_v31, %v2640_v9 }
  0xbd   : > { %v7975_v19 = vld [vmem:[%s9994_s2 + $0x70] sm:$0xff]   ;;  %10159 = vst [vmem:[#allocation29_spill] sm:$0xff] %v7991_v33  ;;  %v2656_v12 = vrot.slane %v10160_v57, 4  ;;  %v2654_v27 = vor.u32 %v2653_v15, %v2652_v21  ;;  %v10163_v31 = vshll.u32 %v7597_v13, 16  ;;  %v8019_v57 = vsel %vm865_vm2, %v887_v46, %v888_v8 }
  0xbe   : > { %6170 = vmatmul.mubr.msk.bf16.vlgmr.msra.gmra.mrb[4].mxu1 %vm1283_vm5, %v7926_v63  ;;  %v10162_v63 = vshrl.u32 %v7597_v13, 16 }
  0xbf   : > { %6173 = vmatprep.mubr.msk.bf16.mxu1 %vm1283_vm5, %v7929_v10  ;;  %6202 = vmatpush3.bf16.msra.mxu1 %v7698_v59  ;;  %v7983_v59 = vsel %vm640_vm3, %v731_v6, %v735_v11  ;;  %v740_v10 = vshll.u32 %v7945_v7, 16  ;;  %v10055_v11 = vshll.u32 %v7609_v24, 16  ;;  %v2651_v6 = vor.u32 %v2650_v25, %v2649_v29 }
  0xc0   : > { %1080 = vrot.lane.b32.xlu1 %v7857_v42, %s6963_s18  ;;  %6203 = vmatprep.subr.bf16.mxu1 %v6654_v35  ;;  %v2659_v61 = vrot.slane %v10162_v63, 4  ;;  %v2660_v9 = vrot.slane %v10163_v31, 5  ;;  %v745_v63 = vshll.u32 %v7970_v0, 16  ;;  %v10164_v25 = vshrl.u32 %v7609_v24, 16 }
  0xc1   : > { %1078 = vrot.lane.b32.xlu0 %v7748_v32, %s6963_s18  ;;  %v2647_v32 = vor.u32 %v2646_v55, %v2645_v50  ;;  %v10058_v50 = vshrl.u32 %v7611_v26, 16  ;;  %v742_v29 = vrot.slane %v740_v10, 1  ;;  %v2664_v18 = vrot.slane %v10055_v11, 5 }
  0xc2   : > { %v2663_v21 = vrot.slane %v10164_v25, 4  ;;  %v8030_v25 = vsel %vm2599_vm7, %v2651_v6, %v2654_v27  ;;  %v2658_v8 = vor.u32 %v2657_v49, %v2656_v12  ;;  %v2661_v46 = vor.u32 %v2660_v9, %v2659_v61 }
  0xc3   : > { %6204 = vmatpush3.bf16.msra.mxu1 %v6654_v35  ;;  %v738_v35 = vshrl.u32 %v7945_v7, 16  ;;  %v8027_v10 = vsel %vm2599_vm7, %v2644_v39, %v2647_v32  ;;  %v2666_v11 = vrot.slane %v10058_v50, 4  ;;  %v747_v32 = vrot.slane %v745_v63, 1 }
  0xc4   : > { %1127 = vrot.lane.b32.xlu1 %v7983_v59, %s6964_s19  ;;  %6237 = vmatprep.subr.bf16.mxu1 %v7975_v19  ;;  %v10166_v6 = vshrl.u32 %v7649_v45, 16  ;;  %v1853_v55 = vor.u32 %v7885_v58, %v7866_v44  ;;  %v2665_v15 = vor.u32 %v2664_v18, %v2663_v21  ;;  %v890_v61 = vrot.slane %v7945_v7, 1 }
  0xc5   : > { %1125 = vrot.lane.b32.xlu0 %v7854_v38, %s6964_s19  ;;  %v743_v39 = vor.u32 %v742_v29, %v738_v35  ;;  %v1861_v49 = vor.u32 %v7893_v14, %v7887_v22  ;;  %v10168_v9 = vshrl.u32 %v7657_v40, 16  ;;  %v10169_v29 = vshll.u32 %v7657_v40, 16 }
  0xc6   : > { %6174 = vmatmul.mubr.msk.bf16.gmra.mrb[8].mxu1 %vm1283_vm5, %v7980_v20  ;;  %v8042_v27 = vrot.slane %v10166_v6, 4  ;;  %v10059_v58 = vshrl.u32 %v7666_v48, 16  ;;  %v10066_v14 = vshrl.u32 %v7668_v51, 16  ;;  %v1519_v21 = vsel %vm1517_vm6, %v7818_v53, 0 }
  0xc7   : > { %6177 = vmatprep.mubr.msk.bf16.mxu1 %vm1283_vm5, %v7991_v33  ;;  %v10167_v33 = vshll.u32 %v7649_v45, 16  ;;  %v8057_v35 = vrot.slane %v10168_v9, 4  ;;  %v8061_v44 = vrot.slane %v10169_v29, 5  ;;  %v8069_v22 = vsel %vm1794_vm4, %v1853_v55, %v1861_v49  ;;  %5952 = vmatpush3.bf16.msra.mxu0 %v1519_v21  ;;  %v8096_v9 = vld [vmem:[%s7047_s20 + $0x6c] sm:$0xff]  }
  0xc8   : > { %845 = vrot.lane.b32.xlu1 %v7854_v38, %s6960_s12  ;;  %v10165_v38 = vshll.u32 %v7611_v26, 16  ;;  %v8076_v18 = vsel %vm2599_vm7, %v2658_v8, %v2661_v46  ;;  %v10061_v55 = vshll.u32 %v7715_v43, 16  ;;  %v10171_v53 = vshrl.u32 %v7516_v4, 16 }
  0xc9   : > { %1160 = vrot.lane.b32.xlu0 %v7873_v2, %s6965_s21  ;;  %v8048_v12 = vrot.slane %v10167_v33, 5  ;;  %v10060_v33 = vshll.u32 %v7666_v48, 16  ;;  %10170 = vst [vmem:[#allocation30_spill] sm:$0xff] %v8076_v18  ;;  %v10172_v49 = vshll.u32 %v7516_v4, 16  ;;  %v10173_v46 = vshrl.u32 %v7518_v5, 16 }
  0xca   : > { %v2667_v31 = vrot.slane %v10165_v38, 5  ;;  %v8079_v38 = vsel %vm640_vm3, %v743_v39, %v747_v32  ;;  %v1883_v6 = vrot.slane %v10171_v53, 3  ;;  %v891_v32 = vrot.slane %v7970_v0, 1 }
  0xcb   : > { %v1886_v8 = vrot.slane %v10172_v49, 4  ;;  %v1891_v39 = vrot.slane %v10173_v46, 3  ;;  %v2677_v29 = vrot.slane %v10059_v58, 4  ;;  %v2678_v21 = vrot.slane %v10060_v33, 5 }
  0xcc   : > { %847 = vrot.lane.b32.xlu1 %v7983_v59, %s6960_s12  ;;  %v2668_v63 = vor.u32 %v2667_v31, %v2666_v11  ;;  %v10063_v11 = vshll.u32 %v7668_v51, 16  ;;  %v10062_v31 = vshrl.u32 %v7715_v43, 16  ;;  %v10174_v53 = vshll.u32 %v7518_v5, 16 }
  0xcd   : > { %1162 = vrot.lane.b32.xlu0 %v8019_v57, %s6965_s21  ;;  %v2672_v0 = vor.u32 %v8048_v12, %v8042_v27  ;;  %v10065_v46 = vshrl.u32 %v7721_v54, 16  ;;  %v1887_v50 = vor.u32 %v1886_v8, %v1883_v6  ;;  %v2680_v58 = vrot.slane %v10066_v14, 4  ;;  %v8132_v8 = vld [vmem:[%s7047_s20 + $0x74] ss:$0 sps:$4 sm:$0x11]  }
  0xce   : > { %6178 = vmatmul.mubr.msk.bf16.gmra.mrb[12].mxu1 %vm1283_vm5, %v8027_v10  ;;  %v1894_v4 = vrot.slane %v10174_v53, 4  ;;  %v8107_v49 = vsel %vm2599_vm7, %v2665_v15, %v2668_v63  ;;  %v2681_v5 = vrot.slane %v10063_v11, 5  ;;  %v10064_v53 = vshll.u32 %v7721_v54, 16 }
  0xcf   : > { %6181 = vmatprep.mubr.msk.bf16.mxu1 %vm1283_vm5, %v8030_v25  ;;  %10175 = vst [vmem:[#allocation31_spill] sm:$0xff] %v8107_v49  ;;  %v8121_v15 = vrot.slane %v10062_v31, 4  ;;  %v8125_v27 = vrot.slane %v10061_v55, 5  ;;  %v10176_v12 = vshrl.u32 %v7557_v36, 16  ;;  %v2679_v6 = vor.u32 %v2678_v21, %v2677_v29 }
  0xd0   : > { %928 = vrot.lane.b32.xlu1 %v8019_v57, %s6959_s10  ;;  %v1895_v33 = vor.u32 %v1894_v4, %v1891_v39  ;;  %v752_v39 = vshll.u32 %v8096_v9, 16  ;;  %v750_v55 = vshrl.u32 %v8096_v9, 16  ;;  %v10179_v29 = vshrl.u32 %v7559_v47, 16 }
  0xd1   : > { %926 = vrot.lane.b32.xlu0 %v7873_v2, %s6959_s10  ;;  %v2675_v2 = vor.u32 %v8061_v44, %v8057_v35  ;;  %v1917_v63 = vrot.slane %v10176_v12, 3  ;;  %v10178_v44 = vshll.u32 %v7557_v36, 16  ;;  %v2687_v12 = vrot.slane %v10065_v46, 4 }
  0xd2   : > { %v8136_v35 = vsel %vm1794_vm4, %v1887_v50, %v1895_v33  ;;  %v1925_v21 = vrot.slane %v10179_v29, 3  ;;  %v10180_v31 = vshll.u32 %v7559_v47, 16  ;;  %v2682_v50 = vor.u32 %v2681_v5, %v2680_v58 }
  0xd3   : > { %10177 = vst [vmem:[#allocation32_spill] sm:$0xff] %v8136_v35  ;;  %v1920_v4 = vrot.slane %v10178_v44, 4  ;;  %v2688_v36 = vrot.slane %v10064_v53, 5  ;;  %v2020_v44 = vshll.u32 %v7728_v17, 16  ;;  %v2025_v29 = vshrl.u32 %v7730_v56, 16 }
  0xd4   : > { %965 = vrot.lane.b32.xlu1 %v7945_v7, %s6958_s27  ;;  %v1928_v11 = vrot.slane %v10180_v31, 4  ;;  %v754_v58 = vrot.slane %v752_v39, 1  ;;  %v757_v5 = vshll.u32 %v8132_v8, 16  ;;  %v10181_v53 = vshrl.u32 %v7609_v24, 16 }
  0xd5   : > { %963 = vrot.lane.b32.xlu0 %v7857_v42, %s6958_s27  ;;  %v2017_v42 = vshrl.u32 %v7728_v17, 16  ;;  %v1921_v33 = vor.u32 %v1920_v4, %v1917_v63  ;;  %v10182_v63 = vshll.u32 %v7609_v24, 16  ;;  %v8171_v17 = vsel %vm865_vm2, %v890_v61, %v891_v32 }
  0xd6   : > { %6182 = vmatmul.mubr.msk.bf16.gmra.mrb[16].mxu1 %vm1283_vm5, %v8076_v18  ;;  %v1929_v31 = vor.u32 %v1928_v11, %v1925_v21  ;;  %v1951_v46 = vrot.slane %v10181_v53, 3  ;;  %v10184_v39 = vshrl.u32 %v7611_v26, 16  ;;  %v10185_v14 = vshll.u32 %v7611_v26, 16 }
  0xd7   : > { %6185 = vmatprep.mubr.msk.bf16.mxu1 %vm1283_vm5, %v8107_v49  ;;  %v1954_v4 = vrot.slane %v10182_v63, 4  ;;  %v8181_v24 = vsel %vm2599_vm7, %v2672_v0, %v2675_v2  ;;  %v2686_v61 = vor.u32 %v8125_v27, %v8121_v15  ;;  %v2691_v32 = vrot.slane %v2017_v42, 4 }
  0xd8   : > { %1012 = vrot.lane.b32.xlu1 %v8079_v38, %s6961_s15  ;;  %v8174_v11 = vsel %vm1794_vm4, %v1921_v33, %v1929_v31  ;;  %v1959_v21 = vrot.slane %v10184_v39, 3  ;;  %v1962_v53 = vrot.slane %v10185_v14, 4  ;;  %10186 = vst [vmem:[#allocation34_spill] sm:$0xff] %v8181_v24  ;;  %v8183_v63 = vpop.permute.xlu0 %951  ;;  %v2692_v33 = vrot.slane %v2020_v44, 5 }
  0xd9   : > { %1010 = vrot.lane.b32.xlu0 %v7983_v59, %s6961_s15  ;;  %10183 = vst [vmem:[#allocation33_spill] sm:$0xff] %v8174_v11  ;;  %v1955_v47 = vor.u32 %v1954_v4, %v1951_v46  ;;  %v2694_v31 = vrot.slane %v2025_v29, 4  ;;  %v10187_v49 = vshll.u32 %v7730_v56, 16  ;;  %v8194_v26 = vsel %vm2599_vm7, %v2679_v6, %v2682_v50 }
  0xda   : > { %v1963_v18 = vor.u32 %v1962_v53, %v1959_v21  ;;  %v2689_v14 = vor.u32 %v2688_v36, %v2687_v12  ;;  %v755_v0 = vor.u32 %v754_v58, %v750_v55  ;;  %v759_v2 = vrot.slane %v757_v5, 1 }
  0xdb   : > { %v8185_v59 = vpop.permute.xlu1 %914  ;;  %v2695_v39 = vrot.slane %v10187_v49, 5  ;;  %v2034_v46 = vshrl.u32 %v7759_v3, 16  ;;  %v10073_v15 = vshll.u32 %v7759_v3, 16  ;;  %v10189_v49 = vshrl.u32 %v7666_v48, 16 }
  0xdc   : > { %1047 = vrot.lane.b32.xlu1 %v8171_v17, %s6962_s16  ;;  %v8201_v27 = vsel %vm1794_vm4, %v1955_v47, %v1963_v18  ;;  %v10072_v55 = vshrl.u32 %v7761_v52, 16  ;;  %v10071_v12 = vshll.u32 %v7761_v52, 16  ;;  %v10191_v36 = vshrl.u32 %v7668_v51, 16 }
  0xdd   : > { %1045 = vrot.lane.b32.xlu0 %v8019_v57, %s6962_s16  ;;  %10188 = vst [vmem:[#allocation35_spill] sm:$0xff] %v8201_v27  ;;  %v1985_v4 = vrot.slane %v10189_v49, 3  ;;  %v10190_v57 = vshll.u32 %v7666_v48, 16  ;;  %v2693_v18 = vor.u32 %v2692_v33, %v2691_v32  ;;  %v2696_v47 = vor.u32 %v2695_v39, %v2694_v31 }
  0xde   : > { %6186 = vmatmul.mubr.msk.bf16.gmra.mrb[20].mxu1 %vm1283_vm5, %v8181_v24  ;;  %v1993_v58 = vrot.slane %v10191_v36, 3  ;;  %v10192_v5 = vshll.u32 %v7668_v51, 16  ;;  %v8224_v49 = vsel %vm2599_vm7, %v2686_v61, %v2689_v14  ;;  %v2698_v32 = vrot.slane %v2034_v46, 4 }
  0xdf   : > { %v8207_v6 = vpop.permute.xlu1 %916  ;;  %v1988_v50 = vrot.slane %v10190_v57, 4  ;;  %6189 = vmatprep.mubr.msk.bf16.mxu1 %vm1283_vm5, %v8194_v26  ;;  %v8221_v53 = vpop.permute.xlu0 %833  ;;  %v8229_v57 = vsel %vm640_vm3, %v755_v0, %v759_v2  ;;  %v2699_v51 = vrot.slane %v10073_v15, 5  ;;  %v2701_v31 = vrot.slane %v10072_v55, 4  ;;  %v1754_v55 = vld [vmem:[%s7373_s11 + $0x220] sm:$0xff] }
  0xe0   : > { %v1996_v21 = vrot.slane %v10192_v5, 4  ;;  %1084 = vrot.lane.b32.xlu1 %v8096_v9, %s6963_s18  ;;  %v2702_v61 = vrot.slane %v10071_v12, 5  ;;  %v10193_v39 = vshrl.u32 %v7381_v28, 16  ;;  %v2019_v14 = vrot.slane %v2017_v42, 3 }
  0xe1   : > { %v1989_v48 = vor.u32 %v1988_v50, %v1985_v4  ;;  %1082 = vrot.lane.b32.xlu0 %v7945_v7, %s6963_s18  ;;  %v8242_v0 = vsel %vm2599_vm7, %v2693_v18, %v2696_v47  ;;  %v2022_v4 = vrot.slane %v2020_v44, 4  ;;  %v2027_v50 = vrot.slane %v2025_v29, 3 }
  0xe2   : > { %v1997_v33 = vor.u32 %v1996_v21, %v1993_v58  ;;  %v2705_v7 = vrot.slane %v10193_v39, 4  ;;  %v10195_v58 = vshll.u32 %v7381_v28, 16  ;;  %v10196_v21 = vshrl.u32 %v7390_v34, 16 }
  0xe3   : > { %v8249_v36 = vpop.permute.xlu1 %953  ;;  %v10197_v42 = vshll.u32 %v7390_v34, 16  ;;  %v10198_v47 = vshll.u32 %v7730_v56, 16  ;;  %v893_v44 = vrot.slane %v8096_v9, 1  ;;  %v894_v29 = vrot.slane %v8132_v8, 1 }
  0xe4   : > { %v8245_v2 = vsel %vm1794_vm4, %v1989_v48, %v1997_v33  ;;  %1131 = vrot.lane.b32.xlu1 %v8229_v57, %s6964_s19  ;;  %v2706_v5 = vrot.slane %v10195_v58, 5  ;;  %v2708_v39 = vrot.slane %v10196_v21, 4  ;;  %v8264_v33 = vld [vmem:[%s7047_s20 + $0x78] sm:$0xff]   ;;  %v2023_v28 = vor.u32 %v2022_v4, %v2019_v14 }
  0xe5   : > { %10194 = vst [vmem:[#allocation36_spill] sm:$0xff] %v8245_v2  ;;  %v2709_v18 = vrot.slane %v10197_v42, 5  ;;  %v2030_v48 = vrot.slane %v10198_v47, 4  ;;  %1129 = vrot.lane.b32.xlu0 %v8079_v38, %s6964_s19  ;;  %v836_v58 = vpop.permute.xlu0 %835  ;;  %v2700_v34 = vor.u32 %v2699_v51, %v2698_v32  ;;  %v2703_v21 = vor.u32 %v2702_v61, %v2701_v31  ;;  %v8283_v31 = vld [vmem:[%s7047_s20 + $0x80] ss:$0 sps:$4 sm:$0x11]  }
  0xe6   : > { %6190 = vmatmul.mubr.msk.bf16.gmra.mrb[24].mxu1 %vm1283_vm5, %v8224_v49  ;;  %v2707_v56 = vor.u32 %v2706_v5, %v2705_v7  ;;  %v8278_v14 = vsel %vm865_vm2, %v893_v44, %v894_v29  ;;  %v10200_v32 = vshrl.u32 %v7394_v37, 16  ;;  %v764_v61 = vshll.u32 %v8264_v33, 16 }
  0xe7   : > { %v2031_v42 = vor.u32 %v2030_v48, %v2027_v50  ;;  %6193 = vmatprep.mubr.msk.bf16.mxu1 %vm1283_vm5, %v8242_v0  ;;  %v2710_v47 = vor.u32 %v2709_v18, %v2708_v39  ;;  %v10201_v7 = vshll.u32 %v7394_v37, 16  ;;  %v10202_v5 = vshrl.u32 %v7399_v41, 16 }
  0xe8   : > { %849 = vrot.lane.b32.xlu1 %v8079_v38, %s6960_s12  ;;  %v3418_v51 = vrot.slane %v10200_v32, 4  ;;  %v8289_v38 = vsel %vm2599_vm7, %v2700_v34, %v2703_v21  ;;  %v10203_v18 = vshll.u32 %v7399_v41, 16  ;;  %v10204_v29 = vshrl.u32 %v7446_v16, 16 }
  0xe9   : > { %v8273_v8 = vsel %vm1794_vm4, %v2023_v28, %v2031_v42  ;;  %1164 = vrot.lane.b32.xlu0 %v8171_v17, %s6965_s21  ;;  %v8286_v4 = vpop.permute.xlu1 %1000  ;;  %v3419_v50 = vrot.slane %v10201_v7, 5  ;;  %v3421_v39 = vrot.slane %v10202_v5, 4  ;;  %v10205_v42 = vshll.u32 %v7446_v16, 16 }
  0xea   : > { %10199 = vst [vmem:[#allocation37_spill] sm:$0xff] %v8273_v8  ;;  %v3422_v48 = vrot.slane %v10203_v18, 5  ;;  %v8297_v44 = vpop.permute.xlu0 %998  ;;  %v1832_v28 = vrot.slane %v10204_v29, 3  ;;  %v10206_v34 = vshrl.u32 %v7455_v23, 16  ;;  %v10207_v37 = vshll.u32 %v7455_v23, 16 }
  0xeb   : > { %v1835_v32 = vrot.slane %v10205_v42, 4  ;;  %v8310_v41 = vsel %vm2599_vm7, %v2707_v56, %v2710_v47  ;;  %v762_v16 = vshrl.u32 %v8264_v33, 16  ;;  %v766_v5 = vrot.slane %v764_v61, 1  ;;  %v8325_v61 = vld [vmem:[%s7047_s20 + $0x84] sm:$0xff]  }
  0xec   : > { %v1840_v21 = vrot.slane %v10206_v34, 3  ;;  %v1843_v7 = vrot.slane %v10207_v37, 4  ;;  %851 = vrot.lane.b32.xlu1 %v8229_v57, %s6960_s12  ;;  %v769_v18 = vshll.u32 %v8283_v31, 16  ;;  %v3420_v56 = vor.u32 %v3419_v50, %v3418_v51  ;;  %v6873_v37 = vld [vmem:[%s7047_s20] sm:$0xff]  }
  0xed   : > { %1166 = vrot.lane.b32.xlu0 %v8278_v14, %s6965_s21  ;;  %v8318_v23 = vpop.permute.xlu1 %1035  ;;  %v3423_v47 = vor.u32 %v3422_v48, %v3421_v39  ;;  %v1836_v42 = vor.u32 %v1835_v32, %v1832_v28  ;;  %v1186_v12 = vsel %vm1184_vm8, %v6873_v37, %v8221_v53  ;;  %v767_v51 = vor.u32 %v766_v5, %v762_v16  ;;  %v6874_v37 = vld [vmem:[%s7047_s20 + $0xc] sm:$0xff]  }
  0xee   : > { %6194 = vmatmul.mubr.msk.bf16.gmra.mrb[28].mxu1 %vm1283_vm5, %v8289_v38  ;;  %v1034_v29 = vpop.permute.xlu0 %1033  ;;  %v1844_v34 = vor.u32 %v1843_v7, %v1840_v21  ;;  %v771_v50 = vrot.slane %v769_v18, 1  ;;  %v896_v48 = vrot.slane %v8264_v33, 1  ;;  %v897_v28 = vrot.slane %v8283_v31, 1  ;;  %v8349_v31 = vld [vmem:[%s7047_s20 + $0x8c] ss:$0 sps:$4 sm:$0x11]  }
  0xef   : > { %6197 = vmatprep.mubr.msk.bf16.mxu1 %vm1283_vm5, %v8310_v41  ;;  %v10208_v32 = vshrl.u32 %v7501_v60, 16  ;;  %v10209_v7 = vshll.u32 %v7501_v60, 16  ;;  %v8343_v5 = vsel %vm2599_vm7, %v3420_v56, %v3423_v47  ;;  %v1219_v60 = vsel %vm1217_vm9, %v1186_v12, %v8185_v59 }
  0xf0   : > { %932 = vrot.lane.b32.xlu1 %v8278_v14, %s6959_s10  ;;  %v8346_v18 = vsel %vm1794_vm4, %v1836_v42, %v1844_v34  ;;  %v776_v47 = vshll.u32 %v8325_v61, 16  ;;  %v1756_v42 = vld [vmem:[%s7373_s11 + $0x230] sm:$0xff]  ;;  %v1757_v34 = vld [vmem:[%s7373_s11 + $0x238] sm:$0x1]  ;;  %v8367_v59 = vsel %vm640_vm3, %v767_v51, %v771_v50  ;;  %v1252_v15 = vsel %vm1250_vm10, %v1219_v60, %v8183_v63 }
  0xf1   : > { %930 = vrot.lane.b32.xlu0 %v8171_v17, %s6959_s10  ;;  %v8332_v39 = vpop.permute.xlu1 %1072  ;;  %v1866_v21 = vrot.slane %v10208_v32, 3  ;;  %v1869_v53 = vrot.slane %v10209_v7, 4  ;;  %v1188_v17 = vsel %vm1184_vm8, %v6874_v37, %v836_v58  ;;  %v1755_v32 = vld [vmem:[%s7373_s11 + $0x228] sm:$0xff]  ;;  %v10210_v58 = vshrl.u32 %v7509_v1, 16 }
  0xf2   : > { %v1071_v16 = vpop.permute.xlu0 %1070  ;;  %v10211_v37 = vshll.u32 %v7509_v1, 16  ;;  %v1221_v12 = vsel %vm1217_vm9, %v1188_v17, %v8207_v6  ;;  %v774_v51 = vshrl.u32 %v8325_v61, 16  ;;  %v8381_v50 = vpack.c.bf16 %v1755_v32, %v1754_v55 }
  0xf3   : > { %v1874_v7 = vrot.slane %v10210_v58, 3  ;;  %v8374_v58 = vsel %vm865_vm2, %v896_v48, %v897_v28  ;;  %v8383_v6 = vpack.c.bf16 %v1757_v34, %v1756_v42  ;;  %v1285_v17 = vsel %vm1283_vm5, %v1252_v15, %v8297_v44  ;;  %v10214_v42 = vld [vmem:[#allocation13_spill] sm:$0xff] }
  0xf4   : > { %969 = vrot.lane.b32.xlu1 %v8264_v33, %s6958_s27  ;;  %v1877_v56 = vrot.slane %v10211_v37, 4  ;;  %v1870_v37 = vor.u32 %v1869_v53, %v1866_v21  ;;  %v778_v28 = vrot.slane %v776_v47, 1  ;;  %v781_v63 = vshll.u32 %v8349_v31, 16 }
  0xf5   : > { %967 = vrot.lane.b32.xlu0 %v8096_v9, %s6958_s27  ;;  %v1120_v1 = vpop.permute.xlu1 %1119  ;;  %v1254_v21 = vsel %vm1250_vm10, %v1221_v12, %v8249_v36  ;;  %v1318_v53 = vsel %vm1316_vm11, %v1285_v17, %v1034_v29  ;;  %v3870_v55 = vrot.slane %v8381_v50, 4  ;;  %v3871_v32 = vrot.slane %v8383_v6, 4 }
  0xf6   : > { %6198 = vmatmul.mubr.msk.bf16.gmra.mrb[0].mxu1 %vm1283_vm5, %v8343_v5  ;;  %v1118_v9 = vpop.permute.xlu0 %1117  ;;  %v1878_v48 = vor.u32 %v1877_v56, %v1874_v7  ;;  %v1351_v15 = vsel %vm1349_vm12, %v1318_v53, %v1071_v16  ;;  %v10212_v60 = vshrl.u32 %v7545_v30, 16  ;;  %v10213_v29 = vshll.u32 %v7545_v30, 16 }
  0xf7   : > { %6205 = vmatprep.mubr.msk.bf16.mxu1 %vm1283_vm5, %v8346_v18  ;;  %v1384_v56 = vsel %vm1382_vm13, %v1351_v15, %v1118_v9  ;;  %v8408_v12 = vsel %vm1517_vm6, %v3870_v55, %v3871_v32  ;;  %v1287_v16 = vsel %vm1283_vm5, %v1254_v21, %v8286_v4  ;;  %v10216_v30 = vshll.u32 %v10214_v42, 16  ;;  %v6665_v15 = vld [vmem:[%s9994_s2 + $0x78] sm:$0xff]  }
  0xf8   : > { %1016 = vrot.lane.b32.xlu1 %v8367_v59, %s6961_s15  ;;  %v1900_v7 = vrot.slane %v10212_v60, 3  ;;  %v1903_v47 = vrot.slane %v10213_v29, 4  ;;  %v8416_v9 = vsel %vm1794_vm4, %v1870_v37, %v1878_v48  ;;  %v1320_v55 = vsel %vm1316_vm11, %v1287_v16, %v8318_v23  ;;  %v8473_v16 = vld [vmem:[%s7047_s20 + $0x90] sm:$0xff]  }
  0xf9   : > { %1014 = vrot.lane.b32.xlu0 %v8229_v57, %s6961_s15  ;;  %v8398_v44 = vpop.permute.xlu1 %837  ;;  %v10215_v57 = vshrl.u32 %v10214_v42, 16  ;;  %v1911_v53 = vrot.slane %v10216_v30, 4  ;;  %v779_v4 = vor.u32 %v778_v28, %v774_v51  ;;  %v783_v21 = vrot.slane %v781_v63, 1  ;;  %v8444_v51 = vld [vmem:[%s9994_s2 + $0x80] sm:$0xff]  }
  0xfa   : > { %v1153_v36 = vpop.permute.xlu0 %1152  ;;  %v1353_v37 = vsel %vm1349_vm12, %v1320_v55, %v8332_v39  ;;  %v1904_v23 = vor.u32 %v1903_v47, %v1900_v7  ;;  %v10217_v63 = vshrl.u32 %v7578_v62, 16  ;;  %v10220_v47 = vshrl.u32 %v7597_v13, 16  ;;  %v6660_v55 = vld [vmem:[%s7047_s20 + $0x98] ss:$0 sps:$4 sm:$0x11]  }
  0xfb   : > { %v1908_v34 = vrot.slane %v10215_v57, 3  ;;  %v1417_v17 = vsel %vm1415_vm14, %v1384_v56, %v1153_v36  ;;  %v1386_v32 = vsel %vm1382_vm13, %v1353_v37, %v1120_v1  ;;  %v10219_v36 = vshll.u32 %v7578_v62, 16 }
  0xfc   : > { %1051 = vrot.lane.b32.xlu1 %v8374_v58, %s6962_s16  ;;  %5953 = vmatprep.mubr.msk.bf16.mxu0 %vm1484_vm15, %v1417_v17  ;;  %v1934_v7 = vrot.slane %v10217_v63, 3  ;;  %v1942_v42 = vrot.slane %v10220_v47, 3  ;;  %v10221_v57 = vshll.u32 %v7597_v13, 16  ;;  %v899_v62 = vrot.slane %v8325_v61, 1 }
  0xfd   : > { %1049 = vrot.lane.b32.xlu0 %v8278_v14, %s6962_s16  ;;  %v8432_v48 = vpop.permute.xlu1 %839  ;;  %v1912_v39 = vor.u32 %v1911_v53, %v1908_v34  ;;  %v1937_v29 = vrot.slane %v10219_v36, 4  ;;  %v900_v30 = vrot.slane %v8349_v31, 1 }
  0xfe   : > { %6206 = vmatmul.mubr.msk.bf16.vlgmr.msra.gmra.mrb[4].mxu1 %vm1283_vm5, %v8069_v22  ;;  %v1155_v60 = vpop.permute.xlu0 %1154  ;;  %v1945_v34 = vrot.slane %v10221_v57, 4 }
  0xff   : > { %6209 = vmatprep.mubr.msk.bf16.mxu1 %vm1283_vm5, %v8416_v9  ;;  %6238 = vmatpush3.bf16.msra.mxu1 %v7975_v19  ;;  %v1419_v14 = vsel %vm1415_vm14, %v1386_v32, %v1155_v60  ;;  %v8450_v19 = vsel %vm640_vm3, %v779_v4, %v783_v21  ;;  %v8461_v56 = vsel %vm1794_vm4, %v1904_v23, %v1912_v39  ;;  %v788_v4 = vshll.u32 %v8473_v16, 16 }
 0x100   : > { %1088 = vrot.lane.b32.xlu1 %v8325_v61, %s6963_s18  ;;  %6239 = vmatprep.subr.bf16.mxu1 %v6665_v15  ;;  %10218 = vst [vmem:[#allocation13_spill] sm:$0xff] %v8461_v56  ;;  %v1938_v13 = vor.u32 %v1937_v29, %v1934_v7  ;;  %v8492_v37 = vsel %vm865_vm2, %v899_v62, %v900_v30  ;;  %v10222_v32 = vshrl.u32 %v7649_v45, 16  ;;  %v10225_v39 = vshrl.u32 %v7657_v40, 16 }
 0x101   : > { %1086 = vrot.lane.b32.xlu0 %v8264_v33, %s6963_s18  ;;  %5954 = vmatmul.mubr.msk.bf16.vlgmr.msra.gmra.mrb[0].mxu0 %vm1484_vm15, %v1419_v14  ;;  %v8452_v1 = vpop.permute.xlu1 %920  ;;  %v10224_v14 = vshll.u32 %v7649_v45, 16  ;;  %v10226_v7 = vshll.u32 %v7657_v40, 16  ;;  %v786_v29 = vshrl.u32 %v8473_v16, 16  ;;  %v790_v47 = vrot.slane %v788_v4, 1 }
 0x102   : > { %v8454_v28 = vpop.permute.xlu0 %918  ;;  %v1968_v60 = vrot.slane %v10222_v32, 3  ;;  %v1976_v63 = vrot.slane %v10225_v39, 3  ;;  %v10227_v32 = vshrl.u32 %v7715_v43, 16  ;;  %v10228_v39 = vshll.u32 %v7715_v43, 16 }
 0x103   : > { %6240 = vmatpush3.bf16.msra.mxu1 %v6665_v15  ;;  %v1946_v15 = vor.u32 %v1945_v34, %v1942_v42  ;;  %v1971_v23 = vrot.slane %v10224_v14, 4  ;;  %v1979_v36 = vrot.slane %v10226_v7, 4  ;;  %v793_v42 = vshll.u32 %v6660_v55, 16 }
 0x104   : > { %1135 = vrot.lane.b32.xlu1 %v8450_v19, %s6964_s19  ;;  %6273 = vmatprep.subr.bf16.mxu1 %v8444_v51  ;;  %v791_v62 = vor.u32 %v790_v47, %v786_v29  ;;  %v2002_v14 = vrot.slane %v10227_v32, 3  ;;  %v2005_v7 = vrot.slane %v10228_v39, 4  ;;  %v902_v29 = vrot.slane %v8473_v16, 1  ;;  %v8544_v32 = vld [vmem:[%s7047_s20 + $0xa4] ss:$0 sps:$4 sm:$0x11]  }
 0x105   : > { %1133 = vrot.lane.b32.xlu0 %v8367_v59, %s6964_s19  ;;  %v8477_v17 = vpop.permute.xlu1 %957  ;;  %v1972_v40 = vor.u32 %v1971_v23, %v1968_v60  ;;  %v1980_v34 = vor.u32 %v1979_v36, %v1976_v63  ;;  %v795_v30 = vrot.slane %v793_v42, 1  ;;  %v10229_v60 = vshrl.u32 %v7721_v54, 16  ;;  %v6875_v42 = vld [vmem:[%s7047_s20 + $0x18] sm:$0xff]  }
 0x106   : > { %6210 = vmatmul.mubr.msk.bf16.gmra.mrb[8].mxu1 %vm1283_vm5, %v8136_v35  ;;  %v956_v53 = vpop.permute.xlu0 %955  ;;  %v10230_v63 = vshll.u32 %v7721_v54, 16  ;;  %v903_v47 = vrot.slane %v6660_v55, 1  ;;  %v1190_v43 = vsel %vm1184_vm8, %v6875_v42, %v8398_v44  ;;  %v6876_v42 = vld [vmem:[%s7047_s20 + $0x24] sm:$0xff]  }
 0x107   : > { %6213 = vmatprep.mubr.msk.bf16.mxu1 %vm1283_vm5, %v8461_v56  ;;  %v2010_v23 = vrot.slane %v10229_v60, 3  ;;  %v8541_v54 = vsel %vm640_vm3, %v791_v62, %v795_v30  ;;  %v2006_v60 = vor.u32 %v2005_v7, %v2002_v14 }
 0x108   : > { %853 = vrot.lane.b32.xlu1 %v8367_v59, %s6960_s12  ;;  %v8499_v59 = vsel %vm1794_vm4, %v1938_v13, %v1946_v15  ;;  %v8519_v13 = vld [vmem:[%s7047_s20 + $0x9c] sm:$0xff]   ;;  %v2013_v36 = vrot.slane %v10230_v63, 4  ;;  %v8558_v63 = vsel %vm865_vm2, %v902_v29, %v903_v47  ;;  %v2036_v29 = vrot.slane %v2034_v46, 3 }
 0x109   : > { %1168 = vrot.lane.b32.xlu0 %v8374_v58, %s6965_s21  ;;  %v8489_v21 = vpop.permute.xlu1 %1004  ;;  %10223 = vst [vmem:[#allocation38_spill] sm:$0xff] %v8499_v59  ;;  %v800_v39 = vshll.u32 %v8519_v13, 16  ;;  %v10234_v46 = vshrl.u32 %v7761_v52, 16 }
 0x10a   : > { %v1003_v31 = vpop.permute.xlu0 %1002  ;;  %v2014_v62 = vor.u32 %v2013_v36, %v2010_v23 }
 0x10b   : > { %v802_v14 = vrot.slane %v800_v39, 1  ;;  %v10233_v39 = vshll.u32 %v7759_v3, 16 }
 0x10c   : > { %855 = vrot.lane.b32.xlu1 %v8450_v19, %s6960_s12 }
 0x10d   : > { %1170 = vrot.lane.b32.xlu0 %v8492_v37, %s6965_s21  ;;  %v1040_v57 = vpop.permute.xlu1 %1039 }
 0x10e   : > { %6214 = vmatmul.mubr.msk.bf16.gmra.mrb[12].mxu1 %vm1283_vm5, %v8174_v11  ;;  %v1038_v45 = vpop.permute.xlu0 %1037 }
 0x10f   : > { %6217 = vmatprep.mubr.msk.bf16.mxu1 %vm1283_vm5, %v8499_v59  ;;  %v10247_v59 = vld [vmem:[#allocation20_spill] sm:$0xff] }
 0x110   : > { %936 = vrot.lane.b32.xlu1 %v8492_v37, %s6959_s10 }
 0x111   : > { %934 = vrot.lane.b32.xlu0 %v8374_v58, %s6959_s10  ;;  %v1077_v15 = vpop.permute.xlu1 %1076  ;;  %v8532_v58 = vsel %vm1794_vm4, %v1972_v40, %v1980_v34  ;;  %v1223_v40 = vsel %vm1217_vm9, %v1190_v43, %v8454_v28  ;;  %v798_v28 = vshrl.u32 %v8519_v13, 16 }
 0x112   : > { %v1075_v4 = vpop.permute.xlu0 %1074  ;;  %10231 = vst [vmem:[#allocation39_spill] sm:$0xff] %v8532_v58  ;;  %v1256_v44 = vsel %vm1250_vm10, %v1223_v40, %v956_v53  ;;  %v1192_v53 = vsel %vm1184_vm8, %v6876_v42, %v8432_v48  ;;  %v2039_v40 = vrot.slane %v10233_v39, 4  ;;  %v10075_v39 = vshrl.u32 %v8383_v6, 16 }
 0x113   : > { %v1289_v30 = vsel %vm1283_vm5, %v1256_v44, %v1003_v31  ;;  %v805_v31 = vshll.u32 %v8544_v32, 16  ;;  %v1225_v7 = vsel %vm1217_vm9, %v1192_v53, %v8452_v1  ;;  %v10235_v44 = vshll.u32 %v7761_v52, 16 }
 0x114   : > { %973 = vrot.lane.b32.xlu1 %v8473_v16, %s6958_s27  ;;  %v1322_v43 = vsel %vm1316_vm11, %v1289_v30, %v1038_v45  ;;  %v1258_v48 = vsel %vm1250_vm10, %v1225_v7, %v8477_v17  ;;  %v2044_v17 = vrot.slane %v10234_v46, 3  ;;  %v803_v3 = vor.u32 %v802_v14, %v798_v28  ;;  %v6675_v14 = vld [vmem:[%s9994_s2 + $0x10] sm:$0xff]  }
 0x115   : > { %971 = vrot.lane.b32.xlu0 %v8325_v61, %s6958_s27  ;;  %v1124_v55 = vpop.permute.xlu1 %1123  ;;  %v1355_v23 = vsel %vm1349_vm12, %v1322_v43, %v1075_v4  ;;  %v1291_v1 = vsel %vm1283_vm5, %v1258_v48, %v8489_v21  ;;  %v807_v21 = vrot.slane %v805_v31, 1  ;;  %v8626_v31 = vld [vmem:[%s7047_s20 + $0xa8] sm:$0xff]   ;;  %5985 = vmatprep.subr.bf16.mxu0 %v6675_v14 }
 0x116   : > { %6218 = vmatmul.mubr.msk.bf16.gmra.mrb[16].mxu1 %vm1283_vm5, %v8201_v27  ;;  %v1122_v34 = vpop.permute.xlu0 %1121  ;;  %5986 = vmatpush3.bf16.msra.mxu0 %v6675_v14 }
 0x117   : > { %6221 = vmatprep.mubr.msk.bf16.mxu1 %vm1283_vm5, %v8532_v58  ;;  %v1388_v45 = vsel %vm1382_vm13, %v1355_v23, %v1122_v34  ;;  %v2047_v34 = vrot.slane %v10235_v44, 4  ;;  %v905_v23 = vrot.slane %v8519_v13, 1 }
 0x118   : > { %1020 = vrot.lane.b32.xlu1 %v8541_v54, %s6961_s15 }
 0x119   : > { %1018 = vrot.lane.b32.xlu0 %v8450_v19, %s6961_s15  ;;  %v8571_v36 = vpop.permute.xlu1 %841  ;;  %v8579_v19 = vsel %vm1794_vm4, %v2006_v60, %v2014_v62  ;;  %v1324_v60 = vsel %vm1316_vm11, %v1291_v1, %v1040_v57  ;;  %v2040_v57 = vor.u32 %v2039_v40, %v2036_v29  ;;  %v2048_v28 = vor.u32 %v2047_v34, %v2044_v17 }
 0x11a   : > { %v1157_v47 = vpop.permute.xlu0 %1156  ;;  %10232 = vst [vmem:[#allocation40_spill] sm:$0xff] %v8579_v19  ;;  %v1357_v62 = vsel %vm1349_vm12, %v1324_v60, %v1077_v15  ;;  %v8611_v15 = vsel %vm640_vm3, %v803_v3, %v807_v21  ;;  %v906_v29 = vrot.slane %v8544_v32, 1  ;;  %v10074_v40 = vshll.u32 %v8383_v6, 16  ;;  %v6666_v32 = vld [vmem:[%s7047_s20 + $0xb0] ss:$0 sps:$4 sm:$0x11]  }
 0x11b   : > { %v1421_v4 = vsel %vm1415_vm14, %v1388_v45, %v1157_v47  ;;  %v1390_v42 = vsel %vm1382_vm13, %v1357_v62, %v1124_v55  ;;  %v8618_v43 = vsel %vm1794_vm4, %v2040_v57, %v2048_v28  ;;  %v10077_v45 = vshrl.u32 %v8381_v50, 16  ;;  %v10238_v57 = vld [vmem:[#allocation8_spill] sm:$0xff] }
 0x11c   : > { %1055 = vrot.lane.b32.xlu1 %v8558_v63, %s6962_s16  ;;  %5957 = vmatprep.mubr.msk.bf16.mxu0 %vm1484_vm15, %v1421_v4  ;;  %10236 = vst [vmem:[#allocation41_spill] sm:$0xff] %v8618_v43  ;;  %v10076_v47 = vshll.u32 %v8381_v50, 16  ;;  %v812_v1 = vshll.u32 %v8626_v31, 16  ;;  %v907_v46 = vsel %vm865_vm2, %v905_v23, %v906_v29  ;;  %v3649_v60 = vrot.slane %v10075_v39, 3 }
 0x11d   : > { %1053 = vrot.lane.b32.xlu0 %v8492_v37, %s6962_s16  ;;  %v8599_v30 = vpop.permute.xlu1 %843  ;;  %v3641_v44 = vrot.slane %v10077_v45, 3  ;;  %v810_v3 = vshrl.u32 %v8626_v31, 16  ;;  %v817_v62 = vshll.u32 %v6666_v32, 16 }
 0x11e   : > { %6222 = vmatmul.mubr.msk.bf16.gmra.mrb[20].mxu1 %vm1283_vm5, %v8245_v2  ;;  %v1159_v52 = vpop.permute.xlu0 %1158  ;;  %v3644_v34 = vrot.slane %v10076_v47, 4  ;;  %v814_v21 = vrot.slane %v812_v1, 1  ;;  %v8667_v1 = vld [vmem:[%s7047_s20 + $0xb4] sm:$0xff]  }
 0x11f   : > { %6225 = vmatprep.mubr.msk.bf16.mxu1 %vm1283_vm5, %v8579_v19  ;;  %v1423_v37 = vsel %vm1415_vm14, %v1390_v42, %v1159_v52  ;;  %v10237_v42 = vld [vmem:[#allocation6_spill] sm:$0xff]  ;;  %v819_v29 = vrot.slane %v817_v62, 1  ;;  %v10246_v19 = vld [vmem:[#allocation19_spill] sm:$0xff] }
 0x120   : > { %1092 = vrot.lane.b32.xlu1 %v8519_v13, %s6963_s18  ;;  %5958 = vmatmul.mubr.msk.bf16.gmra.mrb[4].mxu0 %vm1484_vm15, %v1423_v37  ;;  %v3645_v28 = vor.u32 %v3644_v34, %v3641_v44  ;;  %v815_v23 = vor.u32 %v814_v21, %v810_v3  ;;  %v908_v44 = vrot.slane %v8626_v31, 1  ;;  %v909_v34 = vrot.slane %v6666_v32, 1  ;;  %v8680_v3 = vld [vmem:[%s7047_s20 + $0xbc] ss:$0 sps:$4 sm:$0x11]  }
 0x121   : > { %1090 = vrot.lane.b32.xlu0 %v8473_v16, %s6963_s18  ;;  %v8613_v55 = vpop.permute.xlu1 %924  ;;  %v824_v21 = vshll.u32 %v8667_v1, 16 }
 0x122   : > { %v923_v53 = vpop.permute.xlu0 %922 }
 0x124   : > { %1139 = vrot.lane.b32.xlu1 %v8611_v15, %s6964_s19 }
 0x125   : > { %1137 = vrot.lane.b32.xlu0 %v8541_v54, %s6964_s19  ;;  %v8630_v7 = vpop.permute.xlu1 %961 }
 0x126   : > { %6226 = vmatmul.mubr.msk.bf16.gmra.mrb[24].mxu1 %vm1283_vm5, %v8273_v8  ;;  %v960_v48 = vpop.permute.xlu0 %959 }
 0x127   : > { %6229 = vmatprep.mubr.msk.bf16.mxu1 %vm1283_vm5, %v8618_v43  ;;  %v6879_v43 = vld [vmem:[%s7047_s20 + $0x48] sm:$0xff]  }
 0x128   : > { %857 = vrot.lane.b32.xlu1 %v8541_v54, %s6960_s12  ;;  %v3652_v54 = vrot.slane %v10074_v40, 4 }
 0x129   : > { %1172 = vrot.lane.b32.xlu0 %v8558_v63, %s6965_s21  ;;  %v1009_v4 = vpop.permute.xlu1 %1008 }
 0x12a   : > { %v1007_v17 = vpop.permute.xlu0 %1006  ;;  %v3653_v14 = vor.u32 %v3652_v54, %v3649_v60  ;;  %v6877_v60 = vld [vmem:[%s7047_s20 + $0x30] sm:$0xff]  }
 0x12b   : > { %v1194_v54 = vsel %vm1184_vm8, %v6877_v60, %v8571_v36  ;;  %v6878_v60 = vld [vmem:[%s7047_s20 + $0x3c] sm:$0xff]  }
 0x12c   : > { %859 = vrot.lane.b32.xlu1 %v8611_v15, %s6960_s12  ;;  %v3654_v47 = vsel %vm1794_vm4, %v3645_v28, %v3653_v14  ;;  %v1227_v62 = vsel %vm1217_vm9, %v1194_v54, %v923_v53  ;;  %v10239_v14 = vld [vmem:[#allocation10_spill] sm:$0xff]  ;;  %v1196_v53 = vsel %vm1184_vm8, %v6878_v60, %v8599_v30  ;;  %v829_v54 = vshll.u32 %v8680_v3, 16 }
 0x12d   : > { %1174 = vrot.lane.b32.xlu0 %v907_v46, %s6965_s21  ;;  %v1044_v52 = vpop.permute.xlu1 %1043  ;;  %v1260_v32 = vsel %vm1250_vm10, %v1227_v62, %v960_v48  ;;  %v826_v48 = vrot.slane %v824_v21, 1 }
 0x12e   : > { %6230 = vmatmul.mubr.msk.bf16.gmra.mrb[28].mxu1 %vm1283_vm5, %v10237_v42  ;;  %v1042_v37 = vpop.permute.xlu0 %1041  ;;  %v1293_v36 = vsel %vm1283_vm5, %v1260_v32, %v1007_v17  ;;  %v1229_v17 = vsel %vm1217_vm9, %v1196_v53, %v8613_v55  ;;  %v6674_v55 = vld [vmem:[%s9994_s2 + $0x88] sm:$0xff]   ;;  %v831_v21 = vrot.slane %v829_v54, 1  ;;  %v6672_v42 = vld [vmem:[%s7047_s20 + $0xd4] ss:$0 sps:$4 sm:$0x11]  }
 0x12f   : > { %6233 = vmatprep.mubr.msk.bf16.mxu1 %vm1283_vm5, %v10238_v57  ;;  %v1262_v62 = vsel %vm1250_vm10, %v1229_v17, %v8630_v7  ;;  %v911_v17 = vrot.slane %v8667_v1, 1 }
 0x130   : > { %940 = vrot.lane.b32.xlu1 %v907_v46, %s6959_s10 }
 0x131   : > { %938 = vrot.lane.b32.xlu0 %v8558_v63, %s6959_s10  ;;  %v820_v63 = vsel %vm640_vm3, %v815_v23, %v819_v29  ;;  %v8691_v23 = vsel %vm865_vm2, %v908_v44, %v909_v34  ;;  %v822_v29 = vshrl.u32 %v8667_v1, 16 }
 0x132   : > { %v1081_v40 = vpop.permute.xlu1 %1080 }
 0x133   : > { %v1079_v39 = vpop.permute.xlu0 %1078  ;;  %v827_v7 = vor.u32 %v826_v48, %v822_v29  ;;  %v8743_v29 = vld [vmem:[%s7047_s20 + $0xc0] sm:$0xff]   ;;  %v10242_v48 = vld [vmem:[#allocation14_spill] sm:$0xff] }
 0x134   : > { %977 = vrot.lane.b32.xlu1 %v8626_v31, %s6958_s27  ;;  %v1030_v45 = vrot.slane %v8743_v29, 1 }
 0x135   : > { %975 = vrot.lane.b32.xlu0 %v8519_v13, %s6958_s27 }
 0x136   : > { %6234 = vmatmul.mubr.msk.bf16.gmra.mrb[0].mxu1 %vm1283_vm5, %v3654_v47  ;;  %v1128_v57 = vpop.permute.xlu1 %1127  ;;  %v1326_v47 = vsel %vm1316_vm11, %v1293_v36, %v1042_v37  ;;  %v1295_v37 = vsel %vm1283_vm5, %v1262_v62, %v1009_v4  ;;  %v10240_v4 = vld [vmem:[#allocation11_spill] sm:$0xff] }
 0x137   : > { %v1126_v28 = vpop.permute.xlu0 %1125  ;;  %6241 = vmatprep.mubr.msk.bf16.mxu1 %vm1283_vm5, %v10239_v14  ;;  %v1359_v44 = vsel %vm1349_vm12, %v1326_v47, %v1079_v39  ;;  %v1328_v39 = vsel %vm1316_vm11, %v1295_v37, %v1044_v52  ;;  %v10241_v47 = vld [vmem:[#allocation12_spill] sm:$0xff]  ;;  %v989_v37 = vshll.u32 %v8743_v29, 16 }
 0x138   : > { %1024 = vrot.lane.b32.xlu1 %v820_v63, %s6961_s15  ;;  %v1392_v30 = vsel %vm1382_vm13, %v1359_v44, %v1126_v28  ;;  %v1361_v28 = vsel %vm1349_vm12, %v1328_v39, %v1081_v40  ;;  %v832_v40 = vsel %vm640_vm3, %v827_v7, %v831_v21  ;;  %v912_v44 = vrot.slane %v8680_v3, 1  ;;  %v10244_v21 = vld [vmem:[#allocation16_spill] sm:$0xff] }
 0x139   : > { %1022 = vrot.lane.b32.xlu0 %v8611_v15, %s6961_s15  ;;  %v1394_v60 = vsel %vm1382_vm13, %v1361_v28, %v1128_v57  ;;  %v987_v3 = vshrl.u32 %v8743_v29, 16  ;;  %v991_v7 = vrot.slane %v989_v37, 1 }
 0x13a   : > { %v8704_v34 = vpop.permute.xlu1 %845 }
 0x13b   : > { %v1161_v32 = vpop.permute.xlu0 %1160  ;;  %v1198_v8 = vsel %vm1184_vm8, %v6879_v43, %v8704_v34 }
 0x13c   : > { %v1425_v15 = vsel %vm1415_vm14, %v1392_v30, %v1161_v32  ;;  %1059 = vrot.lane.b32.xlu1 %v8691_v23, %s6962_s16  ;;  %v10243_v30 = vld [vmem:[#allocation15_spill] sm:$0xff]  ;;  %v6670_v32 = vld [vmem:[%s7047_s20 + $0xc8] ss:$0 sps:$4 sm:$0x11]  }
 0x13d   : > { %1057 = vrot.lane.b32.xlu0 %v907_v46, %s6962_s16  ;;  %5961 = vmatprep.mubr.msk.bf16.mxu0 %vm1484_vm15, %v1425_v15 }
 0x13e   : > { %6242 = vmatmul.mubr.msk.bf16.vlgmr.msra.gmra.mrb[4].mxu1 %vm1283_vm5, %v10240_v4  ;;  %v8722_v36 = vpop.permute.xlu1 %847 }
 0x13f   : > { %v1163_v53 = vpop.permute.xlu0 %1162  ;;  %6245 = vmatprep.mubr.msk.bf16.mxu1 %vm1283_vm5, %v10241_v47  ;;  %6274 = vmatpush3.bf16.msra.mxu1 %v8444_v51  ;;  %v6676_v51 = vld [vmem:[%s9994_s2 + $0x18] sm:$0xff]  }
 0x140   : > { %v1427_v46 = vsel %vm1415_vm14, %v1394_v60, %v1163_v53  ;;  %1096 = vrot.lane.b32.xlu1 %v8667_v1, %s6963_s18  ;;  %6275 = vmatprep.subr.bf16.mxu1 %v6674_v55  ;;  %v10245_v53 = vld [vmem:[#allocation18_spill] sm:$0xff] }
 0x141   : > { %1094 = vrot.lane.b32.xlu0 %v8626_v31, %s6963_s18  ;;  %5962 = vmatmul.mubr.msk.bf16.gmra.mrb[8].mxu0 %vm1484_vm15, %v1427_v46  ;;  %v992_v46 = vor.u32 %v991_v7, %v987_v3  ;;  %v1031_v3 = vrot.slane %v6670_v32, 1 }
 0x142   : > { %v8735_v52 = vpop.permute.xlu1 %928  ;;  %5987 = vmatprep.subr.bf16.mxu0 %v6676_v51 }
 0x143   : > { %v927_v57 = vpop.permute.xlu0 %926  ;;  %6276 = vmatpush3.bf16.msra.mxu1 %v6674_v55  ;;  %5988 = vmatpush3.bf16.msra.mxu0 %v6676_v51  ;;  %v913_v55 = vsel %vm865_vm2, %v911_v17, %v912_v44  ;;  %v8768_v17 = vld [vmem:[%s7047_s20 + $0xcc] sm:$0xff]  }
 0x144   : > { %1143 = vrot.lane.b32.xlu1 %v832_v40, %s6964_s19  ;;  %v1108_v7 = vshll.u32 %v8768_v17, 16  ;;  %v1106_v34 = vshrl.u32 %v8768_v17, 16 }
 0x145   : > { %1141 = vrot.lane.b32.xlu0 %v820_v63, %s6964_s19 }
 0x146   : > { %6246 = vmatmul.mubr.msk.bf16.gmra.mrb[8].mxu1 %vm1283_vm5, %v10242_v48  ;;  %v966_v54 = vpop.permute.xlu1 %965 }
 0x147   : > { %v964_v62 = vpop.permute.xlu0 %963  ;;  %6249 = vmatprep.mubr.msk.bf16.mxu1 %vm1283_vm5, %v10243_v30 }
 0x148   : > { %861 = vrot.lane.b32.xlu1 %v820_v63, %s6960_s12  ;;  %v994_v63 = vshll.u32 %v6670_v32, 16  ;;  %v1113_v32 = vshll.u32 %v6672_v42, 16 }
 0x149   : > { %1176 = vrot.lane.b32.xlu0 %v8691_v23, %s6965_s21 }
 0x14a   : > { %v1013_v15 = vpop.permute.xlu1 %1012  ;;  %v996_v51 = vrot.slane %v994_v63, 1  ;;  %v1231_v63 = vsel %vm1217_vm9, %v1198_v8, %v927_v57 }
 0x14b   : > { %v1011_v39 = vpop.permute.xlu0 %1010  ;;  %v1264_v58 = vsel %vm1250_vm10, %v1231_v63, %v964_v62  ;;  %v1032_v62 = vsel %vm865_vm2, %v1030_v45, %v1031_v3 }
 0x14c   : > { %863 = vrot.lane.b32.xlu1 %v832_v40, %s6960_s12  ;;  %v1297_v43 = vsel %vm1283_vm5, %v1264_v58, %v1011_v39 }
 0x14d   : > { %1178 = vrot.lane.b32.xlu0 %v913_v55, %s6965_s21 }
 0x14e   : > { %6250 = vmatmul.mubr.msk.bf16.gmra.mrb[12].mxu1 %vm1283_vm5, %v10244_v21  ;;  %v1048_v28 = vpop.permute.xlu1 %1047 }
 0x14f   : > { %v1046_v60 = vpop.permute.xlu0 %1045  ;;  %6253 = vmatprep.mubr.msk.bf16.mxu1 %vm1283_vm5, %v10245_v53 }
 0x150   : > { %944 = vrot.lane.b32.xlu1 %v913_v55, %s6959_s10  ;;  %v1330_v57 = vsel %vm1316_vm11, %v1297_v43, %v1046_v60 }
 0x151   : > { %942 = vrot.lane.b32.xlu0 %v8691_v23, %s6959_s10  ;;  %v997_v23 = vsel %vm640_vm3, %v992_v46, %v996_v51  ;;  %v6880_v46 = vld [vmem:[%s7047_s20 + $0x54] sm:$0xff]   ;;  %v1110_v51 = vrot.slane %v1108_v7, 1  ;;  %s6966_s10 = smov 96  }
 0x152   : > { %v1085_v44 = vpop.permute.xlu1 %1084  ;;  %v1200_v8 = vsel %vm1184_vm8, %v6880_v46, %v8722_v36  ;;  %v10251_v46 = vld [vmem:[#allocation24_spill] sm:$0xff] }
 0x153   : > { %v1083_v37 = vpop.permute.xlu0 %1082  ;;  %v1233_v63 = vsel %vm1217_vm9, %v1200_v8, %v8735_v52  ;;  %v1115_v52 = vrot.slane %v1113_v32, 1  ;;  %v10252_v8 = vld [vmem:[#allocation25_spill] sm:$0xff] }
 0x154   : > { %981 = vrot.lane.b32.xlu1 %v8743_v29, %s6958_s27  ;;  %v1363_v58 = vsel %vm1349_vm12, %v1330_v57, %v1083_v37  ;;  %v1266_v11 = vsel %vm1250_vm10, %v1233_v63, %v966_v54  ;;  %v10248_v54 = vld [vmem:[#allocation21_spill] sm:$0xff] }
 0x155   : > { %979 = vrot.lane.b32.xlu0 %v8667_v1, %s6958_s27  ;;  %v1299_v36 = vsel %vm1283_vm5, %v1266_v11, %v1013_v15  ;;  %v10253_v63 = vld [vmem:[#allocation17_spill] sm:$0xff] }
 0x156   : > { %6254 = vmatmul.mubr.msk.bf16.gmra.mrb[16].mxu1 %vm1283_vm5, %v10246_v19  ;;  %v1132_v2 = vpop.permute.xlu1 %1131  ;;  %v1332_v45 = vsel %vm1316_vm11, %v1299_v36, %v1048_v28  ;;  %v1149_v28 = vrot.slane %v8768_v17, 1 }
 0x157   : > { %v1130_v27 = vpop.permute.xlu0 %1129  ;;  %6257 = vmatprep.mubr.msk.bf16.mxu1 %vm1283_vm5, %v10247_v59  ;;  %v1365_v37 = vsel %vm1349_vm12, %v1332_v45, %v1085_v44  ;;  %v1150_v44 = vrot.slane %v6672_v42, 1  ;;  %v5724_v42 = vld [vmem:[%s9996_s4] ss:$0 sm:$0xff] }
 0x158   : > { %1028 = vrot.lane.b32.xlu1 %v997_v23, %s6961_s15  ;;  %v1396_v56 = vsel %vm1382_vm13, %v1363_v58, %v1130_v27  ;;  %v1398_v11 = vsel %vm1382_vm13, %v1365_v37, %v1132_v2 }
 0x159   : > { %1026 = vrot.lane.b32.xlu0 %v832_v40, %s6961_s15  ;;  %v1111_v40 = vor.u32 %v1110_v51, %v1106_v34  ;;  %v1151_v43 = vsel %vm865_vm2, %v1149_v28, %v1150_v44  ;;  %v10250_v34 = vld [vmem:[#allocation23_spill] sm:$0xff] }
 0x15a   : > { %v850_v39 = vpop.permute.xlu1 %849 }
 0x15b   : > { %v1165_v35 = vpop.permute.xlu0 %1164  ;;  %v1116_v2 = vsel %vm640_vm3, %v1111_v40, %v1115_v52 }
 0x15c   : > { %v1429_v60 = vsel %vm1415_vm14, %v1396_v56, %v1165_v35  ;;  %1063 = vrot.lane.b32.xlu1 %v1032_v62, %s6962_s16  ;;  %v10249_v35 = vld [vmem:[#allocation22_spill] sm:$0xff]  ;;  %v8816_v56 = vld [vmem:[%s9994_s2] sm:$0xff]  }
 0x15d   : > { %1061 = vrot.lane.b32.xlu0 %v913_v55, %s6962_s16  ;;  %5965 = vmatprep.mubr.msk.bf16.mxu0 %vm1484_vm15, %v1429_v60 }
 0x15e   : > { %6258 = vmatmul.mubr.msk.bf16.gmra.mrb[20].mxu1 %vm1283_vm5, %v10248_v54  ;;  %v852_v27 = vpop.permute.xlu1 %851  ;;  %6021 = vmatprep.subr.bf16.mxu0 %v8816_v56 }
 0x15f   : > { %v1167_v15 = vpop.permute.xlu0 %1166  ;;  %6261 = vmatprep.mubr.msk.bf16.mxu1 %vm1283_vm5, %v10249_v35 }
 0x160   : > { %v1431_v55 = vsel %vm1415_vm14, %v1398_v11, %v1167_v15  ;;  %1100 = vrot.lane.b32.xlu1 %v8768_v17, %s6963_s18  ;;  %v10254_v11 = vld [vmem:[#allocation27_spill] sm:$0xff] }
 0x161   : > { %1098 = vrot.lane.b32.xlu0 %v8743_v29, %s6963_s18  ;;  %5966 = vmatmul.mubr.msk.bf16.gmra.mrb[12].mxu0 %vm1484_vm15, %v1431_v55  ;;  %v6882_v55 = vld [vmem:[%s7047_s20 + $0x6c] sm:$0xff]  }
 0x162   : > { %v933_v3 = vpop.permute.xlu1 %932 }
 0x163   : > { %v931_v7 = vpop.permute.xlu0 %930 }
 0x164   : > { %1147 = vrot.lane.b32.xlu1 %v1116_v2, %s6964_s19  ;;  %v1204_v2 = vsel %vm1184_vm8, %v6882_v55, %v852_v27  ;;  %v10257_v55 = vld [vmem:[#allocation30_spill] sm:$0xff] }
 0x165   : > { %1145 = vrot.lane.b32.xlu0 %v997_v23, %s6964_s19 }
 0x166   : > { %6262 = vmatmul.mubr.msk.bf16.gmra.mrb[24].mxu1 %vm1283_vm5, %v10250_v34  ;;  %v970_v29 = vpop.permute.xlu1 %969 }
 0x167   : > { %v968_v32 = vpop.permute.xlu0 %967  ;;  %6265 = vmatprep.mubr.msk.bf16.mxu1 %vm1283_vm5, %v10251_v46 }
 0x168   : > { %1182 = vrot.lane.b32.xlu1 %v1151_v43, %s6965_s21 }
 0x169   : > { %1180 = vrot.lane.b32.xlu0 %v1032_v62, %s6965_s21  ;;  %v6881_v62 = vld [vmem:[%s7047_s20 + $0x60] sm:$0xff]  }
 0x16a   : > { %v1017_v17 = vpop.permute.xlu1 %1016  ;;  %v1202_v60 = vsel %vm1184_vm8, %v6881_v62, %v850_v39  ;;  %v1237_v39 = vsel %vm1217_vm9, %v1204_v2, %v933_v3 }
 0x16b   : > { %v1015_v23 = vpop.permute.xlu0 %1014  ;;  %v1235_v45 = vsel %vm1217_vm9, %v1202_v60, %v931_v7  ;;  %v10256_v60 = vld [vmem:[#allocation29_spill] sm:$0xff] }
 0x16c   : > { %4573 = vrot.lane.b32.xlu1 %v5724_v42, %s6965_s21  ;;  %v1268_v52 = vsel %vm1250_vm10, %v1235_v45, %v968_v32 }
 0x16d   : > { %v1301_v15 = vsel %vm1283_vm5, %v1268_v52, %v1015_v23 }
 0x16e   : > { %6266 = vmatmul.mubr.msk.bf16.gmra.mrb[28].mxu1 %vm1283_vm5, %v10252_v8  ;;  %v1052_v57 = vpop.permute.xlu1 %1051 }
 0x16f   : > { %v1050_v51 = vpop.permute.xlu0 %1049  ;;  %6269 = vmatprep.mubr.msk.bf16.mxu1 %vm1283_vm5, %v10253_v63 }
 0x170   : > { %v1334_v28 = vsel %vm1316_vm11, %v1301_v15, %v1050_v51  ;;  %v10255_v51 = vld [vmem:[#allocation28_spill] sm:$0xff] }
 0x172   : > { %v1089_v58 = vpop.permute.xlu1 %1088 }
 0x173   : > { %v1087_v36 = vpop.permute.xlu0 %1086 }
 0x174   : > { %v1367_v44 = vsel %vm1349_vm12, %v1334_v28, %v1087_v36 }
 0x176   : > { %6270 = vmatmul.mubr.msk.bf16.gmra.mrb[0].mxu1 %vm1283_vm5, %v8408_v12  ;;  %v1136_v40 = vpop.permute.xlu1 %1135  ;;  %v1270_v12 = vsel %vm1250_vm10, %v1237_v39, %v970_v29 }
 0x177   : > { %v1134_v37 = vpop.permute.xlu0 %1133  ;;  %6277 = vmatprep.mubr.msk.bf16.mxu1 %vm1283_vm5, %v10254_v11  ;;  %v1303_v42 = vsel %vm1283_vm5, %v1270_v12, %v1017_v17  ;;  %v10258_v12 = vld [vmem:[#allocation31_spill] sm:$0xff] }
 0x178   : > { %v1400_v43 = vsel %vm1382_vm13, %v1367_v44, %v1134_v37  ;;  %v1336_v23 = vsel %vm1316_vm11, %v1303_v42, %v1052_v57 }
 0x179   : > { %v1369_v27 = vsel %vm1349_vm12, %v1336_v23, %v1089_v58 }
 0x17a   : > { %v854_v7 = vpop.permute.xlu1 %853  ;;  %v1402_v36 = vsel %vm1382_vm13, %v1369_v27, %v1136_v40 }
 0x17b   : > { %v1169_v32 = vpop.permute.xlu0 %1168  ;;  %v1206_v39 = vsel %vm1184_vm8, %v8264_v33, %v854_v7  ;;  %v10259_v33 = vld [vmem:[#allocation5_spill] sm:$0xff] }
 0x17c   : > { %v1433_v63 = vsel %vm1415_vm14, %v1400_v43, %v1169_v32  ;;  %v10260_v7 = vshrl.u32 %v10259_v33, 16 }
 0x17d   : > { %5969 = vmatprep.mubr.msk.bf16.mxu0 %vm1484_vm15, %v1433_v63 }
 0x17e   : > { %6278 = vmatmul.mubr.msk.bf16.vlgmr.msra.gmra.mrb[4].mxu1 %vm1283_vm5, %v10255_v51  ;;  %v856_v3 = vpop.permute.xlu1 %855 }
 0x17f   : > { %v1171_v29 = vpop.permute.xlu0 %1170  ;;  %6281 = vmatprep.mubr.msk.bf16.mxu1 %vm1283_vm5, %v7980_v20  ;;  %v1208_v23 = vsel %vm1184_vm8, %v8325_v61, %v856_v3 }
 0x180   : > { %v1435_v17 = vsel %vm1415_vm14, %v1402_v36, %v1171_v29  ;;  %v1815_v36 = vrot.slane %v10260_v7, 3  ;;  %v10261_v29 = vshll.u32 %v10259_v33, 16 }
 0x181   : > { %5970 = vmatmul.mubr.msk.bf16.gmra.mrb[16].mxu0 %vm1484_vm15, %v1435_v17 }
 0x182   : > { %v937_v62 = vpop.permute.xlu1 %936  ;;  %v1818_v17 = vrot.slane %v10261_v29, 4 }
 0x183   : > { %v935_v57 = vpop.permute.xlu0 %934 }
 0x184   : > { %v1239_v44 = vsel %vm1217_vm9, %v1206_v39, %v935_v57  ;;  %v1241_v57 = vsel %vm1217_vm9, %v1208_v23, %v937_v62 }
 0x186   : > { %6282 = vmatmul.mubr.msk.bf16.gmra.mrb[8].mxu1 %vm1283_vm5, %v10256_v60  ;;  %v974_v58 = vpop.permute.xlu1 %973 }
 0x187   : > { %v972_v45 = vpop.permute.xlu0 %971  ;;  %6285 = vmatprep.mubr.msk.bf16.mxu1 %vm1283_vm5, %v8027_v10  ;;  %v1274_v61 = vsel %vm1250_vm10, %v1241_v57, %v974_v58 }
 0x188   : > { %v1272_v32 = vsel %vm1250_vm10, %v1239_v44, %v972_v45  ;;  %v10262_v44 = vld [vmem:[#allocation7_spill] sm:$0xff] }
 0x18a   : > { %v1021_v52 = vpop.permute.xlu1 %1020 }
 0x18b   : > { %v1019_v40 = vpop.permute.xlu0 %1018 }
 0x18c   : > { %v1305_v63 = vsel %vm1283_vm5, %v1272_v32, %v1019_v40  ;;  %v10264_v40 = vshll.u32 %v10262_v44, 16 }
 0x18e   : > { %6286 = vmatmul.mubr.msk.bf16.gmra.mrb[12].mxu1 %vm1283_vm5, %v8030_v25  ;;  %v1056_v37 = vpop.permute.xlu1 %1055  ;;  %v1826_v32 = vrot.slane %v10264_v40, 4  ;;  %v10267_v40 = vshrl.u32 %v8383_v6, 16 }
 0x18f   : > { %v1054_v15 = vpop.permute.xlu0 %1053  ;;  %6289 = vmatprep.mubr.msk.bf16.mxu1 %vm1283_vm5, %v10257_v55 }
 0x190   : > { %v1338_v27 = vsel %vm1316_vm11, %v1305_v63, %v1054_v15  ;;  %v1307_v63 = vsel %vm1283_vm5, %v1274_v61, %v1021_v52  ;;  %v10268_v61 = vshll.u32 %v8383_v6, 16 }
 0x191   : > { %v1340_v62 = vsel %vm1316_vm11, %v1307_v63, %v1056_v37 }
 0x192   : > { %v1093_v2 = vpop.permute.xlu1 %1092 }
 0x193   : > { %v1091_v28 = vpop.permute.xlu0 %1090 }
 0x194   : > { %v1371_v45 = vsel %vm1349_vm12, %v1338_v27, %v1091_v28  ;;  %v1373_v28 = vsel %vm1349_vm12, %v1340_v62, %v1093_v2 }
 0x196   : > { %6290 = vmatmul.mubr.msk.bf16.gmra.mrb[16].mxu1 %vm1283_vm5, %v10258_v12  ;;  %v1140_v43 = vpop.permute.xlu1 %1139 }
 0x197   : > { %v1138_v42 = vpop.permute.xlu0 %1137  ;;  %6293 = vmatprep.mubr.msk.bf16.mxu1 %vm1283_vm5, %v8181_v24  ;;  %v10263_v24 = vshrl.u32 %v10262_v44, 16  ;;  %v1406_v23 = vsel %vm1382_vm13, %v1373_v28, %v1140_v43 }
 0x198   : > { %v1404_v3 = vsel %vm1382_vm13, %v1371_v45, %v1138_v42  ;;  %v1819_v42 = vor.u32 %v1818_v17, %v1815_v36  ;;  %v10266_v45 = vshll.u32 %v8381_v50, 16 }
 0x199   : > { %v1823_v12 = vrot.slane %v10263_v24, 3 }
 0x19a   : > { %v858_v39 = vpop.permute.xlu1 %857  ;;  %v4087_v44 = vrot.slane %v10266_v45, 5 }
 0x19b   : > { %v1173_v15 = vpop.permute.xlu0 %1172  ;;  %v1827_v52 = vor.u32 %v1826_v32, %v1823_v12  ;;  %v10265_v12 = vshrl.u32 %v8381_v50, 16  ;;  %v4089_v32 = vrot.slane %v10267_v40, 4 }
 0x19c   : > { %v1437_v33 = vsel %vm1415_vm14, %v1404_v3, %v1173_v15  ;;  %v4090_v3 = vrot.slane %v10268_v61, 5 }
 0x19d   : > { %5973 = vmatprep.mubr.msk.bf16.mxu0 %vm1484_vm15, %v1437_v33  ;;  %v8917_v37 = vsel %vm1794_vm4, %v1819_v42, %v1827_v52  ;;  %v4086_v17 = vrot.slane %v10265_v12, 4 }
 0x19e   : > { %6294 = vmatmul.mubr.msk.bf16.gmra.mrb[20].mxu1 %vm1283_vm5, %v8194_v26  ;;  %v860_v24 = vpop.permute.xlu1 %859  ;;  %v4091_v62 = vor.u32 %v4090_v3, %v4089_v32 }
 0x19f   : > { %v1175_v58 = vpop.permute.xlu0 %1174  ;;  %6297 = vmatprep.mubr.msk.bf16.mxu1 %vm1283_vm5, %v8224_v49  ;;  %v4088_v33 = vor.u32 %v4087_v44, %v4086_v17 }
 0x1a0   : > { %v1439_v27 = vsel %vm1415_vm14, %v1406_v23, %v1175_v58  ;;  %v1210_v58 = vsel %vm1184_vm8, %v8473_v16, %v858_v39 }
 0x1a1   : > { %5974 = vmatmul.mubr.msk.bf16.gmra.mrb[20].mxu0 %vm1484_vm15, %v1439_v27  ;;  %v4092_v50 = vsel %vm2599_vm7, %v4088_v33, %v4091_v62 }
 0x1a2   : > { %v941_v2 = vpop.permute.xlu1 %940 }
 0x1a3   : > { %v939_v7 = vpop.permute.xlu0 %938 }
 0x1a4   : > { %v1243_v6 = vsel %vm1217_vm9, %v1210_v58, %v939_v7  ;;  %v1686_v58 = vld [vmem:[%s7373_s11] sm:$0xff] }
 0x1a6   : > { %6298 = vmatmul.mubr.msk.bf16.gmra.mrb[24].mxu1 %vm1283_vm5, %v8242_v0  ;;  %v978_v29 = vpop.permute.xlu1 %977 }
 0x1a7   : > { %v976_v43 = vpop.permute.xlu0 %975  ;;  %6301 = vmatprep.mubr.msk.bf16.mxu1 %vm1283_vm5, %v8289_v38 }
 0x1a8   : > { %v1276_v52 = vsel %vm1250_vm10, %v1243_v6, %v976_v43  ;;  %v1688_v6 = vld [vmem:[%s7373_s11 + $0x10] sm:$0xff] }
 0x1aa   : > { %v1025_v57 = vpop.permute.xlu1 %1024 }
 0x1ab   : > { %v1023_v36 = vpop.permute.xlu0 %1022 }
 0x1ac   : > { %v1309_v12 = vsel %vm1283_vm5, %v1276_v52, %v1023_v36  ;;  %v1689_v52 = vld [vmem:[%s7373_s11 + $0x18] sm:$0x1] }
 0x1ae   : > { %6302 = vmatmul.mubr.msk.bf16.gmra.mrb[28].mxu1 %vm1283_vm5, %v8310_v41  ;;  %v1060_v15 = vpop.permute.xlu1 %1059 }
 0x1af   : > { %v1058_v63 = vpop.permute.xlu0 %1057  ;;  %6305 = vmatprep.mubr.msk.bf16.mxu1 %vm1283_vm5, %v8343_v5  ;;  %v1212_v5 = vsel %vm1184_vm8, %v8519_v13, %v860_v24 }
 0x1b0   : > { %v1342_v17 = vsel %vm1316_vm11, %v1309_v12, %v1058_v63  ;;  %v1245_v45 = vsel %vm1217_vm9, %v1212_v5, %v941_v2 }
 0x1b1   : > { %v1278_v39 = vsel %vm1250_vm10, %v1245_v45, %v978_v29  ;;  %v8967_v45 = vpack.c.bf16 %v1689_v52, %v1688_v6 }
 0x1b2   : > { %v1097_v28 = vpop.permute.xlu1 %1096  ;;  %v1311_v43 = vsel %vm1283_vm5, %v1278_v39, %v1025_v57 }
 0x1b3   : > { %v1095_v23 = vpop.permute.xlu0 %1094  ;;  %v1344_v36 = vsel %vm1316_vm11, %v1311_v43, %v1060_v15 }
 0x1b4   : > { %v1375_v44 = vsel %vm1349_vm12, %v1342_v17, %v1095_v23  ;;  %v1377_v13 = vsel %vm1349_vm12, %v1344_v36, %v1097_v28  ;;  %v1687_v28 = vld [vmem:[%s7373_s11 + $0x8] sm:$0xff] }
 0x1b5   : > { %v8965_v17 = vpack.c.bf16 %v1687_v28, %v1686_v58 }
 0x1b6   : > { %6306 = vmatmul.mubr.msk.bf16.gmra.mrb[0].mxu1 %vm1283_vm5, %v4092_v50  ;;  %v1144_v42 = vpop.permute.xlu1 %1143 }
 0x1b7   : > { %v1142_v27 = vpop.permute.xlu0 %1141  ;;  %v1410_v2 = vsel %vm1382_vm13, %v1377_v13, %v1144_v42  ;;  %v1799_v52 = vshll.u32 %v8965_v17, 16 }
 0x1b8   : > { %v1408_v7 = vsel %vm1382_vm13, %v1375_v44, %v1142_v27 }
 0x1ba   : > { %v862_v16 = vpop.permute.xlu1 %861 }
 0x1bb   : > { %v1177_v40 = vpop.permute.xlu0 %1176  ;;  %v1214_v44 = vsel %vm1184_vm8, %v8626_v31, %v862_v16 }
 0x1bc   : > { %v1441_v32 = vsel %vm1415_vm14, %v1408_v7, %v1177_v40 }
 0x1bd   : > { %5977 = vmatprep.mubr.msk.bf16.mxu0 %vm1484_vm15, %v1441_v32 }
 0x1be   : > { %v864_v24 = vpop.permute.xlu1 %863 }
 0x1bf   : > { %v1179_v29 = vpop.permute.xlu0 %1178  ;;  %v1216_v42 = vsel %vm1184_vm8, %v8667_v1, %v864_v24 }
 0x1c0   : > { %v1443_v61 = vsel %vm1415_vm14, %v1410_v2, %v1179_v29  ;;  %v2104_v29 = vrot.slane %v8965_v17, 4 }
 0x1c1   : > { %5978 = vmatmul.mubr.msk.bf16.gmra.mrb[24].mxu0 %vm1484_vm15, %v1443_v61  ;;  %v2105_v61 = vrot.slane %v8967_v45, 4 }
 0x1c2   : > { %v945_v57 = vpop.permute.xlu1 %944 }
 0x1c3   : > { %v943_v3 = vpop.permute.xlu0 %942  ;;  %v1249_v39 = vsel %vm1217_vm9, %v1216_v42, %v945_v57  ;;  %v2106_v6 = vsel %vm1517_vm6, %v2104_v29, %v2105_v61  ;;  %v6680_v29 = vld [vmem:[%s9994_s2 + $0x28] sm:$0xff]  }
 0x1c4   : > { %v1247_v40 = vsel %vm1217_vm9, %v1214_v44, %v943_v3  ;;  %v2601_v44 = vrot.slane %v1799_v52, 5 }
 0x1c6   : > { %v982_v63 = vpop.permute.xlu1 %981 }
 0x1c7   : > { %v980_v15 = vpop.permute.xlu0 %979  ;;  %v1282_v43 = vsel %vm1250_vm10, %v1249_v39, %v982_v63 }
 0x1c8   : > { %v1280_v36 = vsel %vm1250_vm10, %v1247_v40, %v980_v15 }
 0x1ca   : > { %v1029_v33 = vpop.permute.xlu1 %1028 }
 0x1cb   : > { %v1027_v62 = vpop.permute.xlu0 %1026  ;;  %v1315_v13 = vsel %vm1283_vm5, %v1282_v43, %v1029_v33 }
 0x1cc   : > { %v1313_v31 = vsel %vm1283_vm5, %v1280_v36, %v1027_v62  ;;  %v6678_v36 = vld [vmem:[%s9994_s2 + $0x8] sm:$0xff]  }
 0x1ce   : > { %v1064_v23 = vpop.permute.xlu1 %1063 }
 0x1cf   : > { %v1062_v50 = vpop.permute.xlu0 %1061  ;;  %v1348_v16 = vsel %vm1316_vm11, %v1315_v13, %v1064_v23 }
 0x1d0   : > { %v1346_v57 = vsel %vm1316_vm11, %v1313_v31, %v1062_v50  ;;  %v1796_v50 = vshrl.u32 %v8965_v17, 16  ;;  %v10269_v17 = vld [vmem:[#allocation9_spill] sm:$0xff] }
 0x1d2   : > { %v1101_v27 = vpop.permute.xlu1 %1100  ;;  %v2600_v42 = vrot.slane %v1796_v50, 4 }
 0x1d3   : > { %v1099_v12 = vpop.permute.xlu0 %1098  ;;  %v1381_v3 = vsel %vm1349_vm12, %v1348_v16, %v1101_v27  ;;  %v1804_v27 = vshrl.u32 %v8967_v45, 16 }
 0x1d4   : > { %v8963_v5 = vpop.f32.mrb[0].mxu0  ;;  %v1379_v63 = vsel %vm1349_vm12, %v1346_v57, %v1099_v12  ;;  %v1807_v12 = vshll.u32 %v8967_v45, 16  ;;  %v2602_v43 = vor.u32 %v2601_v44, %v2600_v42  ;;  %v6679_v45 = vld [vmem:[%s9994_s2 + $0x20] sm:$0xff]   ;;  %v10273_v57 = vld [vmem:[#allocation32_spill] sm:$0xff] }
 0x1d5   : > { %v8972_v7 = vpop.f32.mrb[1].mxu0  ;;  %v2603_v39 = vrot.slane %v1804_v27, 4 }
 0x1d6   : > { %v8976_v32 = vpop.f32.mrb[2].mxu0  ;;  %v1148_v1 = vpop.permute.xlu1 %1147  ;;  %v2604_v40 = vrot.slane %v1807_v12, 5 }
 0x1d7   : > { %v8980_v24 = vpop.f32.mrb[3].mxu0  ;;  %v1146_v2 = vpop.permute.xlu0 %1145  ;;  %v1414_v15 = vsel %vm1382_vm13, %v1381_v3, %v1148_v1 }
 0x1d8   : > { %v1412_v58 = vsel %vm1382_vm13, %v1379_v63, %v1146_v2  ;;  %v2605_v1 = vor.u32 %v2604_v40, %v2603_v39  ;;  %v10275_v63 = vld [vmem:[#allocation13_spill] sm:$0xff] }
 0x1d9   : > { %v10285_v39 = vld [vmem:[#allocation37_spill] sm:$0xff] }
 0x1da   : > { %v1183_v33 = vpop.permute.xlu1 %1182  ;;  %v9005_v13 = vsel %vm2599_vm7, %v2602_v43, %v2605_v1  ;;  %v5725_v40 = vld [vmem:[%s9997_s5] ss:$0 sm:$0xff] }
 0x1db   : > { %v1447_v28 = vsel %vm1415_vm14, %v1414_v15, %v1183_v33  ;;  %v1181_v62 = vpop.permute.xlu0 %1180  ;;  %v10276_v15 = vld [vmem:[#allocation33_spill] sm:$0xff]  ;;  %v10277_v33 = vld [vmem:[#allocation38_spill] sm:$0xff]  ;;  %4613 = vrot.lane.b32.xlu0 %v5725_v40, %s6965_s21 }
 0x1dc   : > { %v1445_v23 = vsel %vm1415_vm14, %v1412_v58, %v1181_v62  ;;  %v10278_v58 = vld [vmem:[#allocation35_spill] sm:$0xff]  ;;  %v10280_v62 = vld [vmem:[#allocation36_spill] sm:$0xff]  ;;  %v10287_v1 = vld [vmem:[#allocation41_spill] sm:$0xff] }
 0x1dd   : > { %5981 = vmatprep.mubr.msk.bf16.mxu0 %vm1484_vm15, %v1445_v23  ;;  %v10281_v23 = vld [vmem:[#allocation40_spill] sm:$0xff] }
 0x1de   : > { %5982 = vmatmul.mubr.msk.bf16.gmra.mrb[28].mxu0 %vm1484_vm15, %v1447_v28  ;;  %v10279_v28 = vld [vmem:[#allocation39_spill] sm:$0xff] }
 0x1df   : > { %5989 = vmatprep.mubr.msk.bf16.mxu0 %vm1283_vm5, %v2106_v6 }
 0x1e6   : > { %5990 = vmatmul.mubr.msk.bf16.vlgmr.msra.gmra.mrb[32].mxu0 %vm1283_vm5, %v10269_v17 }
 0x1e7   : > { %6022 = vmatpush3.bf16.msra.mxu0 %v8816_v56  ;;  %5993 = vmatprep.mubr.msk.bf16.mxu0 %vm1283_vm5, %v10239_v14 }
 0x1e8   : > { %6023 = vmatprep.subr.bf16.mxu0 %v6678_v36 }
 0x1eb   : > { %6024 = vmatpush3.bf16.msra.mxu0 %v6678_v36 }
 0x1ec   : > { %6057 = vmatprep.subr.bf16.mxu0 %v6679_v45 }
 0x1ee   : > { %5994 = vmatmul.mubr.msk.bf16.gmra.mrb[36].mxu0 %vm1283_vm5, %v10240_v4 }
 0x1ef   : > { %5997 = vmatprep.mubr.msk.bf16.mxu0 %vm1283_vm5, %v10241_v47  ;;  %v1798_v47 = vrot.slane %v1796_v50, 3 }
 0x1f3   : > { %v9019_v2 = vpop.f32.mrb[4].mxu0 }
 0x1f4   : > { %v9021_v31 = vpop.f32.mrb[5].mxu0 }
 0x1f5   : > { %v9023_v56 = vpop.f32.mrb[6].mxu0 }
 0x1f6   : > { %5998 = vmatmul.mubr.msk.bf16.gmra.mrb[40].mxu0 %vm1283_vm5, %v10242_v48  ;;  %v9027_v14 = vpop.f32.mrb[7].mxu0  ;;  %v1801_v48 = vrot.slane %v1799_v52, 4 }
 0x1f7   : > { %6001 = vmatprep.mubr.msk.bf16.mxu0 %vm1283_vm5, %v10243_v30  ;;  %v1806_v30 = vrot.slane %v1804_v27, 3 }
 0x1fe   : > { %6002 = vmatmul.mubr.msk.bf16.gmra.mrb[44].mxu0 %vm1283_vm5, %v10244_v21  ;;  %v1809_v21 = vrot.slane %v1807_v12, 4 }
 0x1ff   : > { %6005 = vmatprep.mubr.msk.bf16.mxu0 %vm1283_vm5, %v10245_v53 }
 0x206   : > { %6006 = vmatmul.mubr.msk.bf16.gmra.mrb[48].mxu0 %vm1283_vm5, %v10246_v19  ;;  %v1802_v19 = vor.u32 %v1801_v48, %v1798_v47  ;;  %v10288_v48 = vld [vmem:[#allocation6_spill] sm:$0xff] }
 0x207   : > { %6009 = vmatprep.mubr.msk.bf16.mxu0 %vm1283_vm5, %v10247_v59 }
 0x20e   : > { %6010 = vmatmul.mubr.msk.bf16.gmra.mrb[52].mxu0 %vm1283_vm5, %v10248_v54  ;;  %v1810_v54 = vor.u32 %v1809_v21, %v1806_v30 }
 0x20f   : > { %6013 = vmatprep.mubr.msk.bf16.mxu0 %vm1283_vm5, %v10249_v35 }
 0x210   : > { %v1811_v35 = vsel %vm1794_vm4, %v1802_v19, %v1810_v54 }
 0x214   : > { %v9043_v4 = vpop.f32.mrb[8].mxu0 }
 0x215   : > { %v9045_v16 = vpop.f32.mrb[9].mxu0 }
 0x216   : > { %v9047_v53 = vpop.f32.mrb[10].mxu0  ;;  %6014 = vmatmul.mubr.msk.bf16.gmra.mrb[56].mxu0 %vm1283_vm5, %v10250_v34  ;;  %v6883_v34 = vld [vmem:[%s9994_s2 + $0x30] sm:$0xff]  }
 0x217   : > { %v9051_v59 = vpop.f32.mrb[11].mxu0  ;;  %6017 = vmatprep.mubr.msk.bf16.mxu0 %vm1283_vm5, %v10251_v46 }
 0x21e   : > { %6018 = vmatmul.mubr.msk.bf16.gmra.mrb[60].mxu0 %vm1283_vm5, %v10252_v8 }
 0x21f   : > { %6025 = vmatprep.mubr.msk.bf16.mxu0 %vm1283_vm5, %v1811_v35  ;;  %v10289_v35 = vld [vmem:[#allocation26_spill] sm:$0xff] }
 0x226   : > { %6026 = vmatmul.mubr.msk.bf16.vlgmr.msra.gmra.mrb[32].mxu0 %vm1283_vm5, %v8917_v37 }
 0x227   : > { %6058 = vmatpush3.bf16.msra.mxu0 %v6679_v45  ;;  %6029 = vmatprep.mubr.msk.bf16.mxu0 %vm1283_vm5, %v8346_v18 }
 0x228   : > { %6059 = vmatprep.subr.bf16.mxu0 %v6680_v29 }
 0x22b   : > { %6060 = vmatpush3.bf16.msra.mxu0 %v6680_v29  ;;  %v6884_v29 = vld [vmem:[%s9994_s2 + $0x38] sm:$0xff]  }
 0x22c   : > { %6093 = vmatprep.subr.bf16.mxu0 %v6883_v34 }
 0x22e   : > { %6030 = vmatmul.mubr.msk.bf16.gmra.mrb[36].mxu0 %vm1283_vm5, %v8069_v22 }
 0x22f   : > { %6033 = vmatprep.mubr.msk.bf16.mxu0 %vm1283_vm5, %v8416_v9 }
 0x234   : > { %v9073_v46 = vpop.f32.mrb[12].mxu0 }
 0x235   : > { %10270 = vst [vmem:[#allocation8_spill] sm:$0xff] %v9073_v46  ;;  %v9075_v8 = vpop.f32.mrb[13].mxu0 }
 0x236   : > { %10271 = vst [vmem:[#allocation10_spill] sm:$0xff] %v9075_v8  ;;  %v9077_v61 = vpop.f32.mrb[14].mxu0  ;;  %6034 = vmatmul.mubr.msk.bf16.gmra.mrb[40].mxu0 %vm1283_vm5, %v10273_v57 }
 0x237   : > { %10272 = vst [vmem:[#allocation11_spill] sm:$0xff] %v9077_v61  ;;  %v9081_v3 = vpop.f32.mrb[15].mxu0  ;;  %6037 = vmatprep.mubr.msk.bf16.mxu0 %vm1283_vm5, %v10275_v63 }
 0x238   : > { %10274 = vst [vmem:[#allocation12_spill] sm:$0xff] %v9081_v3 }
 0x23e   : > { %6038 = vmatmul.mubr.msk.bf16.gmra.mrb[44].mxu0 %vm1283_vm5, %v10276_v15 }
 0x23f   : > { %6041 = vmatprep.mubr.msk.bf16.mxu0 %vm1283_vm5, %v10277_v33 }
 0x246   : > { %6042 = vmatmul.mubr.msk.bf16.gmra.mrb[48].mxu0 %vm1283_vm5, %v10278_v58 }
 0x247   : > { %6045 = vmatprep.mubr.msk.bf16.mxu0 %vm1283_vm5, %v10279_v28 }
 0x24e   : > { %6046 = vmatmul.mubr.msk.bf16.gmra.mrb[52].mxu0 %vm1283_vm5, %v10280_v62 }
 0x24f   : > { %6049 = vmatprep.mubr.msk.bf16.mxu0 %vm1283_vm5, %v10281_v23 }
 0x251   : > { %v9097_v6 = vpop.f32.mrb[4].mxu1 }
 0x252   : > { %v9099_v50 = vpop.f32.mrb[5].mxu1 }
 0x253   : > { %v9101_v52 = vpop.f32.mrb[6].mxu1 }
 0x254   : > { %v9103_v27 = vpop.f32.mrb[7].mxu1  ;;  %v9105_v12 = vpop.f32.mrb[16].mxu0 }
 0x255   : > { %10282 = vst [vmem:[#allocation14_spill] sm:$0xff] %v9105_v12  ;;  %v9107_v42 = vpop.f32.mrb[17].mxu0 }
 0x256   : > { %10283 = vst [vmem:[#allocation15_spill] sm:$0xff] %v9107_v42  ;;  %v9109_v44 = vpop.f32.mrb[18].mxu0  ;;  %6050 = vmatmul.mubr.msk.bf16.gmra.mrb[56].mxu0 %vm1283_vm5, %v10285_v39 }
 0x257   : > { %10284 = vst [vmem:[#allocation16_spill] sm:$0xff] %v9109_v44  ;;  %v9116_v43 = vpop.f32.mrb[19].mxu0  ;;  %6053 = vmatprep.mubr.msk.bf16.mxu0 %vm1283_vm5, %v10287_v1 }
 0x258   : > { %10286 = vst [vmem:[#allocation18_spill] sm:$0xff] %v9116_v43 }
 0x259   : > { %v9121_v36 = vpop.f32.mrb[8].mxu1 }
 0x25a   : > { %v9123_v17 = vpop.f32.mrb[9].mxu1 }
 0x25b   : > { %v9125_v45 = vpop.f32.mrb[10].mxu1 }
 0x25c   : > { %v9127_v47 = vpop.f32.mrb[11].mxu1 }
 0x25e   : > { %6054 = vmatmul.mubr.msk.bf16.gmra.mrb[60].mxu0 %vm1283_vm5, %v10288_v48 }
 0x25f   : > { %6061 = vmatprep.mubr.msk.bf16.mxu0 %vm1283_vm5, %v9005_v13 }
 0x261   : > { %v9133_v30 = vpop.f32.mrb[12].mxu1 }
 0x262   : > { %v9135_v21 = vpop.f32.mrb[13].mxu1 }
 0x263   : > { %v9137_v19 = vpop.f32.mrb[14].mxu1 }
 0x264   : > { %v9139_v54 = vpop.f32.mrb[15].mxu1 }
 0x266   : > { %6062 = vmatmul.mubr.msk.bf16.vlgmr.msra.gmra.mrb[32].mxu0 %vm1283_vm5, %v10289_v35 }
 0x267   : > { %6094 = vmatpush3.bf16.msra.mxu0 %v6883_v34  ;;  %6065 = vmatprep.mubr.msk.bf16.mxu0 %vm1283_vm5, %v10254_v11 }
 0x268   : > { %6095 = vmatprep.subr.bf16.mxu0 %v6884_v29 }
 0x269   : > { %v9148_v13 = vpop.f32.mrb[16].mxu1 }
 0x26a   : > { %v9150_v40 = vpop.f32.mrb[17].mxu1 }
 0x26b   : > { %v9152_v48 = vpop.f32.mrb[18].mxu1  ;;  %6096 = vmatpush3.bf16.msra.mxu0 %v6884_v29 }
 0x26c   : > { %v9154_v43 = vpop.f32.mrb[19].mxu1 }
 0x26e   : > { %6066 = vmatmul.mubr.msk.bf16.gmra.mrb[36].mxu0 %vm1283_vm5, %v10255_v51 }
 0x26f   : > { %6069 = vmatprep.mubr.msk.bf16.mxu0 %vm1283_vm5, %v7980_v20 }
 0x271   : > { %v9160_v11 = vpop.f32.mrb[20].mxu1 }
 0x272   : > { %v9162_v34 = vpop.f32.mrb[21].mxu1 }
 0x273   : > { %10290 = vst [vmem:[#allocation19_spill] sm:$0xff] %v9162_v34  ;;  %v9164_v35 = vpop.f32.mrb[22].mxu1 }
 0x274   : > { %10291 = vst [vmem:[#allocation20_spill] sm:$0xff] %v9164_v35  ;;  %v9166_v44 = vpop.f32.mrb[23].mxu1  ;;  %v9168_v42 = vpop.f32.mrb[20].mxu0 }
 0x275   : > { %10292 = vst [vmem:[#allocation21_spill] sm:$0xff] %v9166_v44  ;;  %10293 = vst [vmem:[#allocation22_spill] sm:$0xff] %v9168_v42  ;;  %v9170_v12 = vpop.f32.mrb[21].mxu0 }
 0x276   : > { %10294 = vst [vmem:[#allocation23_spill] sm:$0xff] %v9170_v12  ;;  %v9172_v29 = vpop.f32.mrb[22].mxu0  ;;  %6070 = vmatmul.mubr.msk.bf16.gmra.mrb[40].mxu0 %vm1283_vm5, %v10256_v60  ;;  %v10302_v12 = vld [vmem:[#allocation31_spill] sm:$0xff] }
 0x277   : > { %10295 = vst [vmem:[#allocation24_spill] sm:$0xff] %v9172_v29  ;;  %v9176_v51 = vpop.f32.mrb[23].mxu0  ;;  %6073 = vmatprep.mubr.msk.bf16.mxu0 %vm1283_vm5, %v8027_v10 }
 0x278   : > { %10296 = vst [vmem:[#allocation25_spill] sm:$0xff] %v9176_v51 }
 0x279   : > { %v9180_v20 = vpop.f32.mrb[24].mxu1 }
 0x27a   : > { %v9182_v34 = vpop.f32.mrb[25].mxu1 }
 0x27b   : > { %10297 = vst [vmem:[#allocation17_spill] sm:$0xff] %v9182_v34  ;;  %v9184_v35 = vpop.f32.mrb[26].mxu1 }
 0x27c   : > { %10298 = vst [vmem:[#allocation27_spill] sm:$0xff] %v9184_v35  ;;  %v9186_v44 = vpop.f32.mrb[27].mxu1  ;;  %v10303_v35 = vld [vmem:[#allocation34_spill] sm:$0xff] }
 0x27d   : > { %10299 = vst [vmem:[#allocation28_spill] sm:$0xff] %v9186_v44 }
 0x27e   : > { %6074 = vmatmul.mubr.msk.bf16.gmra.mrb[44].mxu0 %vm1283_vm5, %v8030_v25 }
 0x27f   : > { %6077 = vmatprep.mubr.msk.bf16.mxu0 %vm1283_vm5, %v10257_v55 }
 0x281   : > { %v9192_v60 = vpop.f32.mrb[28].mxu1 }
 0x282   : > { %v9194_v51 = vpop.f32.mrb[29].mxu1 }
 0x283   : > { %v9196_v29 = vpop.f32.mrb[30].mxu1 }
 0x284   : > { %10300 = vst [vmem:[#allocation29_spill] sm:$0xff] %v9196_v29  ;;  %v9198_v10 = vpop.f32.mrb[31].mxu1 }
 0x285   : > { %10301 = vst [vmem:[#allocation30_spill] sm:$0xff] %v9198_v10 }
 0x286   : > { %6078 = vmatmul.mubr.msk.bf16.gmra.mrb[48].mxu0 %vm1283_vm5, %v10302_v12 }
 0x287   : > { %6081 = vmatprep.mubr.msk.bf16.mxu0 %vm1283_vm5, %v10303_v35 }
 0x289   : > { %v6307_v44 = vpop.f32.mrb[0].mxu1 }
 0x28a   : > { %v4259_v42 = vpop.f32.mrb[1].mxu1 }
 0x28b   : > { %v6308_v25 = vpop.f32.mrb[2].mxu1 }
 0x28c   : > { %v4262_v34 = vpop.f32.mrb[3].mxu1 }
 0x28e   : > { %6082 = vmatmul.mubr.msk.bf16.gmra.mrb[52].mxu0 %vm1283_vm5, %v8194_v26 }
 0x28f   : > { %6085 = vmatprep.mubr.msk.bf16.mxu0 %vm1283_vm5, %v8224_v49 }
 0x294   : > { %v9208_v55 = vpop.f32.mrb[24].mxu0 }
 0x295   : > { %v9210_v29 = vpop.f32.mrb[25].mxu0 }
 0x296   : > { %v9212_v10 = vpop.f32.mrb[26].mxu0  ;;  %6086 = vmatmul.mubr.msk.bf16.gmra.mrb[56].mxu0 %vm1283_vm5, %v8242_v0 }
 0x297   : > { %v9216_v12 = vpop.f32.mrb[27].mxu0  ;;  %6089 = vmatprep.mubr.msk.bf16.mxu0 %vm1283_vm5, %v8289_v38 }
 0x29e   : > { %6090 = vmatmul.mubr.msk.bf16.gmra.mrb[60].mxu0 %vm1283_vm5, %v8310_v41  ;;  %v9258_v41 = vpop.permute.xlu0 %4613 }
 0x29f   : > { %6097 = vmatprep.mubr.msk.bf16.mxu0 %vm1283_vm5, %v8917_v37 }
 0x2a6   : > { %6098 = vmatmul.mubr.msk.bf16.vlgmr.msra.gmra.mrb[32].mxu0 %vm1283_vm5, %v8346_v18 }
 0x2a7   : > { %6101 = vmatprep.mubr.msk.bf16.mxu0 %vm1283_vm5, %v8069_v22 }
 0x2ae   : > { %6102 = vmatmul.mubr.msk.bf16.gmra.mrb[36].mxu0 %vm1283_vm5, %v8416_v9 }
 0x2af   : > { %6105 = vmatprep.mubr.msk.bf16.mxu0 %vm1283_vm5, %v10273_v57 }
 0x2b1   : > { %v9232_v26 = vpop.f32.mrb[28].mxu0 }
 0x2b2   : > { %10304 = vst [vmem:[#allocation5_spill] sm:$0xff] %v9232_v26  ;;  %v9234_v49 = vpop.f32.mrb[29].mxu0 }
 0x2b3   : > { %v9236_v0 = vpop.f32.mrb[30].mxu0 }
 0x2b4   : > { %10305 = vst [vmem:[#allocation7_spill] sm:$0xff] %v9236_v0  ;;  %v9238_v38 = vpop.f32.mrb[31].mxu0 }
 0x2b6   : > { %6106 = vmatmul.mubr.msk.bf16.gmra.mrb[40].mxu0 %vm1283_vm5, %v10275_v63 }
 0x2b7   : > { %6109 = vmatprep.mubr.msk.bf16.mxu0 %vm1283_vm5, %v10276_v15 }
 0x2be   : > { %6110 = vmatmul.mubr.msk.bf16.gmra.mrb[44].mxu0 %vm1283_vm5, %v10277_v33 }
 0x2bf   : > { %6113 = vmatprep.mubr.msk.bf16.mxu0 %vm1283_vm5, %v10278_v58 }
 0x2c6   : > { %6114 = vmatmul.mubr.msk.bf16.gmra.mrb[48].mxu0 %vm1283_vm5, %v10279_v28 }
 0x2c7   : > { %6117 = vmatprep.mubr.msk.bf16.mxu0 %vm1283_vm5, %v10280_v62 }
 0x2ce   : > { %6118 = vmatmul.mubr.msk.bf16.gmra.mrb[52].mxu0 %vm1283_vm5, %v10281_v23 }
 0x2cf   : > { %6121 = vmatprep.mubr.msk.bf16.mxu0 %vm1283_vm5, %v10285_v39 }
 0x2d6   : > { %6122 = vmatmul.mubr.msk.bf16.gmra.mrb[56].mxu0 %vm1283_vm5, %v10287_v1 }
 0x371   : > { %v6091_v22 = vpop.f32.mrb[60].mxu0 }
 0x372   : > { %v6341_v18 = vadd.f32 %v6307_v44, %v6091_v22  ;;  %v2923_v9 = vpop.f32.mrb[61].mxu0 }
 0x373   : > { %v6342_v37 = vadd.f32 %v4259_v42, %v2923_v9  ;;  %v6092_v57 = vpop.f32.mrb[62].mxu0  ;;  %v9273_v42 = vld [vmem:[%s9995_s3] ss:$0 sm:$0xff] }
 0x374   : > { %v9261_v63 = vadd.f32 %v6341_v18, %v9232_v26  ;;  %v6343_v15 = vadd.f32 %v6308_v25, %v6092_v57  ;;  %v2926_v33 = vpop.f32.mrb[63].mxu0  ;;  %v4646_v58 = vadd.f32 %v6341_v18, %v9258_v41 }
 0x375   : > { %v9265_v28 = vadd.f32 %v6342_v37, %v9234_v49  ;;  %v6344_v62 = vadd.f32 %v4262_v34, %v2926_v33  ;;  %v4644_v34 = vadd.f32 %v6342_v37, %v9258_v41 }
 0x376   : > { %v4337_v23 = vadd.f32 %v6343_v15, %v9236_v0  ;;  %4740 = vrot.lane.b32.xlu0 %v4646_v58, %s6966_s10  ;;  %v4647_v44 = vadd.f32 %v6343_v15, %v9258_v41 }
 0x377   : > { %v9276_v39 = vadd.f32 %v6344_v62, %v9238_v38  ;;  %v4645_v25 = vadd.f32 %v6344_v62, %v9258_v41 }
 0x378   : > { %v9279_v1 = vadd.f32 %v9273_v42, %v4337_v23  ;;  %4742 = vrot.lane.b32.xlu1 %v4647_v44, %s6966_s10 }
 0x379   : > { %v6099_v35 = vpop.f32.mrb[32].mxu0 }
 0x37a   : > { %v6313_v22 = vadd.f32 %v9097_v6, %v6099_v35  ;;  %v3041_v18 = vpop.f32.mrb[33].mxu0  ;;  %4736 = vrot.lane.b32.xlu0 %v4644_v34, %s6966_s10 }
 0x37b   : > { %v6314_v9 = vadd.f32 %v9099_v50, %v3041_v18  ;;  %v6100_v57 = vpop.f32.mrb[34].mxu0 }
 0x37c   : > { %v9288_v15 = vadd.f32 %v6313_v22, %v8963_v5  ;;  %v4618_v33 = vadd.f32 %v6313_v22, %v9258_v41  ;;  %v6315_v58 = vadd.f32 %v9101_v52, %v6100_v57  ;;  %v3044_v23 = vpop.f32.mrb[35].mxu0  ;;  %4738 = vrot.lane.b32.xlu1 %v4645_v25, %s6966_s10 }
 0x37d   : > { %v9294_v37 = vadd.f32 %v6314_v9, %v8972_v7  ;;  %v6316_v6 = vadd.f32 %v9103_v27, %v3044_v23  ;;  %v4616_v52 = vadd.f32 %v6314_v9, %v9258_v41 }
 0x37e   : > { %v9298_v62 = vadd.f32 %v6315_v58, %v8976_v32  ;;  %v4619_v50 = vadd.f32 %v6315_v58, %v9258_v41  ;;  %4684 = vrot.lane.b32.xlu0 %v4618_v33, %s6966_s10 }
 0x37f   : > { %v9303_v44 = vadd.f32 %v6316_v6, %v8980_v24  ;;  %v4617_v35 = vadd.f32 %v6316_v6, %v9258_v41 }
 0x380   : > { %4686 = vrot.lane.b32.xlu1 %v4619_v50, %s6966_s10 }
 0x381   : > { %v6103_v34 = vpop.f32.mrb[36].mxu0 }
 0x382   : > { %v6317_v25 = vadd.f32 %v9121_v36, %v6103_v34  ;;  %v3057_v27 = vpop.f32.mrb[37].mxu0  ;;  %4680 = vrot.lane.b32.xlu0 %v4616_v52, %s6966_s10 }
 0x383   : > { %v6318_v22 = vadd.f32 %v9123_v17, %v3057_v27  ;;  %v6104_v18 = vpop.f32.mrb[38].mxu0 }
 0x384   : > { %v9312_v57 = vadd.f32 %v6317_v25, %v9019_v2  ;;  %v4622_v33 = vadd.f32 %v6317_v25, %v9258_v41  ;;  %v6319_v9 = vadd.f32 %v9125_v45, %v6104_v18  ;;  %v3060_v58 = vpop.f32.mrb[39].mxu0  ;;  %4682 = vrot.lane.b32.xlu1 %v4617_v35, %s6966_s10 }
 0x385   : > { %v9318_v23 = vadd.f32 %v6318_v22, %v9021_v31  ;;  %v6320_v17 = vadd.f32 %v9127_v47, %v3060_v58  ;;  %v4620_v50 = vadd.f32 %v6318_v22, %v9258_v41 }
 0x386   : > { %v9321_v36 = vadd.f32 %v6319_v9, %v9023_v56  ;;  %v4623_v6 = vadd.f32 %v6319_v9, %v9258_v41  ;;  %4692 = vrot.lane.b32.xlu0 %v4622_v33, %s6966_s10 }
 0x387   : > { %v9329_v45 = vadd.f32 %v6320_v17, %v9027_v14  ;;  %v4621_v34 = vadd.f32 %v6320_v17, %v9258_v41 }
 0x388   : > { %4694 = vrot.lane.b32.xlu1 %v4623_v6, %s6966_s10 }
 0x389   : > { %v6107_v52 = vpop.f32.mrb[40].mxu0 }
 0x38a   : > { %v6321_v35 = vadd.f32 %v9133_v30, %v6107_v52  ;;  %v3073_v25 = vpop.f32.mrb[41].mxu0  ;;  %4688 = vrot.lane.b32.xlu0 %v4620_v50, %s6966_s10 }
 0x38b   : > { %v6322_v27 = vadd.f32 %v9135_v21, %v3073_v25  ;;  %v6108_v18 = vpop.f32.mrb[42].mxu0 }
 0x38c   : > { %v9336_v47 = vadd.f32 %v6321_v35, %v9043_v4  ;;  %v4626_v22 = vadd.f32 %v6321_v35, %v9258_v41  ;;  %v6323_v33 = vadd.f32 %v9137_v19, %v6108_v18  ;;  %v3076_v9 = vpop.f32.mrb[43].mxu0  ;;  %4690 = vrot.lane.b32.xlu1 %v4621_v34, %s6966_s10 }
 0x38d   : > { %v9342_v58 = vadd.f32 %v6322_v27, %v9045_v16  ;;  %v4624_v6 = vadd.f32 %v6322_v27, %v9258_v41  ;;  %v6324_v17 = vadd.f32 %v9139_v54, %v3076_v9 }
 0x38e   : > { %v9345_v30 = vadd.f32 %v6323_v33, %v9047_v53  ;;  %4700 = vrot.lane.b32.xlu0 %v4626_v22, %s6966_s10  ;;  %v4627_v21 = vadd.f32 %v6323_v33, %v9258_v41 }
 0x38f   : > { %v9355_v34 = vadd.f32 %v6324_v17, %v9051_v59  ;;  %v4625_v35 = vadd.f32 %v6324_v17, %v9258_v41 }
 0x390   : > { %4702 = vrot.lane.b32.xlu1 %v4627_v21, %s6966_s10 }
 0x391   : > { %v6111_v19 = vpop.f32.mrb[44].mxu0 }
 0x392   : > { %v6325_v50 = vadd.f32 %v9148_v13, %v6111_v19  ;;  %v3089_v52 = vpop.f32.mrb[45].mxu0  ;;  %4696 = vrot.lane.b32.xlu0 %v4624_v6, %s6966_s10 }
 0x393   : > { %v6326_v25 = vadd.f32 %v9150_v40, %v3089_v52  ;;  %v6112_v18 = vpop.f32.mrb[46].mxu0 }
 0x394   : > { %v9360_v27 = vadd.f32 %v6325_v50, %v9073_v46  ;;  %v4630_v54 = vadd.f32 %v6325_v50, %v9258_v41  ;;  %v6327_v22 = vadd.f32 %v9152_v48, %v6112_v18  ;;  %v3092_v33 = vpop.f32.mrb[47].mxu0  ;;  %4698 = vrot.lane.b32.xlu1 %v4625_v35, %s6966_s10  ;;  %v10306_v35 = vld [vmem:[#allocation19_spill] sm:$0xff] }
 0x395   : > { %v9365_v13 = vadd.f32 %v6326_v25, %v9075_v8  ;;  %v4628_v21 = vadd.f32 %v6326_v25, %v9258_v41  ;;  %v6328_v6 = vadd.f32 %v9154_v43, %v3092_v33  ;;  %v10308_v33 = vld [vmem:[#allocation20_spill] sm:$0xff]  ;;  %v10314_v8 = vld [vmem:[#allocation22_spill] sm:$0xff] }
 0x396   : > { %v9369_v9 = vadd.f32 %v6327_v22, %v9077_v61  ;;  %4708 = vrot.lane.b32.xlu0 %v4630_v54, %s6966_s10  ;;  %v4631_v40 = vadd.f32 %v6327_v22, %v9258_v41  ;;  %v10307_v22 = vld [vmem:[#allocation14_spill] sm:$0xff] }
 0x397   : > { %v9379_v50 = vadd.f32 %v6328_v6, %v9081_v3  ;;  %v4629_v52 = vadd.f32 %v6328_v6, %v9258_v41 }
 0x398   : > { %4710 = vrot.lane.b32.xlu1 %v4631_v40, %s6966_s10 }
 0x399   : > { %v6115_v48 = vpop.f32.mrb[48].mxu0 }
 0x39a   : > { %v6329_v17 = vadd.f32 %v9160_v11, %v6115_v48  ;;  %v3105_v19 = vpop.f32.mrb[49].mxu0  ;;  %4704 = vrot.lane.b32.xlu0 %v4628_v21, %s6966_s10  ;;  %v10309_v11 = vld [vmem:[#allocation15_spill] sm:$0xff]  ;;  %v10310_v21 = vld [vmem:[#allocation16_spill] sm:$0xff] }
 0x39b   : > { %v6330_v18 = vadd.f32 %v10306_v35, %v3105_v19  ;;  %v6116_v54 = vpop.f32.mrb[50].mxu0  ;;  %v10311_v35 = vld [vmem:[#allocation21_spill] sm:$0xff] }
 0x39c   : > { %v9384_v25 = vadd.f32 %v6329_v17, %v10307_v22  ;;  %v4634_v43 = vadd.f32 %v6329_v17, %v9258_v41  ;;  %v6331_v40 = vadd.f32 %v10308_v33, %v6116_v54  ;;  %v3108_v0 = vpop.f32.mrb[51].mxu0  ;;  %4706 = vrot.lane.b32.xlu1 %v4629_v52, %s6966_s10  ;;  %v10312_v52 = vld [vmem:[#allocation18_spill] sm:$0xff] }
 0x39d   : > { %v9389_v48 = vadd.f32 %v6330_v18, %v10309_v11  ;;  %v4632_v19 = vadd.f32 %v6330_v18, %v9258_v41  ;;  %v6332_v22 = vadd.f32 %v10311_v35, %v3108_v0 }
 0x39e   : > { %v9393_v26 = vadd.f32 %v6331_v40, %v10310_v21  ;;  %4716 = vrot.lane.b32.xlu0 %v4634_v43, %s6966_s10  ;;  %v4635_v6 = vadd.f32 %v6331_v40, %v9258_v41  ;;  %v10313_v43 = vld [vmem:[#allocation17_spill] sm:$0xff] }
 0x39f   : > { %v9403_v11 = vadd.f32 %v6332_v22, %v10312_v52  ;;  %v4633_v21 = vadd.f32 %v6332_v22, %v9258_v41 }
 0x3a0   : > { %4718 = vrot.lane.b32.xlu1 %v4635_v6, %s6966_s10  ;;  %v10315_v6 = vld [vmem:[#allocation27_spill] sm:$0xff] }
 0x3a1   : > { %v6119_v17 = vpop.f32.mrb[52].mxu0 }
 0x3a2   : > { %v6333_v54 = vadd.f32 %v9180_v20, %v6119_v17  ;;  %v3121_v33 = vpop.f32.mrb[53].mxu0  ;;  %4712 = vrot.lane.b32.xlu0 %v4632_v19, %s6966_s10  ;;  %v10316_v20 = vld [vmem:[#allocation23_spill] sm:$0xff]  ;;  %v10317_v19 = vld [vmem:[#allocation24_spill] sm:$0xff] }
 0x3a3   : > { %v6334_v3 = vadd.f32 %v10313_v43, %v3121_v33  ;;  %v6120_v40 = vpop.f32.mrb[54].mxu0 }
 0x3a4   : > { %v9408_v18 = vadd.f32 %v6333_v54, %v10314_v8  ;;  %v4638_v0 = vadd.f32 %v6333_v54, %v9258_v41  ;;  %v6335_v35 = vadd.f32 %v10315_v6, %v6120_v40  ;;  %v3124_v61 = vpop.f32.mrb[55].mxu0  ;;  %4714 = vrot.lane.b32.xlu1 %v4633_v21, %s6966_s10  ;;  %v10318_v8 = vld [vmem:[#allocation28_spill] sm:$0xff] }
 0x3a5   : > { %v9413_v17 = vadd.f32 %v6334_v3, %v10316_v20  ;;  %v4636_v22 = vadd.f32 %v6334_v3, %v9258_v41  ;;  %v6336_v54 = vadd.f32 %v10318_v8, %v3124_v61  ;;  %v10319_v20 = vld [vmem:[#allocation25_spill] sm:$0xff] }
 0x3a6   : > { %v9417_v52 = vadd.f32 %v6335_v35, %v10317_v19  ;;  %4724 = vrot.lane.b32.xlu0 %v4638_v0, %s6966_s10  ;;  %v4639_v33 = vadd.f32 %v6335_v35, %v9258_v41 }
 0x3a7   : > { %v9428_v46 = vadd.f32 %v6336_v54, %v10319_v20  ;;  %v4637_v35 = vadd.f32 %v6336_v54, %v9258_v41 }
 0x3a8   : > { %4726 = vrot.lane.b32.xlu1 %v4639_v33, %s6966_s10  ;;  %v10321_v33 = vld [vmem:[#allocation30_spill] sm:$0xff] }
 0x3a9   : > { %v6123_v43 = vpop.f32.mrb[56].mxu0 }
 0x3aa   : > { %v6337_v40 = vadd.f32 %v9192_v60, %v6123_v43  ;;  %v3137_v6 = vpop.f32.mrb[57].mxu0  ;;  %4720 = vrot.lane.b32.xlu0 %v4636_v22, %s6966_s10  ;;  %v10320_v60 = vld [vmem:[#allocation29_spill] sm:$0xff] }
 0x3ab   : > { %v6338_v21 = vadd.f32 %v9194_v51, %v3137_v6  ;;  %v6124_v19 = vpop.f32.mrb[58].mxu0 }
 0x3ac   : > { %v9431_v3 = vadd.f32 %v6337_v40, %v9208_v55  ;;  %v3140_v0 = vpop.f32.mrb[59].mxu0  ;;  %v4642_v8 = vadd.f32 %v6337_v40, %v9258_v41  ;;  %v6339_v22 = vadd.f32 %v10320_v60, %v6124_v19  ;;  %4722 = vrot.lane.b32.xlu1 %v4637_v35, %s6966_s10  ;;  %v5723_v35 = vmul.f32 -1.442695, %v9279_v1 }
 0x3ad   : > { %v9436_v61 = vadd.f32 %v6338_v21, %v9210_v29  ;;  %v6340_v43 = vadd.f32 %v10321_v33, %v3140_v0  ;;  %v4640_v6 = vadd.f32 %v6338_v21, %v9258_v41  ;;  %v4372_v0 = vadd.f32 %v9273_v42, %v9265_v28 }
 0x3ae   : > { %4732 = vrot.lane.b32.xlu0 %v4642_v8, %s6966_s10  ;;  %v9443_v51 = vadd.f32 %v6339_v22, %v9212_v10  ;;  %v4643_v54 = vadd.f32 %v6339_v22, %v9258_v41  ;;  %v4373_v21 = vadd.f32 %v9273_v42, %v9276_v39  ;;  %v4346_v60 = vadd.f32 %v9273_v42, %v9288_v15 }
 0x3af   : > { %v9448_v40 = vadd.f32 %v6340_v43, %v9216_v12  ;;  %v4641_v19 = vadd.f32 %v6340_v43, %v9258_v41  ;;  %v5720_v8 = vmul.f32 -1.442695, %v4372_v0  ;;  %6681 = vpow2.f32 %v5723_v35 }
 0x3b0   : > { %4734 = vrot.lane.b32.xlu1 %v4643_v54, %s6966_s10  ;;  %v5721_v22 = vmul.f32 -1.442695, %v4373_v21  ;;  %v4344_v33 = vadd.f32 %v9273_v42, %v9294_v37  ;;  %v4347_v41 = vadd.f32 %v9273_v42, %v9298_v62  ;;  %v5694_v43 = vmul.f32 -1.442695, %v4346_v60 }
 0x3b1   : > { %6683 = vpow2.f32 %v5720_v8  ;;  %v4345_v1 = vadd.f32 %v9273_v42, %v9303_v44  ;;  %v4351_v62 = vadd.f32 %v9273_v42, %v9321_v36  ;;  %v4354_v60 = vadd.f32 %v9273_v42, %v9336_v47 }
 0x3b2   : > { %4728 = vrot.lane.b32.xlu0 %v4640_v6, %s6966_s10  ;;  %6685 = vpow2.f32 %v5721_v22  ;;  %v5692_v28 = vmul.f32 -1.442695, %v4344_v33  ;;  %v5695_v39 = vmul.f32 -1.442695, %v4347_v41  ;;  %v4350_v6 = vadd.f32 %v9273_v42, %v9312_v57 }
 0x3b3   : > { %6687 = vpow2.f32 %v5694_v43  ;;  %v5693_v15 = vmul.f32 -1.442695, %v4345_v1  ;;  %v5699_v21 = vmul.f32 -1.442695, %v4351_v62  ;;  %v4349_v57 = vadd.f32 %v9273_v42, %v9329_v45 }
 0x3b4   : > { %4730 = vrot.lane.b32.xlu1 %v4641_v19, %s6966_s10  ;;  %6689 = vpow2.f32 %v5692_v28  ;;  %v5698_v54 = vmul.f32 -1.442695, %v4350_v6  ;;  %v4348_v19 = vadd.f32 %v9273_v42, %v9318_v23  ;;  %v5702_v28 = vmul.f32 -1.442695, %v4354_v60 }
 0x3b5   : > { %6691 = vpow2.f32 %v5695_v39  ;;  %v5697_v23 = vmul.f32 -1.442695, %v4349_v57  ;;  %v4355_v1 = vadd.f32 %v9273_v42, %v9345_v30  ;;  %v4352_v45 = vadd.f32 %v9273_v42, %v9342_v58 }
 0x3b6   : > { %6693 = vpow2.f32 %v5693_v15  ;;  %v5696_v8 = vmul.f32 -1.442695, %v4348_v19  ;;  %v4353_v62 = vadd.f32 %v9273_v42, %v9355_v34  ;;  %v4358_v30 = vadd.f32 %v9273_v42, %v9360_v27 }
 0x3b7   : > { %6695 = vpow2.f32 %v5698_v54  ;;  %v5700_v19 = vmul.f32 -1.442695, %v4352_v45 }
 0x3b8   : > { %v5701_v34 = vmul.f32 -1.442695, %v4353_v62  ;;  %v5706_v27 = vmul.f32 -1.442695, %v4358_v30 }
 0x3b9   : > { %v6682_v37 = vpop.eup %6681 }
 0x3ba   : > { %v4503_v35 = vadd.f32 1.0, %v6682_v37  ;;  %v5703_v37 = vmul.f32 -1.442695, %v4355_v1 }
 0x3bb   : > { %v6684_v0 = vpop.eup %6683 }
 0x3bc   : > { %v6686_v44 = vpop.eup %6685  ;;  %v4500_v22 = vadd.f32 1.0, %v6684_v0  ;;  %6697 = vrcp.f32 %v4503_v35  ;;  %v9485_v0 = vpop.permute.xlu1 %4573  ;;  %v4356_v35 = vadd.f32 %v9273_v42, %v9365_v13  ;;  %v4357_v13 = vadd.f32 %v9273_v42, %v9379_v50 }
 0x3bd   : > { %v6688_v33 = vpop.eup %6687  ;;  %v4501_v36 = vadd.f32 1.0, %v6686_v44  ;;  %6699 = vpow2.f32 %v5699_v21  ;;  %v4359_v21 = vadd.f32 %v9273_v42, %v9369_v9 }
 0x3be   : > { %v6690_v41 = vpop.eup %6689  ;;  %6701 = vpow2.f32 %v5696_v8  ;;  %v4474_v39 = vadd.f32 1.0, %v6688_v33  ;;  %v5704_v33 = vmul.f32 -1.442695, %v4356_v35 }
 0x3bf   : > { %v6692_v43 = vpop.eup %6691  ;;  %6703 = vrcp.f32 %v4500_v22  ;;  %v4472_v47 = vadd.f32 1.0, %v6690_v41  ;;  %v5707_v9 = vmul.f32 -1.442695, %v4359_v21 }
 0x3c0   : > { %6705 = vrcp.f32 %v4501_v36  ;;  %v6694_v6 = vpop.eup %6693  ;;  %v4475_v15 = vadd.f32 1.0, %v6692_v43 }
 0x3c1   : > { %6707 = vpow2.f32 %v5697_v23  ;;  %v6696_v54 = vpop.eup %6695  ;;  %v4473_v58 = vadd.f32 1.0, %v6694_v6  ;;  %v4362_v23 = vadd.f32 %v9273_v42, %v9384_v25 }
 0x3c2   : > { %6709 = vpow2.f32 %v5702_v28  ;;  %v4478_v44 = vadd.f32 1.0, %v6696_v54  ;;  %v4360_v54 = vadd.f32 %v9273_v42, %v9389_v48 }
 0x3c3   : > { %6711 = vrcp.f32 %v4474_v39  ;;  %v5710_v62 = vmul.f32 -1.442695, %v4362_v23  ;;  %v4366_v23 = vadd.f32 %v9273_v42, %v9408_v18 }
 0x3c4   : > { %6713 = vrcp.f32 %v4472_v47 }
 0x3c5   : > { %6715 = vrcp.f32 %v4475_v15  ;;  %v5705_v15 = vmul.f32 -1.442695, %v4357_v13  ;;  %v4361_v13 = vadd.f32 %v9273_v42, %v9403_v11 }
 0x3c6   : > { %v9491_v57 = vpop.eup %6697  ;;  %6717 = vpow2.f32 %v5703_v37 }
 0x3c7   : > { %v6700_v60 = vpop.eup %6699  ;;  %6719 = vpow2.f32 %v5700_v19  ;;  %v4363_v19 = vadd.f32 %v9273_v42, %v9393_v26  ;;  %v5708_v26 = vmul.f32 -1.442695, %v4360_v54  ;;  %v5709_v54 = vmul.f32 -1.442695, %v4361_v13 }
 0x3c8   : > { %v6702_v22 = vpop.eup %6701  ;;  %6721 = vrcp.f32 %v4473_v58  ;;  %v4479_v1 = vadd.f32 1.0, %v6700_v60 }
 0x3c9   : > { %v9497_v41 = vpop.eup %6703  ;;  %6723 = vrcp.f32 %v4478_v44  ;;  %v4476_v47 = vadd.f32 1.0, %v6702_v22 }
 0x3ca   : > { %v9504_v28 = vpop.eup %6705  ;;  %6725 = vpow2.f32 %v5701_v34 }
 0x3cb   : > { %v6708_v45 = vpop.eup %6707  ;;  %6727 = vpow2.f32 %v5706_v27 }
 0x3cc   : > { %v6710_v6 = vpop.eup %6709  ;;  %6729 = vpow2.f32 %v5704_v33  ;;  %v4477_v35 = vadd.f32 1.0, %v6708_v45  ;;  %v5711_v33 = vmul.f32 -1.442695, %v4363_v19 }
 0x3cd   : > { %v9509_v37 = vpop.eup %6711  ;;  %6731 = vpow2.f32 %v5707_v9  ;;  %v4482_v48 = vadd.f32 1.0, %v6710_v6 }
 0x3ce   : > { %v9515_v58 = vpop.eup %6713  ;;  %6733 = vrcp.f32 %v4479_v1 }
 0x3cf   : > { %v9517_v21 = vpop.eup %6715  ;;  %6735 = vrcp.f32 %v4476_v47 }
 0x3d0   : > { %v6718_v60 = vpop.eup %6717  ;;  %6737 = vpow2.f32 %v5705_v15 }
 0x3d1   : > { %v6720_v22 = vpop.eup %6719  ;;  %6739 = vpow2.f32 %v5710_v62  ;;  %v4483_v45 = vadd.f32 1.0, %v6718_v60  ;;  %v5714_v62 = vmul.f32 -1.442695, %v4366_v23 }
 0x3d2   : > { %v9525_v9 = vpop.eup %6721  ;;  %6741 = vrcp.f32 %v4477_v35 }
 0x3d3   : > { %6743 = vrcp.f32 %v4482_v48 }
 0x3d4   : > { %6745 = vpow2.f32 %v5708_v26  ;;  %v4367_v26 = vadd.f32 %v9273_v42, %v9417_v52 }
 0x3d5   : > { %6747 = vpow2.f32 %v5711_v33 }
 0x3d6   : > { %6749 = vrcp.f32 %v4483_v45 }
 0x3e8   : > { %v9493_v8 = vpop.permute.xlu0 %4740 }
 0x3ea   : > { %v4743_v36 = vpop.permute.xlu1 %4742 }
 0x3eb   : > { %v9502_v43 = vmul.f32 %v9491_v57, %v4743_v36 }
 0x3ec   : > { %v4737_v39 = vpop.permute.xlu0 %4736 }
 0x3ed   : > { %v4804_v50 = vmul.f32 %v9497_v41, %v4737_v39  ;;  %v9529_v39 = vpop.eup %6723 }
 0x3ee   : > { %v4739_v25 = vpop.permute.xlu1 %4738  ;;  %v6726_v11 = vpop.eup %6725 }
 0x3ef   : > { %v4805_v30 = vmul.f32 %v9504_v28, %v4739_v25  ;;  %4896 = vrot.lane.b32.xlu0 %v4804_v50, %s6961_s15  ;;  %v4480_v50 = vadd.f32 1.0, %v6720_v22  ;;  %v6728_v15 = vpop.eup %6727  ;;  %v4481_v35 = vadd.f32 1.0, %v6726_v11 }
 0x3f0   : > { %v4685_v44 = vpop.permute.xlu0 %4684  ;;  %v6730_v18 = vpop.eup %6729  ;;  %v4486_v60 = vadd.f32 1.0, %v6728_v15 }
 0x3f1   : > { %v4778_v34 = vmul.f32 %v9509_v37, %v4685_v44  ;;  %4898 = vrot.lane.b32.xlu1 %v4805_v30, %s6961_s15  ;;  %v6732_v30 = vpop.eup %6731  ;;  %v4364_v44 = vadd.f32 %v9273_v42, %v9413_v17  ;;  %6751 = vrcp.f32 %v4480_v50  ;;  %v4484_v33 = vadd.f32 1.0, %v6730_v18 }
 0x3f2   : > { %v4687_v27 = vpop.permute.xlu1 %4686  ;;  %6753 = vpow2.f32 %v5709_v54  ;;  %v5715_v50 = vmul.f32 -1.442695, %v4367_v26 }
 0x3f3   : > { %v4779_v36 = vmul.f32 %v9517_v21, %v4687_v27  ;;  %4844 = vrot.lane.b32.xlu0 %v4778_v34, %s6961_s15  ;;  %v9539_v34 = vpop.eup %6733  ;;  %6755 = vpow2.f32 %v5714_v62  ;;  %v5712_v45 = vmul.f32 -1.442695, %v4364_v44  ;;  %v4368_v44 = vadd.f32 %v9273_v42, %v9436_v61 }
 0x3f4   : > { %v4681_v1 = vpop.permute.xlu0 %4680  ;;  %v9543_v22 = vpop.eup %6735  ;;  %6757 = vrcp.f32 %v4481_v35 }
 0x3f5   : > { %v4776_v47 = vmul.f32 %v9515_v58, %v4681_v1  ;;  %4846 = vrot.lane.b32.xlu1 %v4779_v36, %s6961_s15  ;;  %v6738_v17 = vpop.eup %6737  ;;  %v4487_v36 = vadd.f32 1.0, %v6732_v30  ;;  %6759 = vrcp.f32 %v4486_v60  ;;  %v4371_v60 = vadd.f32 %v9273_v42, %v9443_v51 }
 0x3f6   : > { %v4683_v6 = vpop.permute.xlu1 %4682  ;;  %v6740_v1 = vpop.eup %6739  ;;  %6761 = vrcp.f32 %v4484_v33  ;;  %v5716_v51 = vmul.f32 -1.442695, %v4368_v44 }
 0x3f7   : > { %v4777_v25 = vmul.f32 %v9525_v9, %v4683_v6  ;;  %4840 = vrot.lane.b32.xlu0 %v4776_v47, %s6961_s15  ;;  %v4365_v47 = vadd.f32 %v9273_v42, %v9428_v46  ;;  %v9551_v11 = vpop.eup %6741  ;;  %v4370_v6 = vadd.f32 %v9273_v42, %v9431_v3  ;;  %6763 = vrcp.f32 %v4487_v36 }
 0x3f8   : > { %v4693_v19 = vpop.permute.xlu0 %4692  ;;  %v9555_v54 = vpop.eup %6743  ;;  %v4490_v62 = vadd.f32 1.0, %v6740_v1  ;;  %6765 = vpow2.f32 %v5712_v45 }
 0x3f9   : > { %v4782_v48 = vmul.f32 %v9529_v39, %v4693_v19  ;;  %4842 = vrot.lane.b32.xlu1 %v4777_v25, %s6961_s15  ;;  %v4485_v25 = vadd.f32 1.0, %v6738_v17  ;;  %v6746_v46 = vpop.eup %6745  ;;  %v5713_v35 = vmul.f32 -1.442695, %v4365_v47  ;;  %6767 = vpow2.f32 %v5715_v50 }
 0x3fa   : > { %v4695_v27 = vpop.permute.xlu1 %4694  ;;  %v6748_v30 = vpop.eup %6747  ;;  %v4488_v33 = vadd.f32 1.0, %v6746_v46 }
 0x3fb   : > { %v4783_v13 = vmul.f32 %v9539_v34, %v4695_v27  ;;  %4852 = vrot.lane.b32.xlu0 %v4782_v48, %s6961_s15  ;;  %v5718_v48 = vmul.f32 -1.442695, %v4370_v6  ;;  %v9565_v26 = vpop.eup %6749  ;;  %v4374_v27 = vadd.f32 %v9273_v42, %v9261_v63  ;;  %6769 = vrcp.f32 %v4485_v25 }
 0x3fc   : > { %v4689_v23 = vpop.permute.xlu0 %4688  ;;  %v9570_v61 = vpop.eup %6751  ;;  %6771 = vrcp.f32 %v4490_v62  ;;  %v4491_v17 = vadd.f32 1.0, %v6748_v30  ;;  %v5719_v63 = vmul.f32 -1.442695, %v4371_v60 }
 0x3fd   : > { %v4780_v52 = vmul.f32 %v9543_v22, %v4689_v23  ;;  %4854 = vrot.lane.b32.xlu1 %v4783_v13, %s6961_s15  ;;  %v6754_v1 = vpop.eup %6753  ;;  %6773 = vpow2.f32 %v5713_v35  ;;  %v5722_v6 = vmul.f32 -1.442695, %v4374_v27 }
 0x3fe   : > { %v4691_v15 = vpop.permute.xlu1 %4690  ;;  %v6756_v47 = vpop.eup %6755  ;;  %6775 = vpow2.f32 %v5718_v48 }
 0x3ff   : > { %v4781_v18 = vmul.f32 %v9551_v11, %v4691_v15  ;;  %4848 = vrot.lane.b32.xlu0 %v4780_v52, %s6961_s15  ;;  %v4369_v52 = vadd.f32 %v9273_v42, %v9448_v40  ;;  %v9577_v50 = vpop.eup %6757  ;;  %6777 = vrcp.f32 %v4488_v33  ;;  %v4494_v30 = vadd.f32 1.0, %v6756_v47 }
 0x400   : > { %v4701_v19 = vpop.permute.xlu0 %4700  ;;  %v9580_v25 = vpop.eup %6759  ;;  %6779 = vrcp.f32 %v4491_v17 }
 0x401   : > { %v4786_v3 = vmul.f32 %v9555_v54, %v4701_v19  ;;  %4850 = vrot.lane.b32.xlu1 %v4781_v18, %s6961_s15  ;;  %v4489_v18 = vadd.f32 1.0, %v6754_v1  ;;  %v9583_v19 = vpop.eup %6761  ;;  %6781 = vpow2.f32 %v5716_v51  ;;  %v5717_v35 = vmul.f32 -1.442695, %v4369_v52 }
 0x402   : > { %v4703_v13 = vpop.permute.xlu1 %4702  ;;  %v9586_v40 = vpop.eup %6763  ;;  %6783 = vpow2.f32 %v5719_v63 }
 0x403   : > { %4860 = vrot.lane.b32.xlu0 %v4786_v3, %s6961_s15  ;;  %v4787_v36 = vmul.f32 %v9565_v26, %v4703_v13  ;;  %v6766_v44 = vpop.eup %6765  ;;  %6785 = vpow2.f32 %v5722_v6 }
 0x404   : > { %v4697_v23 = vpop.permute.xlu0 %4696  ;;  %v6768_v48 = vpop.eup %6767  ;;  %6787 = vrcp.f32 %v4489_v18 }
 0x405   : > { %v4784_v45 = vmul.f32 %v9570_v61, %v4697_v23  ;;  %4862 = vrot.lane.b32.xlu1 %v4787_v36, %s6961_s15  ;;  %v9591_v33 = vpop.eup %6769  ;;  %6789 = vrcp.f32 %v4494_v30  ;;  %v4492_v36 = vadd.f32 1.0, %v6766_v44  ;;  %v4495_v1 = vadd.f32 1.0, %v6768_v48 }
 0x406   : > { %v4699_v15 = vpop.permute.xlu1 %4698  ;;  %v9594_v17 = vpop.eup %6771  ;;  %6791 = vpow2.f32 %v5717_v35 }
 0x407   : > { %4856 = vrot.lane.b32.xlu0 %v4784_v45, %s6961_s15  ;;  %v4785_v46 = vmul.f32 %v9577_v50, %v4699_v15  ;;  %v6774_v23 = vpop.eup %6773  ;;  %6793 = vrcp.f32 %v4492_v36 }
 0x408   : > { %v4709_v62 = vpop.permute.xlu0 %4708  ;;  %v6776_v45 = vpop.eup %6775  ;;  %v4493_v18 = vadd.f32 1.0, %v6774_v23  ;;  %6795 = vrcp.f32 %v4495_v1 }
 0x409   : > { %v4790_v42 = vmul.f32 %v9580_v25, %v4709_v62  ;;  %4858 = vrot.lane.b32.xlu1 %v4785_v46, %s6961_s15  ;;  %v9599_v52 = vpop.eup %6777  ;;  %v4498_v62 = vadd.f32 1.0, %v6776_v45 }
 0x40a   : > { %v4711_v3 = vpop.permute.xlu1 %4710  ;;  %v9602_v15 = vpop.eup %6779  ;;  %6797 = vrcp.f32 %v4493_v18 }
 0x40b   : > { %4868 = vrot.lane.b32.xlu0 %v4790_v42, %s6961_s15  ;;  %v4791_v60 = vmul.f32 %v9586_v40, %v4711_v3  ;;  %v6782_v46 = vpop.eup %6781  ;;  %6799 = vrcp.f32 %v4498_v62 }
 0x40c   : > { %v4705_v27 = vpop.permute.xlu0 %4704  ;;  %v6784_v42 = vpop.eup %6783 }
 0x40d   : > { %v4788_v13 = vmul.f32 %v9583_v19, %v4705_v27  ;;  %4870 = vrot.lane.b32.xlu1 %v4791_v60, %s6961_s15  ;;  %v6786_v3 = vpop.eup %6785  ;;  %v4496_v27 = vadd.f32 1.0, %v6782_v46  ;;  %v4499_v36 = vadd.f32 1.0, %v6784_v42 }
 0x40e   : > { %v4707_v51 = vpop.permute.xlu1 %4706  ;;  %v9608_v60 = vpop.eup %6787 }
 0x40f   : > { %4864 = vrot.lane.b32.xlu0 %v4788_v13, %s6961_s15  ;;  %v4789_v47 = vmul.f32 %v9591_v33, %v4707_v51  ;;  %v9611_v13 = vpop.eup %6789  ;;  %6801 = vrcp.f32 %v4496_v27 }
 0x410   : > { %v4717_v63 = vpop.permute.xlu0 %4716  ;;  %v6792_v1 = vpop.eup %6791  ;;  %6803 = vrcp.f32 %v4499_v36 }
 0x411   : > { %v4794_v6 = vmul.f32 %v9594_v17, %v4717_v63  ;;  %4866 = vrot.lane.b32.xlu1 %v4789_v47, %s6961_s15  ;;  %v4502_v63 = vadd.f32 1.0, %v6786_v3  ;;  %v9618_v18 = vpop.eup %6793 }
 0x412   : > { %v4719_v30 = vpop.permute.xlu1 %4718  ;;  %v9620_v62 = vpop.eup %6795 }
 0x413   : > { %4876 = vrot.lane.b32.xlu0 %v4794_v6, %s6961_s15  ;;  %v4795_v35 = vmul.f32 %v9602_v15, %v4719_v30  ;;  %v4497_v6 = vadd.f32 1.0, %v6792_v1  ;;  %6805 = vrcp.f32 %v4502_v63 }
 0x414   : > { %v4713_v44 = vpop.permute.xlu0 %4712 }
 0x415   : > { %v4792_v48 = vmul.f32 %v9599_v52, %v4713_v44  ;;  %4878 = vrot.lane.b32.xlu1 %v4795_v35, %s6961_s15  ;;  %6807 = vrcp.f32 %v4497_v6  ;;  %v9625_v44 = vpop.eup %6797 }
 0x416   : > { %v4715_v23 = vpop.permute.xlu1 %4714  ;;  %v9628_v3 = vpop.eup %6799 }
 0x417   : > { %4872 = vrot.lane.b32.xlu0 %v4792_v48, %s6961_s15  ;;  %v4793_v51 = vmul.f32 %v9608_v60, %v4715_v23 }
 0x418   : > { %v4725_v45 = vpop.permute.xlu0 %4724 }
 0x419   : > { %v4798_v47 = vmul.f32 %v9611_v13, %v4725_v45  ;;  %4874 = vrot.lane.b32.xlu1 %v4793_v51, %s6961_s15  ;;  %v9632_v1 = vpop.eup %6801 }
 0x41a   : > { %v4727_v30 = vpop.permute.xlu1 %4726  ;;  %v9636_v51 = vpop.eup %6803 }
 0x41b   : > { %4884 = vrot.lane.b32.xlu0 %v4798_v47, %s6961_s15  ;;  %v4799_v35 = vmul.f32 %v9620_v62, %v4727_v30 }
 0x41c   : > { %v4721_v46 = vpop.permute.xlu0 %4720 }
 0x41d   : > { %v4796_v42 = vmul.f32 %v9618_v18, %v4721_v46  ;;  %4886 = vrot.lane.b32.xlu1 %v4799_v35, %s6961_s15  ;;  %v9640_v46 = vpop.eup %6805 }
 0x41e   : > { %v4723_v48 = vpop.permute.xlu1 %4722  ;;  %v4806_v35 = vmul.f32 %v9640_v46, %v9493_v8 }
 0x41f   : > { %4880 = vrot.lane.b32.xlu0 %v4796_v42, %s6961_s15  ;;  %v4797_v36 = vmul.f32 %v9625_v44, %v4723_v48  ;;  %v9644_v30 = vpop.eup %6807 }
 0x420   : > { %v4733_v27 = vpop.permute.xlu0 %4732 }
 0x421   : > { %v4802_v23 = vmul.f32 %v9628_v3, %v4733_v27  ;;  %4882 = vrot.lane.b32.xlu1 %v4797_v36, %s6961_s15  ;;  %v4604_v27 = vadd.f32 %v9485_v0, %v9234_v49 }
 0x422   : > { %v4735_v45 = vpop.permute.xlu1 %4734 }
 0x423   : > { %4892 = vrot.lane.b32.xlu0 %v4802_v23, %s6961_s15  ;;  %v4803_v63 = vmul.f32 %v9636_v51, %v4735_v45  ;;  %v4605_v23 = vadd.f32 %v9485_v0, %v9238_v38 }
 0x424   : > { %v4729_v47 = vpop.permute.xlu0 %4728 }
 0x425   : > { %v4800_v6 = vmul.f32 %v9632_v1, %v4729_v47  ;;  %4894 = vrot.lane.b32.xlu1 %v4803_v63, %s6961_s15  ;;  %v4578_v63 = vadd.f32 %v8963_v5, %v9485_v0  ;;  %v4582_v5 = vadd.f32 %v9019_v2, %v9485_v0 }
 0x426   : > { %v4731_v42 = vpop.permute.xlu1 %4730 }
 0x427   : > { %4888 = vrot.lane.b32.xlu0 %v4800_v6, %s6961_s15  ;;  %v4801_v48 = vmul.f32 %v9644_v30, %v4731_v42 }
 0x429   : > { %4890 = vrot.lane.b32.xlu1 %v4801_v48, %s6961_s15  ;;  %v4576_v48 = vadd.f32 %v9485_v0, %v8972_v7 }
 0x42b   : > { %4900 = vrot.lane.b32.xlu0 %v4806_v35, %s6961_s15 }
 0x42d   : > { %4902 = vrot.lane.b32.xlu1 %v9502_v43, %s6961_s15  ;;  %v4579_v43 = vadd.f32 %v8976_v32, %v9485_v0  ;;  %s5383_s15 = smul.u32 576, %s301_s28 }
 0x42f   : > { %s9760_s22 = scalar_lea.vmem [#allocation2], %s5383_s15 }
 0x461   : > { %v4897_v36 = vpop.permute.xlu0 %4896 }
 0x462   : > { %v4964_v45 = vadd.f32 %v4897_v36, %v4604_v27  ;;  %v4577_v36 = vadd.f32 %v9485_v0, %v8980_v24  ;;  %v4580_v24 = vadd.f32 %v9485_v0, %v9021_v31 }
 0x463   : > { %v4899_v47 = vpop.permute.xlu1 %4898 }
 0x464   : > { %6809 = vtanh.f32 %v4964_v45  ;;  %v4965_v8 = vadd.f32 %v4899_v47, %v4605_v23 }
 0x465   : > { %v4845_v6 = vpop.permute.xlu0 %4844 }
 0x466   : > { %6811 = vtanh.f32 %v4965_v8  ;;  %v4938_v42 = vadd.f32 %v4845_v6, %v4578_v63  ;;  %v4583_v8 = vadd.f32 %v9023_v56, %v9485_v0 }
 0x467   : > { %v4847_v35 = vpop.permute.xlu1 %4846 }
 0x468   : > { %6813 = vtanh.f32 %v4938_v42  ;;  %v4939_v49 = vadd.f32 %v4847_v35, %v4579_v43  ;;  %v4581_v35 = vadd.f32 %v9485_v0, %v9027_v14  ;;  %v4587_v14 = vadd.f32 %v9047_v53, %v9485_v0 }
 0x469   : > { %v4841_v38 = vpop.permute.xlu0 %4840 }
 0x46a   : > { %6815 = vtanh.f32 %v4939_v49  ;;  %v4936_v27 = vadd.f32 %v4841_v38, %v4576_v48  ;;  %v4586_v38 = vadd.f32 %v9043_v4, %v9485_v0 }
 0x46b   : > { %v4843_v23 = vpop.permute.xlu1 %4842 }
 0x46c   : > { %6817 = vtanh.f32 %v4936_v27  ;;  %v4937_v45 = vadd.f32 %v4843_v23, %v4577_v36 }
 0x46d   : > { %v4853_v47 = vpop.permute.xlu0 %4852 }
 0x46e   : > { %v6810_v32 = vpop.eup %6809  ;;  %6819 = vtanh.f32 %v4937_v45  ;;  %v4942_v63 = vadd.f32 %v4853_v47, %v4582_v5  ;;  %v4584_v45 = vadd.f32 %v9485_v0, %v9045_v16 }
 0x46f   : > { %v4855_v7 = vpop.permute.xlu1 %4854  ;;  %5120 = vrot.lane.b32.xlu0 %v6810_v32, %s6965_s21 }
 0x470   : > { %v6812_v6 = vpop.eup %6811  ;;  %6821 = vtanh.f32 %v4942_v63  ;;  %v4943_v42 = vadd.f32 %v4855_v7, %v4583_v8  ;;  %v4585_v7 = vadd.f32 %v9485_v0, %v9051_v59 }
 0x471   : > { %5122 = vrot.lane.b32.xlu1 %v6812_v6, %s6965_s21  ;;  %v4849_v2 = vpop.permute.xlu0 %4848  ;;  %v10322_v6 = vld [vmem:[#allocation8_spill] sm:$0xff] }
 0x472   : > { %v6814_v43 = vpop.eup %6813  ;;  %6823 = vtanh.f32 %v4943_v42  ;;  %v4940_v56 = vadd.f32 %v4849_v2, %v4580_v24  ;;  %v4590_v24 = vadd.f32 %v10322_v6, %v9485_v0 }
 0x473   : > { %v4851_v49 = vpop.permute.xlu1 %4850  ;;  %5068 = vrot.lane.b32.xlu0 %v6814_v43, %s6965_s21 }
 0x474   : > { %v6816_v48 = vpop.eup %6815  ;;  %6825 = vtanh.f32 %v4940_v56  ;;  %v4941_v31 = vadd.f32 %v4851_v49, %v4581_v35  ;;  %v10323_v56 = vld [vmem:[#allocation11_spill] sm:$0xff] }
 0x475   : > { %5070 = vrot.lane.b32.xlu1 %v6816_v48, %s6965_s21  ;;  %v4861_v27 = vpop.permute.xlu0 %4860  ;;  %v4591_v49 = vadd.f32 %v10323_v56, %v9485_v0  ;;  %v10324_v48 = vld [vmem:[#allocation10_spill] sm:$0xff] }
 0x476   : > { %v6818_v36 = vpop.eup %6817  ;;  %6827 = vtanh.f32 %v4941_v31  ;;  %v4946_v23 = vadd.f32 %v4861_v27, %v4586_v38  ;;  %v4588_v38 = vadd.f32 %v9485_v0, %v10324_v48 }
 0x477   : > { %5064 = vrot.lane.b32.xlu0 %v6818_v36, %s6965_s21  ;;  %v4863_v47 = vpop.permute.xlu1 %4862 }
 0x478   : > { %v6820_v5 = vpop.eup %6819  ;;  %6829 = vtanh.f32 %v4946_v23  ;;  %v4947_v4 = vadd.f32 %v4863_v47, %v4587_v14  ;;  %v10326_v47 = vld [vmem:[#allocation14_spill] sm:$0xff] }
 0x479   : > { %5066 = vrot.lane.b32.xlu1 %v6820_v5, %s6965_s21  ;;  %v4857_v32 = vpop.permute.xlu0 %4856  ;;  %v10325_v5 = vld [vmem:[#allocation12_spill] sm:$0xff] }
 0x47a   : > { %v6822_v8 = vpop.eup %6821  ;;  %v4944_v63 = vadd.f32 %v4857_v32, %v4584_v45  ;;  %6831 = vtanh.f32 %v4947_v4  ;;  %v4589_v45 = vadd.f32 %v9485_v0, %v10325_v5  ;;  %v4594_v4 = vadd.f32 %v10326_v47, %v9485_v0 }
 0x47b   : > { %5076 = vrot.lane.b32.xlu0 %v6822_v8, %s6965_s21  ;;  %v4859_v16 = vpop.permute.xlu1 %4858 }
 0x47c   : > { %v6824_v53 = vpop.eup %6823  ;;  %6833 = vtanh.f32 %v4944_v63  ;;  %v4945_v42 = vadd.f32 %v4859_v16, %v4585_v7 }
 0x47d   : > { %5078 = vrot.lane.b32.xlu1 %v6824_v53, %s6965_s21  ;;  %v4869_v2 = vpop.permute.xlu0 %4868 }
 0x47e   : > { %v6826_v43 = vpop.eup %6825  ;;  %v4950_v35 = vadd.f32 %v4869_v2, %v4590_v24  ;;  %6835 = vtanh.f32 %v4945_v42  ;;  %v10327_v24 = vld [vmem:[#allocation16_spill] sm:$0xff]  ;;  %v10328_v42 = vld [vmem:[#allocation15_spill] sm:$0xff] }
 0x47f   : > { %5072 = vrot.lane.b32.xlu0 %v6826_v43, %s6965_s21  ;;  %v4871_v31 = vpop.permute.xlu1 %4870  ;;  %v4595_v16 = vadd.f32 %v10327_v24, %v9485_v0  ;;  %v4592_v2 = vadd.f32 %v9485_v0, %v10328_v42 }
 0x480   : > { %v6828_v59 = vpop.eup %6827  ;;  %6837 = vtanh.f32 %v4950_v35  ;;  %v4951_v27 = vadd.f32 %v4871_v31, %v4591_v49 }
 0x481   : > { %5074 = vrot.lane.b32.xlu1 %v6828_v59, %s6965_s21  ;;  %v4865_v36 = vpop.permute.xlu0 %4864 }
 0x482   : > { %v6830_v23 = vpop.eup %6829  ;;  %v4948_v14 = vadd.f32 %v4865_v36, %v4588_v38  ;;  %6839 = vtanh.f32 %v4951_v27  ;;  %v10329_v38 = vld [vmem:[#allocation18_spill] sm:$0xff] }
 0x483   : > { %5084 = vrot.lane.b32.xlu0 %v6830_v23, %s6965_s21  ;;  %v4867_v32 = vpop.permute.xlu1 %4866  ;;  %v4593_v31 = vadd.f32 %v9485_v0, %v10329_v38  ;;  %v10330_v27 = vld [vmem:[#allocation22_spill] sm:$0xff] }
 0x484   : > { %6841 = vtanh.f32 %v4948_v14  ;;  %v6832_v8 = vpop.eup %6831  ;;  %v4949_v63 = vadd.f32 %v4867_v32, %v4589_v45  ;;  %v4598_v36 = vadd.f32 %v10330_v27, %v9485_v0  ;;  %v10331_v32 = vld [vmem:[#allocation23_spill] sm:$0xff] }
 0x485   : > { %v4877_v7 = vpop.permute.xlu0 %4876  ;;  %5086 = vrot.lane.b32.xlu1 %v6832_v8, %s6965_s21  ;;  %v4596_v8 = vadd.f32 %v9485_v0, %v10331_v32 }
 0x486   : > { %v6834_v53 = vpop.eup %6833  ;;  %v4954_v6 = vadd.f32 %v4877_v7, %v4594_v4  ;;  %6843 = vtanh.f32 %v4949_v63  ;;  %v10332_v7 = vld [vmem:[#allocation24_spill] sm:$0xff] }
 0x487   : > { %5080 = vrot.lane.b32.xlu0 %v6834_v53, %s6965_s21  ;;  %v4879_v43 = vpop.permute.xlu1 %4878  ;;  %v4599_v53 = vadd.f32 %v10332_v7, %v9485_v0 }
 0x488   : > { %6845 = vtanh.f32 %v4954_v6  ;;  %v6836_v35 = vpop.eup %6835  ;;  %v4955_v56 = vadd.f32 %v4879_v43, %v4595_v16 }
 0x489   : > { %v4873_v49 = vpop.permute.xlu0 %4872  ;;  %5082 = vrot.lane.b32.xlu1 %v6836_v35, %s6965_s21  ;;  %v4597_v35 = vadd.f32 %v9485_v0, %v10319_v20  ;;  %v4603_v20 = vadd.f32 %v9212_v10, %v9485_v0 }
 0x48a   : > { %v6838_v59 = vpop.eup %6837  ;;  %v4952_v48 = vadd.f32 %v4873_v49, %v4592_v2  ;;  %6847 = vtanh.f32 %v4955_v56  ;;  %v4602_v56 = vadd.f32 %v9208_v55, %v9485_v0 }
 0x48b   : > { %5092 = vrot.lane.b32.xlu0 %v6838_v59, %s6965_s21  ;;  %v4875_v23 = vpop.permute.xlu1 %4874 }
 0x48c   : > { %6849 = vtanh.f32 %v4952_v48  ;;  %v6840_v14 = vpop.eup %6839  ;;  %v4953_v5 = vadd.f32 %v4875_v23, %v4593_v31 }
 0x48d   : > { %v4885_v45 = vpop.permute.xlu0 %4884  ;;  %5094 = vrot.lane.b32.xlu1 %v6840_v14, %s6965_s21 }
 0x48e   : > { %v6842_v47 = vpop.eup %6841  ;;  %v4958_v4 = vadd.f32 %v4885_v45, %v4598_v36  ;;  %6851 = vtanh.f32 %v4953_v5  ;;  %v4600_v36 = vadd.f32 %v9485_v0, %v9210_v29 }
 0x48f   : > { %5088 = vrot.lane.b32.xlu0 %v6842_v47, %s6965_s21  ;;  %v4887_v16 = vpop.permute.xlu1 %4886  ;;  %v4601_v47 = vadd.f32 %v9485_v0, %v9216_v12 }
 0x490   : > { %6853 = vtanh.f32 %v4958_v4  ;;  %v6844_v63 = vpop.eup %6843  ;;  %v4959_v2 = vadd.f32 %v4887_v16, %v4599_v53  ;;  %v10333_v4 = vld [vmem:[#allocation5_spill] sm:$0xff] }
 0x491   : > { %v4881_v6 = vpop.permute.xlu0 %4880  ;;  %5090 = vrot.lane.b32.xlu1 %v6844_v63, %s6965_s21  ;;  %v4606_v29 = vadd.f32 %v10333_v4, %v9485_v0 }
 0x492   : > { %v6846_v24 = vpop.eup %6845  ;;  %v4956_v42 = vadd.f32 %v4881_v6, %v4596_v8  ;;  %v10334_v6 = vld [vmem:[#allocation7_spill] sm:$0xff] }
 0x493   : > { %5100 = vrot.lane.b32.xlu0 %v6846_v24, %s6965_s21  ;;  %v4883_v59 = vpop.permute.xlu1 %4882  ;;  %v4607_v24 = vadd.f32 %v10334_v6, %v9485_v0  ;;  %v5000_v6 = vsub.f32 1.0, %v9515_v58 }
 0x494   : > { %6855 = vtanh.f32 %v4956_v42  ;;  %v6848_v43 = vpop.eup %6847  ;;  %v4957_v38 = vadd.f32 %v4883_v59, %v4597_v35  ;;  %v5028_v59 = vsub.f32 1.0, %v9497_v41 }
 0x495   : > { %6857 = vtanh.f32 %v4959_v2  ;;  %5102 = vrot.lane.b32.xlu1 %v6848_v43, %s6965_s21  ;;  %v4893_v48 = vpop.permute.xlu0 %4892 }
 0x496   : > { %v6850_v49 = vpop.eup %6849  ;;  %v4962_v31 = vadd.f32 %v4893_v48, %v4602_v56  ;;  %6859 = vtanh.f32 %v4957_v38  ;;  %v6885_v38 = vld [vmem:[%s7373_s11 + $0x1e8] sm:$0xff] }
 0x497   : > { %5096 = vrot.lane.b32.xlu0 %v6850_v49, %s6965_s21  ;;  %v4895_v55 = vpop.permute.xlu1 %4894 }
 0x498   : > { %v6852_v27 = vpop.eup %6851  ;;  %6861 = vtanh.f32 %v4962_v31  ;;  %v4963_v5 = vadd.f32 %v4895_v55, %v4603_v20  ;;  %v5220_v31 = vmul.f32 %v6885_v38, %v9497_v41  ;;  %v6886_v55 = vld [vmem:[%s7373_s11 + $0x1f0] sm:$0xff] }
 0x499   : > { %5098 = vrot.lane.b32.xlu1 %v6852_v27, %s6965_s21  ;;  %v4889_v14 = vpop.permute.xlu0 %4888 }
 0x49a   : > { %v6854_v23 = vpop.eup %6853  ;;  %v4960_v45 = vadd.f32 %v4889_v14, %v4600_v36  ;;  %6863 = vtanh.f32 %v4963_v5  ;;  %v5029_v36 = vsub.f32 1.0, %v9504_v28  ;;  %v5221_v14 = vmul.f32 %v6886_v55, %v9504_v28 }
 0x49b   : > { %5108 = vrot.lane.b32.xlu0 %v6854_v23, %s6965_s21  ;;  %v4891_v10 = vpop.permute.xlu1 %4890 }
 0x49c   : > { %6865 = vtanh.f32 %v4960_v45  ;;  %v4961_v7 = vadd.f32 %v4891_v10, %v4601_v47  ;;  %v5002_v45 = vsub.f32 1.0, %v9509_v37 }
 0x49d   : > { %v4901_v8 = vpop.permute.xlu0 %4900 }
 0x49e   : > { %v6856_v32 = vpop.eup %6855  ;;  %v4966_v53 = vadd.f32 %v4901_v8, %v4606_v29  ;;  %6867 = vtanh.f32 %v4961_v7 }
 0x49f   : > { %v6858_v63 = vpop.eup %6857  ;;  %5104 = vrot.lane.b32.xlu0 %v6856_v32, %s6965_s21  ;;  %v4903_v12 = vpop.permute.xlu1 %4902  ;;  %v5003_v32 = vsub.f32 1.0, %v9517_v21 }
 0x4a0   : > { %5110 = vrot.lane.b32.xlu1 %v6858_v63, %s6965_s21  ;;  %6869 = vtanh.f32 %v4966_v53  ;;  %v6860_v16 = vpop.eup %6859  ;;  %v4967_v42 = vadd.f32 %v4903_v12, %v4607_v24 }
 0x4a2   : > { %v6862_v2 = vpop.eup %6861  ;;  %6871 = vtanh.f32 %v4967_v42 }
 0x4a3   : > { %5116 = vrot.lane.b32.xlu0 %v6862_v2, %s6965_s21  ;;  %v5001_v2 = vsub.f32 1.0, %v9525_v9 }
 0x4a4   : > { %5106 = vrot.lane.b32.xlu1 %v6860_v16, %s6965_s21  ;;  %v6864_v43 = vpop.eup %6863 }
 0x4a6   : > { %v6866_v35 = vpop.eup %6865 }
 0x4a7   : > { %5112 = vrot.lane.b32.xlu0 %v6866_v35, %s6965_s21 }
 0x4a8   : > { %5118 = vrot.lane.b32.xlu1 %v6864_v43, %s6965_s21  ;;  %v6868_v0 = vpop.eup %6867 }
 0x4aa   : > { %v6870_v56 = vpop.eup %6869 }
 0x4ab   : > { %5124 = vrot.lane.b32.xlu0 %v6870_v56, %s6965_s21 }
 0x4ac   : > { %5114 = vrot.lane.b32.xlu1 %v6868_v0, %s6965_s21  ;;  %v6872_v49 = vpop.eup %6871 }
 0x4b0   : > { %5126 = vrot.lane.b32.xlu1 %v6872_v49, %s6965_s21  ;;  %v5006_v49 = vsub.f32 1.0, %v9529_v39 }
 0x4e1   : > { %v5121_v48 = vpop.permute.xlu0 %5120 }
 0x4e2   : > { %v5188_v27 = vmul.f32 %v5121_v48, %v5028_v59 }
 0x4e3   : > { %v5123_v20 = vpop.permute.xlu1 %5122 }
 0x4e4   : > { %v5252_v23 = vadd.f32 %v5220_v31, %v5188_v27  ;;  %v5189_v5 = vmul.f32 %v5123_v20, %v5029_v36  ;;  %v5007_v27 = vsub.f32 1.0, %v9539_v34 }
 0x4e5   : > { %v5069_v47 = vpop.permute.xlu0 %5068 }
 0x4e6   : > { %5286 = vst.msk [vmem:[%s7042_s17 + $0xe0] sm:$0xff] %vm1283_vm5, %v5252_v23  ;;  %5754 = vst.msk [vmem:[%s9760_s22 + $0x1e8] sm:$0xff] %vm1283_vm5, %v5252_v23  ;;  %v5253_v41 = vadd.f32 %v5221_v14, %v5189_v5  ;;  %v5162_v29 = vmul.f32 %v5069_v47, %v5002_v45  ;;  %v5004_v14 = vsub.f32 1.0, %v9543_v22 }
 0x4e7   : > { %v5071_v10 = vpop.permute.xlu1 %5070 }
 0x4e8   : > { %5287 = vst.msk [vmem:[%s7042_s17 + $0xe8] sm:$0xff] %vm1283_vm5, %v5253_v41  ;;  %v5163_v53 = vmul.f32 %v5071_v10, %v5003_v32 }
 0x4e9   : > { %v5065_v24 = vpop.permute.xlu0 %5064 }
 0x4ea   : > { %v5160_v42 = vmul.f32 %v5065_v24, %v5000_v6  ;;  %v5011_v24 = vsub.f32 1.0, %v9565_v26 }
 0x4eb   : > { %v5067_v43 = vpop.permute.xlu1 %5066 }
 0x4ec   : > { %v5161_v56 = vmul.f32 %v5067_v43, %v5001_v2 }
 0x4ed   : > { %v6887_v4 = vld [vmem:[%s7373_s11 + $0x48] sm:$0xff]  ;;  %v5077_v59 = vpop.permute.xlu0 %5076 }
 0x4ee   : > { %v5194_v28 = vmul.f32 %v6887_v4, %v9509_v37  ;;  %5755 = vst.msk [vmem:[%s9760_s22 + $0x1f0] sm:$0xff] %vm1283_vm5, %v5253_v41  ;;  %v5166_v31 = vmul.f32 %v5077_v59, %v5006_v49  ;;  %v5005_v4 = vsub.f32 1.0, %v9551_v11 }
 0x4ef   : > { %v5079_v36 = vpop.permute.xlu1 %5078 }
 0x4f0   : > { %v5226_v8 = vadd.f32 %v5194_v28, %v5162_v29  ;;  %v5167_v55 = vmul.f32 %v5079_v36, %v5007_v27 }
 0x4f1   : > { %v5073_v5 = vpop.permute.xlu0 %5072 }
 0x4f2   : > { %5260 = vst.msk [vmem:[%s7042_s17 + $0x10] sm:$0xff] %vm1283_vm5, %v5226_v8  ;;  %v5164_v41 = vmul.f32 %v5073_v5, %v5004_v14 }
 0x4f3   : > { %v5075_v28 = vpop.permute.xlu1 %5074 }
 0x4f4   : > { %v5165_v10 = vmul.f32 %v5075_v28, %v5005_v4  ;;  %v5013_v28 = vsub.f32 1.0, %v9591_v33 }
 0x4f5   : > { %v6888_v63 = vld [vmem:[%s7373_s11 + $0x50] sm:$0xff] }
 0x4f6   : > { %v5195_v7 = vmul.f32 %v6888_v63, %v9517_v21  ;;  %5728 = vst.msk [vmem:[%s9760_s22 + $0x48] sm:$0xff] %vm1283_vm5, %v5226_v8  ;;  %v5010_v8 = vsub.f32 1.0, %v9555_v54  ;;  %v5085_v63 = vpop.permute.xlu0 %5084 }
 0x4f8   : > { %v5227_v37 = vadd.f32 %v5195_v7, %v5163_v53  ;;  %v5170_v6 = vmul.f32 %v5085_v63, %v5010_v8 }
 0x4fa   : > { %5261 = vst.msk [vmem:[%s7042_s17 + $0x18] sm:$0xff] %vm1283_vm5, %v5227_v37  ;;  %v5081_v43 = vpop.permute.xlu0 %5080 }
 0x4fd   : > { %v6889_v12 = vld [vmem:[%s7373_s11 + $0x28] sm:$0xff] }
 0x4fe   : > { %v5192_v16 = vmul.f32 %v6889_v12, %v9515_v58  ;;  %5729 = vst.msk [vmem:[%s9760_s22 + $0x50] sm:$0xff] %vm1283_vm5, %v5227_v37  ;;  %v5087_v37 = vpop.permute.xlu1 %5086  ;;  %v5008_v12 = vsub.f32 1.0, %v9570_v61 }
 0x4ff   : > { %v5171_v2 = vmul.f32 %v5087_v37, %v5011_v24 }
 0x500   : > { %v5224_v21 = vadd.f32 %v5192_v16, %v5160_v42 }
 0x502   : > { %5258 = vst.msk [vmem:[%s7042_s17] sm:$0xff] %vm1283_vm5, %v5224_v21  ;;  %v5083_v59 = vpop.permute.xlu1 %5082 }
 0x505   : > { %v6890_v35 = vld [vmem:[%s7373_s11 + $0x30] sm:$0xff] }
 0x506   : > { %v5193_v0 = vmul.f32 %v6890_v35, %v9525_v9  ;;  %5726 = vst.msk [vmem:[%s9760_s22 + $0x28] sm:$0xff] %vm1283_vm5, %v5224_v21  ;;  %v5168_v35 = vmul.f32 %v5081_v43, %v5008_v12 }
 0x508   : > { %v5225_v58 = vadd.f32 %v5193_v0, %v5161_v56  ;;  %v5009_v56 = vsub.f32 1.0, %v9577_v50 }
 0x50a   : > { %5259 = vst.msk [vmem:[%s7042_s17 + $0x8] sm:$0xff] %vm1283_vm5, %v5225_v58 }
 0x50d   : > { %v6891_v48 = vld [vmem:[%s7373_s11 + $0x88] sm:$0xff] }
 0x50e   : > { %v5198_v38 = vmul.f32 %v6891_v48, %v9529_v39  ;;  %5727 = vst.msk [vmem:[%s9760_s22 + $0x30] sm:$0xff] %vm1283_vm5, %v5225_v58 }
 0x510   : > { %v5230_v9 = vadd.f32 %v5198_v38, %v5166_v31  ;;  %v5169_v38 = vmul.f32 %v5083_v59, %v5009_v56 }
 0x512   : > { %5264 = vst.msk [vmem:[%s7042_s17 + $0x30] sm:$0xff] %vm1283_vm5, %v5230_v9 }
 0x515   : > { %v6892_v20 = vld [vmem:[%s7373_s11 + $0x90] sm:$0xff] }
 0x516   : > { %v5199_v23 = vmul.f32 %v6892_v20, %v9539_v34  ;;  %5732 = vst.msk [vmem:[%s9760_s22 + $0x88] sm:$0xff] %vm1283_vm5, %v5230_v9  ;;  %v5015_v20 = vsub.f32 1.0, %v9586_v40 }
 0x518   : > { %v5231_v39 = vadd.f32 %v5199_v23, %v5167_v55  ;;  %v5095_v55 = vpop.permute.xlu1 %5094 }
 0x51a   : > { %5265 = vst.msk [vmem:[%s7042_s17 + $0x38] sm:$0xff] %vm1283_vm5, %v5231_v39 }
 0x51d   : > { %v6893_v45 = vld [vmem:[%s7373_s11 + $0x68] sm:$0xff] }
 0x51e   : > { %v5196_v47 = vmul.f32 %v6893_v45, %v9543_v22  ;;  %5733 = vst.msk [vmem:[%s9760_s22 + $0x90] sm:$0xff] %vm1283_vm5, %v5231_v39  ;;  %v5175_v39 = vmul.f32 %v5095_v55, %v5015_v20 }
 0x520   : > { %v5228_v34 = vadd.f32 %v5196_v47, %v5164_v41 }
 0x522   : > { %5262 = vst.msk [vmem:[%s7042_s17 + $0x20] sm:$0xff] %vm1283_vm5, %v5228_v34 }
 0x525   : > { %v6894_v29 = vld [vmem:[%s7373_s11 + $0x70] sm:$0xff] }
 0x526   : > { %v5197_v32 = vmul.f32 %v6894_v29, %v9551_v11  ;;  %5730 = vst.msk [vmem:[%s9760_s22 + $0x68] sm:$0xff] %vm1283_vm5, %v5228_v34  ;;  %v5091_v29 = vpop.permute.xlu1 %5090 }
 0x527   : > { %v5173_v8 = vmul.f32 %v5091_v29, %v5013_v28 }
 0x528   : > { %v5229_v22 = vadd.f32 %v5197_v32, %v5165_v10 }
 0x52a   : > { %5263 = vst.msk [vmem:[%s7042_s17 + $0x28] sm:$0xff] %vm1283_vm5, %v5229_v22 }
 0x52d   : > { %v6895_v7 = vld [vmem:[%s7373_s11 + $0xc8] sm:$0xff] }
 0x52e   : > { %v5202_v53 = vmul.f32 %v6895_v7, %v9555_v54  ;;  %5731 = vst.msk [vmem:[%s9760_s22 + $0x70] sm:$0xff] %vm1283_vm5, %v5229_v22 }
 0x530   : > { %v5234_v11 = vadd.f32 %v5202_v53, %v5170_v6  ;;  %v5019_v6 = vsub.f32 1.0, %v9602_v15 }
 0x532   : > { %5268 = vst.msk [vmem:[%s7042_s17 + $0x50] sm:$0xff] %vm1283_vm5, %v5234_v11 }
 0x535   : > { %v6896_v16 = vld [vmem:[%s7373_s11 + $0xd0] sm:$0xff] }
 0x536   : > { %v5203_v42 = vmul.f32 %v6896_v16, %v9565_v26  ;;  %5736 = vst.msk [vmem:[%s9760_s22 + $0xc8] sm:$0xff] %vm1283_vm5, %v5234_v11  ;;  %v5014_v26 = vsub.f32 1.0, %v9580_v25  ;;  %v5103_v11 = vpop.permute.xlu1 %5102 }
 0x537   : > { %v5179_v16 = vmul.f32 %v5103_v11, %v5019_v6 }
 0x538   : > { %v5235_v0 = vadd.f32 %v5203_v42, %v5171_v2 }
 0x53a   : > { %5269 = vst.msk [vmem:[%s7042_s17 + $0x58] sm:$0xff] %vm1283_vm5, %v5235_v0 }
 0x53d   : > { %v6897_v54 = vld [vmem:[%s7373_s11 + $0xa8] sm:$0xff] }
 0x53e   : > { %v5200_v21 = vmul.f32 %v6897_v54, %v9570_v61  ;;  %5737 = vst.msk [vmem:[%s9760_s22 + $0xd0] sm:$0xff] %vm1283_vm5, %v5235_v0  ;;  %v5093_v61 = vpop.permute.xlu0 %5092  ;;  %v5099_v0 = vpop.permute.xlu1 %5098 }
 0x53f   : > { %v5174_v36 = vmul.f32 %v5093_v61, %v5014_v26 }
 0x540   : > { %v5232_v49 = vadd.f32 %v5200_v21, %v5168_v35  ;;  %v5017_v21 = vsub.f32 1.0, %v9608_v60 }
 0x542   : > { %5266 = vst.msk [vmem:[%s7042_s17 + $0x40] sm:$0xff] %vm1283_vm5, %v5232_v49 }
 0x545   : > { %v6898_v58 = vld [vmem:[%s7373_s11 + $0xb0] sm:$0xff] }
 0x546   : > { %v5201_v48 = vmul.f32 %v6898_v58, %v9577_v50  ;;  %5734 = vst.msk [vmem:[%s9760_s22 + $0xa8] sm:$0xff] %vm1283_vm5, %v5232_v49  ;;  %v5012_v50 = vsub.f32 1.0, %v9583_v19 }
 0x548   : > { %v5233_v9 = vadd.f32 %v5201_v48, %v5169_v38 }
 0x54a   : > { %5267 = vst.msk [vmem:[%s7042_s17 + $0x48] sm:$0xff] %vm1283_vm5, %v5233_v9 }
 0x54d   : > { %v6899_v31 = vld [vmem:[%s7373_s11 + $0x108] sm:$0xff] }
 0x54e   : > { %v5206_v27 = vmul.f32 %v6899_v31, %v9580_v25  ;;  %5735 = vst.msk [vmem:[%s9760_s22 + $0xb0] sm:$0xff] %vm1283_vm5, %v5233_v9  ;;  %v5089_v25 = vpop.permute.xlu0 %5088  ;;  %v5020_v31 = vsub.f32 1.0, %v9618_v18 }
 0x54f   : > { %v5172_v41 = vmul.f32 %v5089_v25, %v5012_v50 }
 0x550   : > { %v5238_v23 = vadd.f32 %v5206_v27, %v5174_v36 }
 0x552   : > { %5272 = vst.msk [vmem:[%s7042_s17 + $0x70] sm:$0xff] %vm1283_vm5, %v5238_v23 }
 0x555   : > { %v6900_v14 = vld [vmem:[%s7373_s11 + $0x110] sm:$0xff] }
 0x556   : > { %v5207_v5 = vmul.f32 %v6900_v14, %v9586_v40  ;;  %5740 = vst.msk [vmem:[%s9760_s22 + $0x108] sm:$0xff] %vm1283_vm5, %v5238_v23  ;;  %v5018_v40 = vsub.f32 1.0, %v9594_v17 }
 0x558   : > { %v5239_v4 = vadd.f32 %v5207_v5, %v5175_v39  ;;  %v5021_v39 = vsub.f32 1.0, %v9625_v44 }
 0x55a   : > { %5273 = vst.msk [vmem:[%s7042_s17 + $0x78] sm:$0xff] %vm1283_vm5, %v5239_v4 }
 0x55d   : > { %v6901_v45 = vld [vmem:[%s7373_s11 + $0xe8] sm:$0xff] }
 0x55e   : > { %v5204_v47 = vmul.f32 %v6901_v45, %v9583_v19  ;;  %5741 = vst.msk [vmem:[%s9760_s22 + $0x110] sm:$0xff] %vm1283_vm5, %v5239_v4  ;;  %v5101_v19 = vpop.permute.xlu0 %5100  ;;  %v5026_v45 = vsub.f32 1.0, %v9628_v3 }
 0x55f   : > { %v5178_v7 = vmul.f32 %v5101_v19, %v5018_v40  ;;  %v5027_v40 = vsub.f32 1.0, %v9636_v51 }
 0x560   : > { %v5236_v34 = vadd.f32 %v5204_v47, %v5172_v41 }
 0x562   : > { %5270 = vst.msk [vmem:[%s7042_s17 + $0x60] sm:$0xff] %vm1283_vm5, %v5236_v34 }
 0x565   : > { %v6902_v32 = vld [vmem:[%s7373_s11 + $0xf0] sm:$0xff] }
 0x566   : > { %v5205_v10 = vmul.f32 %v6902_v32, %v9591_v33  ;;  %5738 = vst.msk [vmem:[%s9760_s22 + $0xe8] sm:$0xff] %vm1283_vm5, %v5236_v34  ;;  %v5016_v33 = vsub.f32 1.0, %v9599_v52 }
 0x568   : > { %v5237_v53 = vadd.f32 %v5205_v10, %v5173_v8  ;;  %v5024_v8 = vsub.f32 1.0, %v9632_v1 }
 0x56a   : > { %5271 = vst.msk [vmem:[%s7042_s17 + $0x68] sm:$0xff] %vm1283_vm5, %v5237_v53 }
 0x56d   : > { %v6903_v63 = vld [vmem:[%s7373_s11 + $0x148] sm:$0xff] }
 0x56e   : > { %v5210_v22 = vmul.f32 %v6903_v63, %v9594_v17  ;;  %5739 = vst.msk [vmem:[%s9760_s22 + $0xf0] sm:$0xff] %vm1283_vm5, %v5237_v53  ;;  %v5097_v17 = vpop.permute.xlu0 %5096 }
 0x56f   : > { %v5176_v43 = vmul.f32 %v5097_v17, %v5016_v33 }
 0x570   : > { %v5242_v24 = vadd.f32 %v5210_v22, %v5178_v7 }
 0x572   : > { %5276 = vst.msk [vmem:[%s7042_s17 + $0x90] sm:$0xff] %vm1283_vm5, %v5242_v24  ;;  %v5109_v59 = vpop.permute.xlu0 %5108 }
 0x575   : > { %v6904_v37 = vld [vmem:[%s7373_s11 + $0x150] sm:$0xff] }
 0x576   : > { %v5211_v12 = vmul.f32 %v6904_v37, %v9602_v15  ;;  %5744 = vst.msk [vmem:[%s9760_s22 + $0x148] sm:$0xff] %vm1283_vm5, %v5242_v24  ;;  %v5022_v15 = vsub.f32 1.0, %v9611_v13  ;;  %v5105_v27 = vpop.permute.xlu0 %5104  ;;  %v5025_v24 = vsub.f32 1.0, %v9644_v30 }
 0x577   : > { %v5180_v20 = vmul.f32 %v5105_v27, %v5020_v31 }
 0x578   : > { %v5243_v54 = vadd.f32 %v5211_v12, %v5179_v16  ;;  %v5182_v48 = vmul.f32 %v5109_v59, %v5022_v15 }
 0x57a   : > { %5277 = vst.msk [vmem:[%s7042_s17 + $0x98] sm:$0xff] %vm1283_vm5, %v5243_v54  ;;  %v5117_v41 = vpop.permute.xlu0 %5116 }
 0x57b   : > { %v5186_v34 = vmul.f32 %v5117_v41, %v5026_v45 }
 0x57d   : > { %v6905_v42 = vld [vmem:[%s7373_s11 + $0x128] sm:$0xff] }
 0x57e   : > { %v5208_v2 = vmul.f32 %v6905_v42, %v9599_v52  ;;  %5745 = vst.msk [vmem:[%s9760_s22 + $0x150] sm:$0xff] %vm1283_vm5, %v5243_v54  ;;  %v5177_v52 = vmul.f32 %v5099_v0, %v5017_v21  ;;  %v5031_v54 = vsub.f32 1.0, %v9491_v57 }
 0x580   : > { %v5240_v35 = vadd.f32 %v5208_v2, %v5176_v43 }
 0x582   : > { %5274 = vst.msk [vmem:[%s7042_s17 + $0x80] sm:$0xff] %vm1283_vm5, %v5240_v35 }
 0x585   : > { %v6906_v56 = vld [vmem:[%s7373_s11 + $0x130] sm:$0xff] }
 0x586   : > { %v5209_v49 = vmul.f32 %v6906_v56, %v9608_v60  ;;  %5742 = vst.msk [vmem:[%s9760_s22 + $0x128] sm:$0xff] %vm1283_vm5, %v5240_v35  ;;  %v5023_v60 = vsub.f32 1.0, %v9620_v62 }
 0x588   : > { %v5241_v38 = vadd.f32 %v5209_v49, %v5177_v52 }
 0x58a   : > { %5275 = vst.msk [vmem:[%s7042_s17 + $0x88] sm:$0xff] %vm1283_vm5, %v5241_v38 }
 0x58d   : > { %v6907_v26 = vld [vmem:[%s7373_s11 + $0x188] sm:$0xff] }
 0x58e   : > { %v5214_v58 = vmul.f32 %v6907_v26, %v9611_v13  ;;  %5743 = vst.msk [vmem:[%s9760_s22 + $0x130] sm:$0xff] %vm1283_vm5, %v5241_v38  ;;  %v5111_v13 = vpop.permute.xlu1 %5110 }
 0x58f   : > { %v5183_v50 = vmul.f32 %v5111_v13, %v5023_v60 }
 0x590   : > { %v5246_v61 = vadd.f32 %v5214_v58, %v5182_v48 }
 0x592   : > { %5280 = vst.msk [vmem:[%s7042_s17 + $0xb0] sm:$0xff] %vm1283_vm5, %v5246_v61  ;;  %5748 = vst.msk [vmem:[%s9760_s22 + $0x188] sm:$0xff] %vm1283_vm5, %v5246_v61  ;;  %v5107_v25 = vpop.permute.xlu1 %5106 }
 0x593   : > { %v5181_v47 = vmul.f32 %v5107_v25, %v5021_v39 }
 0x596   : > { %v5119_v10 = vpop.permute.xlu1 %5118 }
 0x597   : > { %v5187_v63 = vmul.f32 %v5119_v10, %v5027_v40 }
 0x599   : > { %v6908_v36 = vld [vmem:[%s7373_s11 + $0x168] sm:$0xff]  ;;  %v6909_v23 = vld [vmem:[%s7373_s11 + $0x190] sm:$0xff] }
 0x59a   : > { %v5212_v9 = vmul.f32 %v6908_v36, %v9618_v18  ;;  %v5215_v55 = vmul.f32 %v6909_v23, %v9620_v62  ;;  %v5115_v33 = vpop.permute.xlu1 %5114 }
 0x59b   : > { %v5185_v16 = vmul.f32 %v5115_v33, %v5025_v24 }
 0x59c   : > { %v5244_v14 = vadd.f32 %v5212_v9, %v5180_v20  ;;  %v5247_v5 = vadd.f32 %v5215_v55, %v5183_v50 }
 0x59e   : > { %5278 = vst.msk [vmem:[%s7042_s17 + $0xa0] sm:$0xff] %vm1283_vm5, %v5244_v14  ;;  %5746 = vst.msk [vmem:[%s9760_s22 + $0x168] sm:$0xff] %vm1283_vm5, %v5244_v14  ;;  %v5127_v35 = vpop.permute.xlu1 %5126 }
 0x59f   : > { %5281 = vst.msk [vmem:[%s7042_s17 + $0xb8] sm:$0xff] %vm1283_vm5, %v5247_v5  ;;  %5749 = vst.msk [vmem:[%s9760_s22 + $0x190] sm:$0xff] %vm1283_vm5, %v5247_v5  ;;  %v5191_v15 = vmul.f32 %v5127_v35, %v5031_v54 }
 0x5a6   : > { %v6910_v18 = vld [vmem:[%s7373_s11 + $0x170] sm:$0xff]  ;;  %v6911_v4 = vld [vmem:[%s7373_s11 + $0x1c8] sm:$0xff] }
 0x5a7   : > { %v5213_v62 = vmul.f32 %v6910_v18, %v9625_v44  ;;  %v5218_v28 = vmul.f32 %v6911_v4, %v9628_v3  ;;  %v5113_v3 = vpop.permute.xlu0 %5112 }
 0x5a8   : > { %v5184_v53 = vmul.f32 %v5113_v3, %v5024_v8 }
 0x5a9   : > { %v5245_v29 = vadd.f32 %v5213_v62, %v5181_v47  ;;  %v5250_v32 = vadd.f32 %v5218_v28, %v5186_v34 }
 0x5ab   : > { %5279 = vst.msk [vmem:[%s7042_s17 + $0xa8] sm:$0xff] %vm1283_vm5, %v5245_v29  ;;  %5747 = vst.msk [vmem:[%s9760_s22 + $0x170] sm:$0xff] %vm1283_vm5, %v5245_v29 }
 0x5ac   : > { %5284 = vst.msk [vmem:[%s7042_s17 + $0xd0] sm:$0xff] %vm1283_vm5, %v5250_v32 }
 0x5b2   : > { %v6912_v44 = vld [vmem:[%s7373_s11 + $0x1d0] sm:$0xff] }
 0x5b3   : > { %v5219_v19 = vmul.f32 %v6912_v44, %v9636_v51  ;;  %5752 = vst.msk [vmem:[%s9760_s22 + $0x1c8] sm:$0xff] %vm1283_vm5, %v5250_v32  ;;  %v5030_v51 = vsub.f32 1.0, %v9640_v46 }
 0x5b5   : > { %v5251_v6 = vadd.f32 %v5219_v19, %v5187_v63 }
 0x5b7   : > { %5285 = vst.msk [vmem:[%s7042_s17 + $0xd8] sm:$0xff] %vm1283_vm5, %v5251_v6 }
 0x5ba   : > { %v6913_v22 = vld [vmem:[%s7373_s11 + $0x1a8] sm:$0xff] }
 0x5bb   : > { %v5216_v7 = vmul.f32 %v6913_v22, %v9632_v1  ;;  %5753 = vst.msk [vmem:[%s9760_s22 + $0x1d0] sm:$0xff] %vm1283_vm5, %v5251_v6  ;;  %v5125_v1 = vpop.permute.xlu0 %5124 }
 0x5bc   : > { %v5190_v2 = vmul.f32 %v5125_v1, %v5030_v51 }
 0x5bd   : > { %v5248_v11 = vadd.f32 %v5216_v7, %v5184_v53 }
 0x5bf   : > { %5282 = vst.msk [vmem:[%s7042_s17 + $0xc0] sm:$0xff] %vm1283_vm5, %v5248_v11 }
 0x5c2   : > { %v6914_v37 = vld [vmem:[%s7373_s11 + $0x1b0] sm:$0xff] }
 0x5c3   : > { %v5217_v12 = vmul.f32 %v6914_v37, %v9644_v30  ;;  %5750 = vst.msk [vmem:[%s9760_s22 + $0x1a8] sm:$0xff] %vm1283_vm5, %v5248_v11 }
 0x5c5   : > { %v5249_v43 = vadd.f32 %v5217_v12, %v5185_v16 }
 0x5c7   : > { %5283 = vst.msk [vmem:[%s7042_s17 + $0xc8] sm:$0xff] %vm1283_vm5, %v5249_v43 }
 0x5ca   : > { %v6915_v17 = vld [vmem:[%s7373_s11 + $0x208] sm:$0xff] }
 0x5cb   : > { %v5222_v42 = vmul.f32 %v6915_v17, %v9640_v46  ;;  %5751 = vst.msk [vmem:[%s9760_s22 + $0x1b0] sm:$0xff] %vm1283_vm5, %v5249_v43 }
 0x5cd   : > { %v5254_v21 = vadd.f32 %v5222_v42, %v5190_v2 }
 0x5cf   : > { %5288 = vst.msk [vmem:[%s7042_s17 + $0xf0] sm:$0xff] %vm1283_vm5, %v5254_v21 }
 0x5d2   : > { %v6916_v30 = vld [vmem:[%s7373_s11 + $0x210] sm:$0xff] }
 0x5d3   : > { %v5223_v0 = vmul.f32 %v6916_v30, %v9491_v57  ;;  %5756 = vst.msk [vmem:[%s9760_s22 + $0x208] sm:$0xff] %vm1283_vm5, %v5254_v21 }
 0x5d5   : > { %v5255_v56 = vadd.f32 %v5223_v0, %v5191_v15 }
 0x5d7   : > { %5289 = vst.msk [vmem:[%s7042_s17 + $0xf8] sm:$0xff] %vm1283_vm5, %v5255_v56  ;;  %5757 = vst.msk [vmem:[%s9760_s22 + $0x210] sm:$0xff] %vm1283_vm5, %v5255_v56 }
 0x5d8 PF: > { %s16_s25 = sadd.s32 1, %s6955_s25   ;;  %s10335_s28 = sld [smem:[#allocation3_spill]] }
 0x5d9   : > { %p13_p10 = scmp.ge.s32.totalorder %s16_s25, 18   ;;  %s10336_s11 = sld [smem:[#allocation4_spill]] }
 0x5da   : > { %s10337_s21 = smov %s6947_s23  ;;  %s10338_s22 = smov %s6951_s24 }
 0x5db   :  { %15 = sbr.rel (!%p13_p10) target bundleno = 3 (0x3), region = 90 }
 0x5de   : > { %s10339_s23 = smov %s10335_s28 }
 0x5df   : > { %s10340_s24 = smov %s10336_s11 }

</bundles_post_ra>
